<compile_context>
chip_gen: v7x
topology: tpu7x:2x2x1
jax: 0.10.0
libtpu: 0.0.40
codegen_flags: <defaults>
</compile_context>

<pallas_src>
import jax
import jax.numpy as jnp
from jax.experimental import pallas as pl
from jax.experimental.pallas import tpu as pltpu

IN_FEATS = 3
HIDDEN = 256
OUT_FEATS = 864            # kernel_size^2 * inC * outC = 9 * 32 * 3
OUT_PAD = 896              # 7 * 128 -> lane-dense stores / clean MXU column tiles


def _round_up(a, m):
    return (a + m - 1) // m * m


def pos2weight_kernel(x_ref, w1_ref, b1_ref, w2_ref, b2_ref, o_ref):
    # x_ref:  (tn, 3)         tile of position rows
    # w1_ref: (3, 256)        first-layer weight (f32)
    # b1_ref: (1, 256)        first-layer bias   (f32)
    # w2_ref: (256, 896)      second-layer weight, column-padded (bf16 or f32)
    # b2_ref: (1, 896)        second-layer bias, column-padded (f32)
    # o_ref:  (tn, 896)
    x = x_ref[...].astype(jnp.float32)       # (tn, 3)
    w1 = w1_ref[...]                         # (3, 256)

    # Layer 1 on the VPU: K=3 contraction as three rank-1 updates; a
    # (tn,3)x(3,256) matmul would occupy the MXU with an almost-empty pass.
    h = b1_ref[...] + x[:, 0:1] * w1[0:1, :]
    h = h + x[:, 1:2] * w1[1:2, :]
    h = h + x[:, 2:3] * w1[2:3, :]
    h = jnp.maximum(h, 0.0)                  # ReLU (== torch inplace ReLU)

    # Layer 2 on the MXU: operands in W2's dtype (bf16 when enabled), f32 accum.
    out = jnp.dot(h.astype(w2_ref.dtype), w2_ref[...],
                  preferred_element_type=jnp.float32)
    out = out + b2_ref[...]
    o_ref[...] = out.astype(o_ref.dtype)


def pos2weight(x, w1, b1, w2, b2, *, tn=1024, use_bf16=True, out_dtype=None):
    """x:(N,3), w1:(3,256), b1:(1,256), w2:(256,864), b2:(1,864) -> (N,864)."""
    N = x.shape[0]
    out_dtype = x.dtype if out_dtype is None else out_dtype

    # Row tile: multiple of 256 (works for v5e's 4x128^2 and v6e/v7x 2x256^2
    # MXUs), capped at `tn` and at the (rounded-up) problem size.
    tile = min(_round_up(tn, 256), _round_up(N, 256))
    n_blocks = pl.cdiv(N, tile)
    n_pad = n_blocks * tile

    # Pad rows to a tile multiple; pad the output feature dim 864 -> 896.
    x_p = jnp.pad(x, ((0, n_pad - N), (0, 0))) if n_pad != N else x
    w2_p = jnp.pad(w2, ((0, 0), (0, OUT_PAD - OUT_FEATS)))
    b2_p = jnp.pad(b2, ((0, 0), (0, OUT_PAD - OUT_FEATS)))
    if use_bf16:
        w2_p = w2_p.astype(jnp.bfloat16)      # halves W2 DMA/VMEM; f32 accum kept

    out_itemsize = jnp.dtype(out_dtype).itemsize
    w2_itemsize = jnp.dtype(w2_p.dtype).itemsize

    # VMEM budget: double-buffered output + input tiles, W2 buffers, hidden act.
    vmem_need = (2 * tile * OUT_PAD * out_itemsize
                 + 2 * tile * IN_FEATS * 4
                 + 2 * HIDDEN * OUT_PAD * w2_itemsize
                 + 2 * (IN_FEATS + 2) * HIDDEN * 4
                 + tile * HIDDEN * 4)
    vmem_limit = int(min(max(2 * vmem_need, 32 * 1024 * 1024), 64 * 1024 * 1024))

    cost = pl.CostEstimate(
        flops=2 * n_pad * (IN_FEATS * HIDDEN + HIDDEN * OUT_PAD),
        transcendentals=0,
        bytes_accessed=(n_pad * IN_FEATS * 4
                        + n_pad * OUT_PAD * out_itemsize
                        + IN_FEATS * HIDDEN * 4
                        + HIDDEN * OUT_PAD * w2_itemsize),
    )

    out_padded = pl.pallas_call(
        pos2weight_kernel,
        out_shape=jax.ShapeDtypeStruct((n_pad, OUT_PAD), out_dtype),
        grid_spec=pltpu.PrefetchScalarGridSpec(
            num_scalar_prefetch=0,
            grid=(n_blocks,),
            in_specs=[
                pl.BlockSpec((tile, IN_FEATS), lambda i: (i, 0)),     # x tile
                pl.BlockSpec((IN_FEATS, HIDDEN), lambda i: (0, 0)),   # W1 (full)
                pl.BlockSpec((1, HIDDEN), lambda i: (0, 0)),          # b1
                pl.BlockSpec((HIDDEN, OUT_PAD), lambda i: (0, 0)),    # W2 (full, padded)
                pl.BlockSpec((1, OUT_PAD), lambda i: (0, 0)),         # b2 (padded)
            ],
            out_specs=pl.BlockSpec((tile, OUT_PAD), lambda i: (i, 0)),
        ),
        compiler_params=pltpu.CompilerParams(
            dimension_semantics=("parallel",),
            vmem_limit_bytes=vmem_limit,
        ),
        cost_estimate=cost,
    )(x_p, w1, b1, w2_p, b2_p)

    return out_padded[:N, :OUT_FEATS]


def init_params(key):
    # Deterministic init mimicking torch.nn.Linear default:
    # U(-1/sqrt(fan_in), 1/sqrt(fan_in)) for both weight and bias.
    k1, k2, k3, k4 = jax.random.split(key, 4)
    bound1 = 1.0 / jnp.sqrt(float(IN_FEATS))
    bound2 = 1.0 / jnp.sqrt(float(HIDDEN))
    w1 = jax.random.uniform(k1, (IN_FEATS, HIDDEN), jnp.float32, -bound1, bound1)
    b1 = jax.random.uniform(k2, (1, HIDDEN), jnp.float32, -bound1, bound1)
    w2 = jax.random.uniform(k3, (HIDDEN, OUT_FEATS), jnp.float32, -bound2, bound2)
    b2 = jax.random.uniform(k4, (1, OUT_FEATS), jnp.float32, -bound2, bound2)
    return w1, b1, w2, b2


if __name__ == "__main__":
    key = jax.random.PRNGKey(0)
    kp, kx = jax.random.split(key)
    w1, b1, w2, b2 = init_params(kp)

    # N = 500 position rows (deliberately not tile-divisible to exercise the
    # row-padding path), each row = (rel-offset-h, rel-offset-w, 1/scale).
    N = 500
    x = jax.random.uniform(kx, (N, IN_FEATS), jnp.float32)

    out = jax.block_until_ready(pos2weight(x, w1, b1, w2, b2))

    # Pure-JAX f32 reference; kernel uses bf16 operands (f32 accumulation) for
    # the second matmul, so compare with a correspondingly relaxed tolerance.
    ref = jnp.maximum(x @ w1 + b1, 0.0) @ w2 + b2
    assert out.shape == (N, OUT_FEATS)
    max_err = float(jnp.max(jnp.abs(out - ref)))
    assert jnp.allclose(out, ref, atol=2e-2, rtol=2e-2), f"max abs err {max_err}"

    print("KERNEL_OK")
</pallas_src>

<mosaic_0001>
module attributes {stable_mosaic.version = 11 : i64} {
  func.func @pos2weight_kernel(%arg0: i32, %arg1: memref<512x3xf32, #tpu.memory_space<vmem>>, %arg2: memref<3x256xf32, #tpu.memory_space<vmem>>, %arg3: memref<1x256xf32, #tpu.memory_space<vmem>>, %arg4: memref<256x896xbf16, #tpu.memory_space<vmem>>, %arg5: memref<1x896xf32, #tpu.memory_space<vmem>>, %arg6: memref<512x896xf32, #tpu.memory_space<vmem>>) attributes {dimension_semantics = [#tpu.dimension_semantics<parallel>], iteration_bounds = array<i64: 1>, scalar_prefetch = 0 : i64, scratch_operands = 0 : i64, tpu.core_type = #tpu.core_type<tc>, window_params = [{transform_indices = @transform_0, window_bounds = array<i64: 512, 3>}, {pipeline_mode = #tpu.pipeline_mode<synchronous>, transform_indices = @transform_1, window_bounds = array<i64: 3, 256>}, {pipeline_mode = #tpu.pipeline_mode<synchronous>, transform_indices = @transform_2, window_bounds = array<i64: 1, 256>}, {pipeline_mode = #tpu.pipeline_mode<synchronous>, transform_indices = @transform_3, window_bounds = array<i64: 256, 896>}, {pipeline_mode = #tpu.pipeline_mode<synchronous>, transform_indices = @transform_4, window_bounds = array<i64: 1, 896>}, {transform_indices = @transform_5, window_bounds = array<i64: 512, 896>}]} {
    %c0 = arith.constant 0 : index
    %c0_0 = arith.constant 0 : index
    %0 = vector.load %arg1[%c0, %c0_0] : memref<512x3xf32, #tpu.memory_space<vmem>>, vector<512x3xf32>
    %c0_1 = arith.constant 0 : index
    %c0_2 = arith.constant 0 : index
    %1 = vector.load %arg2[%c0_1, %c0_2] : memref<3x256xf32, #tpu.memory_space<vmem>>, vector<3x256xf32>
    %c0_3 = arith.constant 0 : index
    %c0_4 = arith.constant 0 : index
    %2 = vector.load %arg3[%c0_3, %c0_4] : memref<1x256xf32, #tpu.memory_space<vmem>>, vector<1x256xf32>
    %3 = vector.extract_strided_slice %0 {offsets = [0, 0], sizes = [512, 1], strides = [1, 1]} : vector<512x3xf32> to vector<512x1xf32>
    %4 = vector.extract_strided_slice %1 {offsets = [0, 0], sizes = [1, 256], strides = [1, 1]} : vector<3x256xf32> to vector<1x256xf32>
    %5 = vector.broadcast %3 : vector<512x1xf32> to vector<512x256xf32>
    %6 = vector.broadcast %4 : vector<1x256xf32> to vector<512x256xf32>
    %7 = arith.mulf %5, %6 : vector<512x256xf32>
    %8 = vector.broadcast %2 : vector<1x256xf32> to vector<512x256xf32>
    %9 = arith.addf %8, %7 : vector<512x256xf32>
    %10 = vector.extract_strided_slice %0 {offsets = [0, 1], sizes = [512, 1], strides = [1, 1]} : vector<512x3xf32> to vector<512x1xf32>
    %11 = vector.extract_strided_slice %1 {offsets = [1, 0], sizes = [1, 256], strides = [1, 1]} : vector<3x256xf32> to vector<1x256xf32>
    %12 = vector.broadcast %10 : vector<512x1xf32> to vector<512x256xf32>
    %13 = vector.broadcast %11 : vector<1x256xf32> to vector<512x256xf32>
    %14 = arith.mulf %12, %13 : vector<512x256xf32>
    %15 = arith.addf %9, %14 : vector<512x256xf32>
    %16 = vector.extract_strided_slice %0 {offsets = [0, 2], sizes = [512, 1], strides = [1, 1]} : vector<512x3xf32> to vector<512x1xf32>
    %17 = vector.extract_strided_slice %1 {offsets = [2, 0], sizes = [1, 256], strides = [1, 1]} : vector<3x256xf32> to vector<1x256xf32>
    %18 = vector.broadcast %16 : vector<512x1xf32> to vector<512x256xf32>
    %19 = vector.broadcast %17 : vector<1x256xf32> to vector<512x256xf32>
    %20 = arith.mulf %18, %19 : vector<512x256xf32>
    %21 = arith.addf %15, %20 : vector<512x256xf32>
    %cst = arith.constant 0.000000e+00 : f32
    %22 = vector.broadcast %cst : f32 to vector<512x256xf32>
    %23 = arith.maximumf %21, %22 : vector<512x256xf32>
    %24 = arith.truncf %23 : vector<512x256xf32> to vector<512x256xbf16>
    %c0_5 = arith.constant 0 : index
    %c0_6 = arith.constant 0 : index
    %25 = vector.load %arg4[%c0_5, %c0_6] : memref<256x896xbf16, #tpu.memory_space<vmem>>, vector<256x896xbf16>
    %cst_7 = arith.constant dense<0.000000e+00> : vector<512x896xf32>
    %26 = tpu.matmul %24, %25, %cst_7 {dimension_numbers = #tpu.dot_dimension_numbers<[1], [0], [0], [1], [0, 0, 1, 1], [], []>} : vector<512x256xbf16>, vector<256x896xbf16>, vector<512x896xf32> -> vector<512x896xf32>
    %c0_8 = arith.constant 0 : index
    %c0_9 = arith.constant 0 : index
    %27 = vector.load %arg5[%c0_8, %c0_9] : memref<1x896xf32, #tpu.memory_space<vmem>>, vector<1x896xf32>
    %28 = vector.broadcast %27 : vector<1x896xf32> to vector<512x896xf32>
    %29 = arith.addf %26, %28 : vector<512x896xf32>
    %c0_10 = arith.constant 0 : index
    %c0_11 = arith.constant 0 : index
    %30 = vector.load %arg6[%c0_10, %c0_11] : memref<512x896xf32, #tpu.memory_space<vmem>>, vector<512x896xf32>
    tpu.vector_store %arg6[%c0_10, %c0_11], %29 {strides = array<i32>} : memref<512x896xf32, #tpu.memory_space<vmem>>, vector<512x896xf32>,
    return
  }
  func.func @transform_0(%arg0: i32) -> (i32, i32) {
    %c0_i32 = arith.constant 0 : i32
    %c0_i32_0 = arith.constant 0 : i32
    return %arg0, %c0_i32 : i32, i32
  }
  func.func @transform_1(%arg0: i32) -> (i32, i32) {
    %c0_i32 = arith.constant 0 : i32
    %c0_i32_0 = arith.constant 0 : i32
    %c0_i32_1 = arith.constant 0 : i32
    return %c0_i32, %c0_i32_0 : i32, i32
  }
  func.func @transform_2(%arg0: i32) -> (i32, i32) {
    %c0_i32 = arith.constant 0 : i32
    %c0_i32_0 = arith.constant 0 : i32
    %c0_i32_1 = arith.constant 0 : i32
    return %c0_i32, %c0_i32_0 : i32, i32
  }
  func.func @transform_3(%arg0: i32) -> (i32, i32) {
    %c0_i32 = arith.constant 0 : i32
    %c0_i32_0 = arith.constant 0 : i32
    %c0_i32_1 = arith.constant 0 : i32
    return %c0_i32, %c0_i32_0 : i32, i32
  }
  func.func @transform_4(%arg0: i32) -> (i32, i32) {
    %c0_i32 = arith.constant 0 : i32
    %c0_i32_0 = arith.constant 0 : i32
    %c0_i32_1 = arith.constant 0 : i32
    return %c0_i32, %c0_i32_0 : i32, i32
  }
  func.func @transform_5(%arg0: i32) -> (i32, i32) {
    %c0_i32 = arith.constant 0 : i32
    %c0_i32_0 = arith.constant 0 : i32
    return %arg0, %c0_i32 : i32, i32
  }
}

</mosaic_0001>

<bundles_post_ra>
// kernel: tpu_custom_call.1
= control target key start
LH: loop header
LB: loop body
LE: loop exit
PB: predicated region body
PF: predicated region fallthrough
CT: control target
= control target key end

     0   :  { %10 = vsyncpa [#allocation3], 0  ;;  %s7337_s0 = inlined_call_operand.vmem [shape: f32[512,3], index: 0, kind: input, shape index: {}]   ;;  %s7338_s1 = inlined_call_operand.hbm [shape: f32[3,256], index: 1, kind: input, shape index: {}]   ;;  %s7339_s2 = inlined_call_operand.hbm [shape: f32[1,256], index: 2, kind: input, shape index: {}]   ;;  %s7340_s3 = inlined_call_operand.hbm [shape: bf16[256,896], index: 3, kind: input, shape index: {}]   ;;  %s7341_s4 = inlined_call_operand.hbm [shape: f32[1,896], index: 4, kind: input, shape index: {}]   ;;  %s7342_s5 = inlined_call_operand.hbm [shape: f32[512,896], index: 5, kind: output, shape index: {}]  }
   0x1   :  { %11 = vsyncpa [#allocation6], 0 }
   0x2   :  { %12 = vsyncpa [#allocation9], 0 }
   0x3   :  { %13 = vsyncpa [#allocation4], 0  ;;  %s5080_s18 = smov [#allocation5]   ;;  %s5081_s20 = smov [#allocation2]  }
   0x4   :  { %s32_s19 = sshll.u32 %s5080_s18, 4  ;;  %s22_s21 = sshll.u32 %s5081_s20, 4  ;;  %s33_s19 = int_to_ptr.vmem [resolvable:$true] %s32_s19  ;;  %s23_s21 = int_to_ptr.vmem [resolvable:$true] %s22_s21 }
   0x5   :  { %s4962_s24 = scalar_lea.hbm %s7339_s2, 32 }
   0x6   :  { %p4963_p0 = scmp.ne.s32.totalorder %s7339_s2, %s4962_s24  ;;  %p4966_p1 = scmp.lt.u32.totalorder %s4962_s24, %s7339_s2 }
   0x8   :  { %p4968_p2 = pnand %p4966_p1, %p4963_p0 }
   0xa   :  { %4971 = shalt.err (!%p4968_p2)
}
   0xb   :  { %s4972_s29 = scalar_lea.vmem %s33_s19, 32  ;;  %p4977_p4 = scmp.lt.s32.totalorder %s33_s19, %s33_s19 }
   0xc   :  { %p4973_p3 = scmp.ne.s32.totalorder %s33_s19, %s4972_s29  ;;  %p4978_p5 = scmp.lt.s32.totalorder %s4972_s29, %s4972_s29 }
   0xe   :  { %p4979_p6 = por %p4978_p5, %p4977_p4 }
  0x10   :  { %p4980_p7 = pnand %p4979_p6, %p4973_p3 }
  0x12   :  { %4983 = shalt.err (!%p4980_p7)
}
  0x13   :  { %35 = dma.hbm_to_vmem [thread:$0]  %s7339_s2, 32, %s33_s19, [#allocation6]  }
  0x14   :  { %s4984_s9 = scalar_lea.hbm %s7338_s1, 128 }
  0x15   :  { %p4985_p8 = scmp.ne.s32.totalorder %s7338_s1, %s4984_s9  ;;  %p4988_p9 = scmp.lt.u32.totalorder %s4984_s9, %s7338_s1 }
  0x17   :  { %p4990_p10 = pnand %p4988_p9, %p4985_p8 }
  0x19   :  { %4993 = shalt.err (!%p4990_p10)
}
  0x1a   :  { %s4994_s14 = scalar_lea.vmem %s23_s21, 128  ;;  %p4999_p12 = scmp.lt.s32.totalorder %s23_s21, %s23_s21 }
  0x1b   :  { %p4995_p11 = scmp.ne.s32.totalorder %s23_s21, %s4994_s14  ;;  %p5000_p13 = scmp.lt.s32.totalorder %s4994_s14, %s4994_s14 }
  0x1d   :  { %p5001_p0 = por %p5000_p13, %p4999_p12 }
  0x1f   :  { %p5002_p1 = pnand %p5001_p0, %p4995_p11 }
  0x21   :  { %5005 = shalt.err (!%p5002_p1)
}
  0x22   :  { %25 = dma.hbm_to_vmem [thread:$0]  %s7338_s1, 128, %s23_s21, [#allocation3]  }
  0x23   :  { %s5082_s16 = smov [#allocation7]   ;;  %s5006_s20 = scalar_lea.hbm %s7340_s3, 14336 }
  0x24   :  { %s41_s17 = sshll.u32 %s5082_s16, 4  ;;  %p5007_p2 = scmp.ne.s32.totalorder %s7340_s3, %s5006_s20  ;;  %s42_s17 = int_to_ptr.vmem [resolvable:$true] %s41_s17 }
  0x25   :  { %p5010_p3 = scmp.lt.u32.totalorder %s5006_s20, %s7340_s3 }
  0x27   :  { %p5012_p4 = pnand %p5010_p3, %p5007_p2 }
  0x29   :  { %5015 = shalt.err (!%p5012_p4)
}
  0x2a   :  { %s5016_s26 = scalar_lea.vmem %s42_s17, 14336  ;;  %p5021_p6 = scmp.lt.s32.totalorder %s42_s17, %s42_s17 }
  0x2b   :  { %p5017_p5 = scmp.ne.s32.totalorder %s42_s17, %s5016_s26  ;;  %p5022_p7 = scmp.lt.s32.totalorder %s5016_s26, %s5016_s26 }
  0x2d   :  { %p5023_p8 = por %p5022_p7, %p5021_p6 }
  0x2f   :  { %p5024_p9 = pnand %p5023_p8, %p5017_p5 }
  0x31   :  { %5027 = shalt.err (!%p5024_p9)
}
  0x32   :  { %s5083_s1 = smov 448   ;;  %s5084_s21 = smov 28  }
  0x33   :  { %47 = dma.hbm_to_vmem [thread:$0]  %s7340_s3, 14336, %s42_s17, [#allocation6], %s5083_s1, %s5083_s1, %s5084_s21  }
  0x34   :  { %s5085_s29 = smov [#allocation8]   ;;  %s5028_s8 = scalar_lea.hbm %s7341_s4, 112 }
  0x35   :  { %s54_s30 = sshll.u32 %s5085_s29, 4  ;;  %p5029_p10 = scmp.ne.s32.totalorder %s7341_s4, %s5028_s8  ;;  %s55_s30 = int_to_ptr.vmem [resolvable:$true] %s54_s30 }
  0x36   :  { %p5032_p11 = scmp.lt.u32.totalorder %s5028_s8, %s7341_s4 }
  0x38   :  { %p5034_p12 = pnand %p5032_p11, %p5029_p10 }
  0x3a   :  { %5037 = shalt.err (!%p5034_p12)
}
  0x3b   :  { %s5038_s13 = scalar_lea.vmem %s55_s30, 112  ;;  %s5042_s3 = scalar_lea.vmem %s55_s30, 128 }
  0x3c   :  { %p5039_p13 = scmp.ne.s32.totalorder %s55_s30, %s5038_s13  ;;  %p5043_p0 = scmp.lt.s32.totalorder %s55_s30, %s55_s30 }
  0x3d   :  { %p5044_p1 = scmp.lt.s32.totalorder %s5042_s3, %s5038_s13 }
  0x3f   :  { %p5045_p2 = por %p5044_p1, %p5043_p0 }
  0x41   :  { %p5046_p3 = pnand %p5045_p2, %p5039_p13 }
  0x43   :  { %5049 = shalt.err (!%p5046_p3)
}
  0x44   :  { %57 = dma.hbm_to_vmem [thread:$0]  %s7341_s4, 112, %s55_s30, [#allocation9]  }
  0x45   :  { %5072 = dma.done.wait [#allocation3], 128  }
  0x46   :  { %5073 = vsyncadd [#allocation3], 4294967168 }
  0x47   :  { %5074 = dma.done.wait [#allocation6], 14368  }
  0x48   :  { %5075 = vsyncadd [#allocation6], 4294952928 }
  0x49   :  { %5076 = dma.done.wait [#allocation9], 112  }
  0x4a   :  { %5077 = vsyncadd [#allocation9], 4294967184  ;;  %v7346_v0 = vmov 2   ;;  %v7354_v1 = vmov 1   ;;  %v5175_v2 = vld [vmem:[%s7337_s0] sm:$0xff]  ;;  %v73_v3 = vld [vmem:[%s7337_s0 + $0x10] sm:$0xff] }
  0x4b   :  { %4676 = vset.pattern.permute.xlu0 %v7346_v0  ;;  %4675 = vset.pattern.permute.xlu1 %v7354_v1  ;;  %v5185_v4 = vld [vmem:[%s7337_s0 + $0x8] sm:$0xff]  ;;  %v5190_v5 = vld [vmem:[%s7337_s0 + $0x20] sm:$0xff]  ;;  %v4781_v7 = vld [vmem:[#allocation7 + $0xc] ss:$28 sps:$4 sm:$0xff]   ;;  %v7348_v18 = vmov 0  }
  0x4c   :  { %1274 = vperm.xlu0 %4676, %v5175_v2   ;;  %744 = vperm.xlu1 %4675, %v5175_v2   ;;  %v4779_v6 = vld [vmem:[#allocation7 + $0x4] ss:$28 sps:$4 sm:$0xff]   ;;  %v4785_v10 = vld [vmem:[#allocation7 + $0x3c] ss:$28 sps:$4 sm:$0xff]   ;;  %v4791_v15 = vld [vmem:[#allocation7 + $0x74] ss:$28 sps:$4 sm:$0xff]  }
  0x4d   :  { %2736 = vmatprep.subr.bf16.mxu0 %v4779_v6  ;;  %v4783_v8 = vld [vmem:[#allocation7] ss:$28 sps:$4 sm:$0xff]   ;;  %v4784_v9 = vld [vmem:[#allocation7 + $0x8] ss:$28 sps:$4 sm:$0xff]   ;;  %3089 = vmatprep.subr.bf16.mxu1 %v4781_v7  ;;  %v4789_v13 = vld [vmem:[#allocation7 + $0x38] ss:$28 sps:$4 sm:$0xff]  }
  0x4e   :  { %v4787_v11 = vld [vmem:[#allocation7 + $0x44] ss:$28 sps:$4 sm:$0xff]   ;;  %2737 = vmatpush1.bf16.msra.mxu0 %v4783_v8  ;;  %3090 = vmatpush1.bf16.msra.mxu1 %v4784_v9  ;;  %v4793_v16 = vld [vmem:[#allocation7 + $0x7c] ss:$28 sps:$4 sm:$0xff]   ;;  %v4795_v19 = vld [vmem:[#allocation7 + $0x70] ss:$28 sps:$4 sm:$0xff]  }
  0x4f   :  { %v5199_v12 = vld [vmem:[%s7337_s0 + $0x30] sm:$0xff]  ;;  %v4790_v14 = vld [vmem:[#allocation7 + $0x40] ss:$28 sps:$4 sm:$0xff]   ;;  %2738 = vmatprep.subr.bf16.mxu0 %v4785_v10  ;;  %3091 = vmatprep.subr.bf16.mxu1 %v4787_v11  ;;  %v4796_v20 = vld [vmem:[#allocation7 + $0x78] ss:$28 sps:$4 sm:$0xff]  }
  0x50   :  { %1282 = vperm.xlu0 %4676, %v73_v3   ;;  %748 = vperm.xlu1 %4675, %v5185_v4   ;;  %v5205_v17 = vld [vmem:[%s7337_s0 + $0x40] sm:$0xff]  ;;  %v5211_v21 = vld [vmem:[%s7337_s0 + $0x50] sm:$0xff]  ;;  %v74_v28 = vld [vmem:[%s7337_s0 + $0x18] sm:$0xff] }
  0x51   :  { %v4797_v22 = vld [vmem:[#allocation7 + $0xac] ss:$28 sps:$4 sm:$0xff]   ;;  %v4799_v23 = vld [vmem:[#allocation7 + $0xb4] ss:$28 sps:$4 sm:$0xff]   ;;  %v4803_v26 = vld [vmem:[#allocation7 + $0xe4] ss:$28 sps:$4 sm:$0xff]  }
  0x52   :  { %2739 = vmatpush1.bf16.msra.mxu0 %v4789_v13  ;;  %3092 = vmatpush1.bf16.msra.mxu1 %v4790_v14  ;;  %v4801_v24 = vld [vmem:[#allocation7 + $0xa8] ss:$28 sps:$4 sm:$0xff]   ;;  %v4802_v25 = vld [vmem:[#allocation7 + $0xb0] ss:$28 sps:$4 sm:$0xff]   ;;  %v5222_v29 = vld [vmem:[%s7337_s0 + $0x60] sm:$0xff] }
  0x53   :  { %2740 = vmatprep.subr.bf16.mxu0 %v4791_v15  ;;  %3093 = vmatprep.subr.bf16.mxu1 %v4793_v16  ;;  %v4805_v27 = vld [vmem:[#allocation7 + $0xec] ss:$28 sps:$4 sm:$0xff]   ;;  %v4807_v30 = vld [vmem:[#allocation7 + $0xe0] ss:$28 sps:$4 sm:$0xff]   ;;  %v4813_v34 = vld [vmem:[#allocation7 + $0x118] ss:$28 sps:$4 sm:$0xff]  }
  0x54   :  { %1290 = vperm.xlu0 %4676, %v5190_v5   ;;  %4677 = vset.pattern.permute.xlu1 %v7346_v0  ;;  %v4808_v31 = vld [vmem:[#allocation7 + $0xe8] ss:$28 sps:$4 sm:$0xff]   ;;  %v4809_v32 = vld [vmem:[#allocation7 + $0x11c] ss:$28 sps:$4 sm:$0xff]   ;;  %v4815_v36 = vld [vmem:[#allocation7 + $0x154] ss:$28 sps:$4 sm:$0xff]  }
  0x55   :  { %1278 = vperm.xlu1 %4677, %v5185_v4   ;;  %v4811_v33 = vld [vmem:[#allocation7 + $0x124] ss:$28 sps:$4 sm:$0xff]   ;;  %v4817_v37 = vld [vmem:[#allocation7 + $0x15c] ss:$28 sps:$4 sm:$0xff]   ;;  %v4819_v38 = vld [vmem:[#allocation7 + $0x150] ss:$28 sps:$4 sm:$0xff]  }
  0x56   :  { %2741 = vmatpush1.bf16.msra.mxu0 %v4795_v19  ;;  %3094 = vmatpush1.bf16.msra.mxu1 %v4796_v20  ;;  %v4814_v35 = vld [vmem:[#allocation7 + $0x120] ss:$28 sps:$4 sm:$0xff]   ;;  %v4820_v39 = vld [vmem:[#allocation7 + $0x158] ss:$28 sps:$4 sm:$0xff]   ;;  %v4821_v40 = vld [vmem:[#allocation7 + $0x18c] ss:$28 sps:$4 sm:$0xff]  }
  0x57   :  { %2742 = vmatprep.subr.bf16.mxu0 %v4797_v22  ;;  %3095 = vmatprep.subr.bf16.mxu1 %v4799_v23  ;;  %v4823_v41 = vld [vmem:[#allocation7 + $0x194] ss:$28 sps:$4 sm:$0xff]   ;;  %v4825_v42 = vld [vmem:[#allocation7 + $0x188] ss:$28 sps:$4 sm:$0xff]   ;;  %v4831_v47 = vld [vmem:[#allocation7 + $0x1c0] ss:$28 sps:$4 sm:$0xff]  }
  0x58   :  { %1298 = vperm.xlu0 %4676, %v5199_v12   ;;  %v4826_v43 = vld [vmem:[#allocation7 + $0x190] ss:$28 sps:$4 sm:$0xff]   ;;  %v4827_v44 = vld [vmem:[#allocation7 + $0x1c4] ss:$28 sps:$4 sm:$0xff]   ;;  %v4833_v49 = vld [vmem:[#allocation7 + $0x1fc] ss:$28 sps:$4 sm:$0xff]  }
  0x59   :  { %4678 = vset.pattern.permute.xlu1 %v7348_v18  ;;  %v4829_v45 = vld [vmem:[#allocation7 + $0x1cc] ss:$28 sps:$4 sm:$0xff]   ;;  %v76_v46 = vld [vmem:[%s7337_s0 + $0x28] sm:$0xff]  ;;  %v4837_v52 = vld [vmem:[#allocation7 + $0x1f8] ss:$28 sps:$4 sm:$0xff]  }
  0x5a   :  { %149 = vperm.xlu1 %4678, %v73_v3   ;;  %2743 = vmatpush1.bf16.msra.mxu0 %v4801_v24  ;;  %v4832_v48 = vld [vmem:[#allocation7 + $0x1c8] ss:$28 sps:$4 sm:$0xff]   ;;  %v5239_v51 = vld [vmem:[%s7337_s0 + $0x38] sm:$0xff]  ;;  %v4838_v53 = vld [vmem:[#allocation7 + $0x200] ss:$28 sps:$4 sm:$0xff]  }
  0x5b   :  { %3096 = vmatpush1.bf16.msra.mxu1 %v4802_v25  ;;  %2744 = vmatprep.subr.bf16.mxu0 %v4803_v26  ;;  %v4835_v50 = vld [vmem:[#allocation7 + $0x204] ss:$28 sps:$4 sm:$0xff]   ;;  %v4839_v54 = vld [vmem:[#allocation7 + $0x234] ss:$28 sps:$4 sm:$0xff]   ;;  %v4841_v55 = vld [vmem:[#allocation7 + $0x23c] ss:$28 sps:$4 sm:$0xff]  }
  0x5c   :  { %1306 = vperm.xlu0 %4676, %v5205_v17   ;;  %3097 = vmatprep.subr.bf16.mxu1 %v4805_v27  ;;  %v5245_v56 = vld [vmem:[%s7337_s0 + $0x48] sm:$0xff]  ;;  %v4843_v57 = vld [vmem:[#allocation7 + $0x230] ss:$28 sps:$4 sm:$0xff]   ;;  %v4844_v58 = vld [vmem:[#allocation7 + $0x238] ss:$28 sps:$4 sm:$0xff]  }
  0x5d   :  { %v4845_v59 = vld [vmem:[#allocation7 + $0x26c] ss:$28 sps:$4 sm:$0xff]   ;;  %v4847_v60 = vld [vmem:[#allocation7 + $0x274] ss:$28 sps:$4 sm:$0xff]   ;;  %v4857_v7 = vld [vmem:[#allocation7 + $0x2dc] ss:$28 sps:$4 sm:$0xff]  }
  0x5e   :  { %4679 = vset.pattern.permute.xlu1 %v7354_v1  ;;  %2745 = vmatpush1.bf16.msra.mxu0 %v4807_v30  ;;  %v5251_v61 = vld [vmem:[%s7337_s0 + $0x58] sm:$0xff]  ;;  %v4849_v62 = vld [vmem:[#allocation7 + $0x268] ss:$28 sps:$4 sm:$0xff]   ;;  %v4862_v11 = vld [vmem:[#allocation7 + $0x2e0] ss:$28 sps:$4 sm:$0xff]  }
  0x5f   :  { %752 = vperm.xlu1 %4679, %v73_v3   ;;  %3098 = vmatpush1.bf16.msra.mxu1 %v4808_v31  ;;  %v4850_v63 = vld [vmem:[#allocation7 + $0x270] ss:$28 sps:$4 sm:$0xff]   ;;  %v4856_v6 = vld [vmem:[#allocation7 + $0x2a8] ss:$28 sps:$4 sm:$0xff]   ;;  %v4861_v10 = vld [vmem:[#allocation7 + $0x2d8] ss:$28 sps:$4 sm:$0xff]  }
  0x60   :  { %1314 = vperm.xlu0 %4676, %v5211_v21   ;;  %2746 = vmatprep.subr.bf16.mxu0 %v4809_v32  ;;  %v4853_v3 = vld [vmem:[#allocation7 + $0x2ac] ss:$28 sps:$4 sm:$0xff]   ;;  %v4859_v8 = vld [vmem:[#allocation7 + $0x2e4] ss:$28 sps:$4 sm:$0xff]   ;;  %v4863_v13 = vld [vmem:[#allocation7 + $0x314] ss:$28 sps:$4 sm:$0xff]  }
  0x61   :  { %3099 = vmatprep.subr.bf16.mxu1 %v4811_v33  ;;  %v5266_v9 = vld [vmem:[%s7337_s0 + $0x78] sm:$0xff]  ;;  %v4865_v14 = vld [vmem:[#allocation7 + $0x31c] ss:$28 sps:$4 sm:$0xff]   ;;  %v4873_v23 = vld [vmem:[#allocation7 + $0x348] ss:$28 sps:$4 sm:$0xff]  }
  0x62   :  { %2747 = vmatpush1.bf16.msra.mxu0 %v4813_v34  ;;  %v5273_v15 = vld [vmem:[%s7337_s0 + $0x88] sm:$0xff]  ;;  %v4867_v16 = vld [vmem:[#allocation7 + $0x310] ss:$28 sps:$4 sm:$0xff]   ;;  %v5327_v30 = vld [vmem:[%s7337_s0 + $0x80] sm:$0xff] }
  0x63   :  { %756 = vperm.xlu1 %4679, %v74_v28   ;;  %3100 = vmatpush1.bf16.msra.mxu1 %v4814_v35  ;;  %v4869_v19 = vld [vmem:[#allocation7 + $0x34c] ss:$28 sps:$4 sm:$0xff]   ;;  %v4871_v20 = vld [vmem:[#allocation7 + $0x354] ss:$28 sps:$4 sm:$0xff]   ;;  %v5288_v25 = vld [vmem:[%s7337_s0 + $0xa8] sm:$0xff] }
  0x64   :  { %1322 = vperm.xlu0 %4676, %v5222_v29   ;;  %2748 = vmatprep.subr.bf16.mxu0 %v4815_v36  ;;  %v5280_v22 = vld [vmem:[%s7337_s0 + $0x98] sm:$0xff]  ;;  %v5306_v27 = vld [vmem:[%s7337_s0 + $0xc8] sm:$0xff]  ;;  %v5335_v31 = vld [vmem:[%s7337_s0 + $0x90] sm:$0xff] }
  0x65   :  { %3101 = vmatprep.subr.bf16.mxu1 %v4817_v37  ;;  %v4874_v24 = vld [vmem:[#allocation7 + $0x350] ss:$28 sps:$4 sm:$0xff]   ;;  %v5342_v32 = vld [vmem:[%s7337_s0 + $0xa0] sm:$0xff] }
  0x66   :  { %2749 = vmatpush1.bf16.msra.mxu0 %v4819_v38  ;;  %v5298_v26 = vld [vmem:[%s7337_s0 + $0xb8] sm:$0xff]  ;;  %v5358_v33 = vld [vmem:[%s7337_s0 + $0xc0] sm:$0xff]  ;;  %v5366_v34 = vld [vmem:[%s7337_s0 + $0xd0] sm:$0xff] }
  0x67   :  { %4680 = vset.pattern.permute.xlu1 %v7346_v0  ;;  %3102 = vmatpush1.bf16.msra.mxu1 %v4820_v39  ;;  %v5373_v35 = vld [vmem:[%s7337_s0 + $0xe0] sm:$0xff] }
  0x68   :  { %4695 = vset.pattern.permute.xlu0 %v7348_v18  ;;  %1286 = vperm.xlu1 %4680, %v74_v28   ;;  %v5392_v38 = vld [vmem:[%s7337_s0 + $0x100] sm:$0xff] }
  0x69   :  { %139 = vperm.xlu0 %4695, %v5175_v2   ;;  %2750 = vmatprep.subr.bf16.mxu0 %v4821_v40  ;;  %v4851_v2 = vld [vmem:[#allocation7 + $0x2a4] ss:$28 sps:$4 sm:$0xff]  }
  0x6a   :  { %3103 = vmatprep.subr.bf16.mxu1 %v4823_v41  ;;  %2751 = vmatpush1.bf16.msra.mxu0 %v4825_v42  ;;  %v105_v41 = vld [vmem:[%s7337_s0 + $0x110] sm:$0xff] }
  0x6b   :  { %3104 = vmatpush1.bf16.msra.mxu1 %v4826_v43  ;;  %2752 = vmatprep.subr.bf16.mxu0 %v4827_v44  ;;  %v107_v44 = vld [vmem:[%s7337_s0 + $0x120] sm:$0xff] }
  0x6c   :  { %4681 = vset.pattern.permute.xlu1 %v7348_v18  ;;  %3105 = vmatprep.subr.bf16.mxu1 %v4829_v45  ;;  %v458_v45 = vlaneseq }
  0x6d   :  { %144 = vperm.xlu0 %4695, %v5185_v4   ;;  %159 = vperm.xlu1 %4681, %v5190_v5   ;;  %v5259_v4 = vld [vmem:[%s7337_s0 + $0x68] sm:$0xff] }
  0x6e   :  { %2753 = vmatpush1.bf16.msra.mxu0 %v4831_v47  ;;  %v5416_v47 = vld [vmem:[%s7337_s0 + $0xe8] sm:$0xff] }
  0x6f   :  { %3106 = vmatpush1.bf16.msra.mxu1 %v4832_v48  ;;  %2754 = vmatprep.subr.bf16.mxu0 %v4833_v49  ;;  %v5421_v49 = vshrl.u32 %v458_v45, 7 }
  0x70   :  { %3107 = vmatprep.subr.bf16.mxu1 %v4835_v50 }
  0x71   :  { %154 = vperm.xlu0 %4695, %v74_v28   ;;  %4682 = vset.pattern.permute.xlu1 %v7354_v1  ;;  %v5313_v28 = vld [vmem:[%s7337_s0 + $0xd8] sm:$0xff]  ;;  %7424 = vst [vmem:[#allocation15_spill] sm:$0xff] %v5421_v49 }
  0x72   :  { %760 = vperm.xlu1 %4682, %v5190_v5   ;;  %2755 = vmatpush1.bf16.msra.mxu0 %v4837_v52  ;;  %v4855_v5 = vld [vmem:[#allocation7 + $0x2a0] ss:$28 sps:$4 sm:$0xff]  }
  0x73   :  { %3108 = vmatpush1.bf16.msra.mxu1 %v4838_v53  ;;  %2756 = vmatprep.subr.bf16.mxu0 %v4839_v54  ;;  %v5431_v53 = vsub.s32 1, %v5421_v49  ;;  %v5434_v54 = vsub.s32 0, %v5421_v49 }
  0x74   :  { %3109 = vmatprep.subr.bf16.mxu1 %v4841_v55 }
  0x75   :  { %164 = vperm.xlu0 %4695, %v76_v46   ;;  %7425 = vst [vmem:[#allocation16_spill] sm:$0xff] %v5431_v53 }
  0x76   :  { %764 = vperm.xlu1 %4682, %v76_v46   ;;  %2757 = vmatpush1.bf16.msra.mxu0 %v4843_v57  ;;  %v7343_v57 = vsub.s32 5, %v5421_v49 }
  0x77   :  { %3110 = vmatpush1.bf16.msra.mxu1 %v4844_v58  ;;  %2758 = vmatprep.subr.bf16.mxu0 %v4845_v59  ;;  %v5443_v59 = vsub.s32 2, %v5421_v49 }
  0x78   :  { %3111 = vmatprep.subr.bf16.mxu1 %v4847_v60 }
  0x79   :  { %174 = vperm.xlu0 %4695, %v5239_v51   ;;  %7426 = vst [vmem:[#allocation17_spill] sm:$0xff] %v5443_v59 }
  0x7a   :  { %4683 = vset.pattern.permute.xlu1 %v7346_v0  ;;  %2759 = vmatpush1.bf16.msra.mxu0 %v4849_v62  ;;  %v7344_v62 = vsub.s32 6, %v5421_v49 }
  0x7b   :  { %1294 = vperm.xlu1 %4683, %v76_v46   ;;  %3112 = vmatpush1.bf16.msra.mxu1 %v4850_v63 }
  0x7c   :  { %2760 = vmatprep.subr.bf16.mxu0 %v4851_v2  ;;  %3113 = vmatprep.subr.bf16.mxu1 %v4853_v3 }
  0x7d   :  { %184 = vperm.xlu0 %4695, %v5245_v56  }
  0x7e   :  { %2761 = vmatpush1.bf16.msra.mxu0 %v4855_v5 }
  0x7f   :  { %4684 = vset.pattern.permute.xlu1 %v7348_v18  ;;  %3114 = vmatpush1.bf16.msra.mxu1 %v4856_v6  ;;  %v136_v6 = vld [vmem:[#allocation5] sm:$0x3] }
  0x80   :  { %169 = vperm.xlu1 %4684, %v5199_v12   ;;  %2762 = vmatprep.subr.bf16.mxu0 %v4857_v7 }
  0x81   :  { %194 = vperm.xlu0 %4695, %v5251_v61   ;;  %3115 = vmatprep.subr.bf16.mxu1 %v4859_v8 }
  0x82   :  { %2763 = vmatpush1.bf16.msra.mxu0 %v4861_v10 }
  0x83   :  { %3116 = vmatpush1.bf16.msra.mxu1 %v4862_v11  ;;  %2764 = vmatprep.subr.bf16.mxu0 %v4863_v13 }
  0x84   :  { %4685 = vset.pattern.permute.xlu1 %v7354_v1  ;;  %3117 = vmatprep.subr.bf16.mxu1 %v4865_v14  ;;  %v5475_v14 = vrot.slane %v136_v6, %v5431_v53 }
  0x85   :  { %768 = vperm.xlu1 %4685, %v5199_v12   ;;  %204 = vperm.xlu0 %4695, %v5259_v4   ;;  %v4868_v12 = vld [vmem:[#allocation7 + $0x318] ss:$28 sps:$4 sm:$0xff]  }
  0x86   :  { %2765 = vmatpush1.bf16.msra.mxu0 %v4867_v16 }
  0x87   :  { %3118 = vmatpush1.bf16.msra.mxu1 %v4868_v12  ;;  %2766 = vmatprep.subr.bf16.mxu0 %v4869_v19 }
  0x88   :  { %3119 = vmatprep.subr.bf16.mxu1 %v4871_v20 }
  0x89   :  { %772 = vperm.xlu1 %4685, %v5239_v51   ;;  %214 = vperm.xlu0 %4695, %v5266_v9  }
  0x8a   :  { %2767 = vmatpush1.bf16.msra.mxu0 %v4873_v23  ;;  %v5484_v23 = vrot.slane %v136_v6, %v5434_v54 }
  0x8b   :  { %3120 = vmatpush1.bf16.msra.mxu1 %v4874_v24 }
  0x8c   :  { %3795 = vmatprep.subr.bf16.mxu1 %v7348_v18 }
  0x8d   :  { %4686 = vset.pattern.permute.xlu1 %v7346_v0  ;;  %224 = vperm.xlu0 %4695, %v5273_v15  }
  0x8e   :  { %1302 = vperm.xlu1 %4686, %v5239_v51   ;;  %v7345_v51 = vsub.s32 4, %v5421_v49 }
  0x91   :  { %234 = vperm.xlu0 %4695, %v5280_v22  }
  0x92   :  { %4687 = vset.pattern.permute.xlu1 %v7348_v18 }
  0x93   :  { %179 = vperm.xlu1 %4687, %v5205_v17  }
  0x95   :  { %244 = vperm.xlu0 %4695, %v5288_v25  }
  0x97   :  { %4688 = vset.pattern.permute.xlu1 %v7354_v1 }
  0x98   :  { %776 = vperm.xlu1 %4688, %v5205_v17   ;;  %v85_v17 = vld [vmem:[%s7337_s0 + $0x70] sm:$0xff] }
  0x99   :  { %254 = vperm.xlu0 %4695, %v5298_v26  }
  0x9c   :  { %780 = vperm.xlu1 %4688, %v5245_v56  }
  0x9d   :  { %264 = vperm.xlu0 %4695, %v5306_v27  }
  0xa0   :  { %4689 = vset.pattern.permute.xlu1 %v7346_v0 }
  0xa1   :  { %1310 = vperm.xlu1 %4689, %v5245_v56   ;;  %274 = vperm.xlu0 %4695, %v5313_v28   ;;  %v135_v56 = vld [vmem:[#allocation2] sm:$0x77] }
  0xa2   :  { %v465_v58 = vrot.slane %v135_v56, %v7345_v51  ;;  %v461_v63 = vrot.slane %v135_v56, %v5434_v54  ;;  %v1006_v3 = vrot.slane %v135_v56, %v7343_v57  ;;  %v1532_v5 = vrot.slane %v135_v56, %v5443_v59 }
  0xa3   :  { %v1536_v8 = vrot.slane %v135_v56, %v7344_v62 }
  0xa4   :  { %v5471_v11 = vrot.slane %v1006_v3, %v5431_v53  ;;  %v5481_v20 = vrot.slane %v1532_v5, %v5443_v59 }
  0xa5   :  { %4690 = vset.pattern.permute.xlu1 %v7348_v18  ;;  %4716 = vset.pattern.permute.xlu0 %v7346_v0 }
  0xa6   :  { %189 = vperm.xlu1 %4690, %v5211_v21   ;;  %1330 = vperm.xlu0 %4716, %v85_v17  }
  0xaa   :  { %4691 = vset.pattern.permute.xlu1 %v7354_v1  ;;  %1338 = vperm.xlu0 %4716, %v5327_v30  }
  0xab   :  { %784 = vperm.xlu1 %4691, %v5211_v21   ;;  %v5350_v21 = vld [vmem:[%s7337_s0 + $0xb0] sm:$0xff] }
  0xae   :  { %1346 = vperm.xlu0 %4716, %v5335_v31  }
  0xaf   :  { %788 = vperm.xlu1 %4691, %v5251_v61  }
  0xb2   :  { %1354 = vperm.xlu0 %4716, %v5342_v32  }
  0xb3   :  { %4692 = vset.pattern.permute.xlu1 %v7346_v0 }
  0xb4   :  { %1318 = vperm.xlu1 %4692, %v5251_v61   ;;  %v1002_v61 = vrot.slane %v135_v56, %v5431_v53 }
  0xb6   :  { %1362 = vperm.xlu0 %4716, %v5350_v21   ;;  %v5461_v7 = vrot.slane %v1002_v61, %v5431_v53 }
  0xb8   :  { %4693 = vset.pattern.permute.xlu1 %v7348_v18 }
  0xb9   :  { %199 = vperm.xlu1 %4693, %v5222_v29  }
  0xba   :  { %1370 = vperm.xlu0 %4716, %v5358_v33  }
  0xbd   :  { %4694 = vset.pattern.permute.xlu1 %v7354_v1 }
  0xbe   :  { %792 = vperm.xlu1 %4694, %v5222_v29   ;;  %1378 = vperm.xlu0 %4716, %v5366_v34   ;;  %v5381_v29 = vld [vmem:[%s7337_s0 + $0xf0] sm:$0xff] }
  0xc2   :  { %796 = vperm.xlu1 %4694, %v5259_v4   ;;  %1386 = vperm.xlu0 %4716, %v5373_v35  }
  0xc6   :  { %4696 = vset.pattern.permute.xlu1 %v7346_v0  ;;  %1394 = vperm.xlu0 %4716, %v5381_v29  }
  0xc7   :  { %1326 = vperm.xlu1 %4696, %v5259_v4   ;;  %v5457_v4 = vrot.slane %v465_v58, %v5434_v54 }
  0xca   :  { %1402 = vperm.xlu0 %4716, %v5392_v38  }
  0xcb   :  { %4697 = vset.pattern.permute.xlu1 %v7348_v18  ;;  %v5385_v36 = vpop.permute.xlu1 %744  ;;  %v5387_v37 = vpop.permute.xlu0 %1274 }
  0xcc   :  { %209 = vperm.xlu1 %4697, %v85_v17   ;;  %v1017_v24 = vmul.f32 %v5461_v7, %v5385_v36  ;;  %v1018_v45 = vmul.f32 %v5471_v11, %v5385_v36  ;;  %v1547_v56 = vmul.f32 %v5481_v20, %v5387_v37 }
  0xce   :  { %1410 = vperm.xlu0 %4716, %v105_v41  }
  0xcf   :  { %v5395_v39 = vpop.permute.xlu1 %748  ;;  %v5397_v40 = vpop.permute.xlu0 %1282 }
  0xd0   :  { %4698 = vset.pattern.permute.xlu1 %v7354_v1 }
  0xd1   :  { %800 = vperm.xlu1 %4698, %v85_v17   ;;  %v5489_v17 = vrot.slane %v1536_v8, %v5443_v59  ;;  %v1019_v8 = vmul.f32 %v5461_v7, %v5395_v39 }
  0xd2   :  { %1418 = vperm.xlu0 %4716, %v107_v44   ;;  %v5497_v44 = vld [vmem:[%s7337_s0 + $0xf8] sm:$0xff] }
  0xd3   :  { %v5403_v42 = vpop.permute.xlu0 %1290  ;;  %v1548_v3 = vmul.f32 %v5489_v17, %v5387_v37  ;;  %v1552_v37 = vmul.f32 %v5489_v17, %v5397_v40 }
  0xd4   :  { %v5405_v43 = vpop.permute.xlu1 %1278 }
  0xd5   :  { %804 = vperm.xlu1 %4698, %v5266_v9  }
  0xd6   :  { %4733 = vset.pattern.permute.xlu0 %v7348_v18 }
  0xd7   :  { %v5411_v46 = vpop.permute.xlu0 %1298  ;;  %284 = vperm.xlu0 %4733, %v5416_v47  }
  0xd9   :  { %4699 = vset.pattern.permute.xlu1 %v7346_v0  ;;  %v150_v48 = vpop.permute.xlu1 %149 }
  0xda   :  { %1334 = vperm.xlu1 %4699, %v5266_v9   ;;  %v5466_v9 = vrot.slane %v461_v63, %v5434_v54  ;;  %v481_v16 = vmul.f32 %v5457_v4, %v150_v48 }
  0xdb   :  { %v5423_v50 = vpop.permute.xlu0 %1306  ;;  %294 = vperm.xlu0 %4733, %v5497_v44  }
  0xdc   :  { %v620_v5 = vadd.f32 %v5475_v14, %v481_v16 }
  0xde   :  { %4700 = vset.pattern.permute.xlu1 %v7348_v18  ;;  %v5428_v52 = vpop.permute.xlu1 %752 }
  0xdf   :  { %219 = vperm.xlu1 %4700, %v5327_v30   ;;  %v5437_v55 = vpop.permute.xlu0 %1314 }
  0xe2   :  { %v5445_v60 = vpop.permute.xlu1 %756 }
  0xe3   :  { %4701 = vset.pattern.permute.xlu1 %v7354_v1  ;;  %v5451_v2 = vpop.permute.xlu0 %1322 }
  0xe4   :  { %808 = vperm.xlu1 %4701, %v5327_v30   ;;  %v1022_v30 = vmul.f32 %v5471_v11, %v5428_v52 }
  0xe6   :  { %v1150_v57 = vadd.f32 %v1022_v30, %v620_v5 }
  0xe7   :  { %v5468_v10 = vpop.permute.xlu1 %1286 }
  0xe8   :  { %v140_v13 = vpop.permute.xlu0 %139  ;;  %812 = vperm.xlu1 %4701, %v5273_v15  }
  0xe9   :  { %v476_v12 = vmul.f32 %v5466_v9, %v140_v13  ;;  %v477_v19 = vmul.f32 %v5457_v4, %v140_v13  ;;  %v1020_v13 = vmul.f32 %v5471_v11, %v5395_v39  ;;  %v1550_v39 = vmul.f32 %v5489_v17, %v5405_v43 }
  0xeb   :  { %v616_v41 = vadd.f32 %v5475_v14, %v477_v19  ;;  %v615_v58 = vadd.f32 %v5484_v23, %v476_v12  ;;  %v480_v12 = vmul.f32 %v5466_v9, %v150_v48 }
  0xec   :  { %v145_v61 = vpop.permute.xlu0 %144  ;;  %4702 = vset.pattern.permute.xlu1 %v7346_v0  ;;  %v5505_v63 = vpop.permute.xlu1 %159 }
  0xed   :  { %v478_v6 = vmul.f32 %v5466_v9, %v145_v61  ;;  %v479_v36 = vmul.f32 %v5457_v4, %v145_v61  ;;  %1342 = vperm.xlu1 %4702, %v5273_v15   ;;  %v1146_v19 = vadd.f32 %v1018_v45, %v616_v41  ;;  %v1551_v15 = vmul.f32 %v5481_v20, %v5397_v40 }
  0xee   :  { %v1549_v61 = vmul.f32 %v5481_v20, %v5405_v43  ;;  %v1145_v51 = vadd.f32 %v1017_v24, %v615_v58  ;;  %v1021_v40 = vmul.f32 %v5461_v7, %v5428_v52  ;;  %v485_v43 = vmul.f32 %v5457_v4, %v5505_v63 }
  0xef   :  { %v617_v16 = vadd.f32 %v5484_v23, %v478_v6  ;;  %v618_v62 = vadd.f32 %v5475_v14, %v479_v36  ;;  %v619_v6 = vadd.f32 %v5484_v23, %v480_v12  ;;  %v1676_v36 = vadd.f32 %v1548_v3, %v1146_v19 }
  0xf0   :  { %v155_v48 = vpop.permute.xlu0 %154  ;;  %v1680_v24 = vadd.f32 %v1552_v37, %v1150_v57  ;;  %v1023_v3 = vmul.f32 %v5461_v7, %v5445_v60  ;;  %v1554_v19 = vmul.f32 %v5489_v17, %v5468_v10 }
  0xf1   :  { %v1147_v41 = vadd.f32 %v1019_v8, %v617_v16  ;;  %v1148_v45 = vadd.f32 %v1020_v13, %v618_v62  ;;  %v482_v0 = vmul.f32 %v5466_v9, %v155_v48  ;;  %v483_v30 = vmul.f32 %v5457_v4, %v155_v48  ;;  %4703 = vset.pattern.permute.xlu1 %v7348_v18  ;;  %v761_v5 = vpop.permute.xlu1 %760 }
  0xf2   :  { %229 = vperm.xlu1 %4703, %v5335_v31   ;;  %v1024_v62 = vmul.f32 %v5471_v11, %v5445_v60  ;;  %v1675_v13 = vadd.f32 %v1547_v56, %v1145_v51  ;;  %v1026_v48 = vmul.f32 %v5471_v11, %v761_v5  ;;  %v624_v51 = vadd.f32 %v5475_v14, %v485_v43 }
  0xf3   :  { %v621_v58 = vadd.f32 %v5484_v23, %v482_v0  ;;  %v622_v8 = vadd.f32 %v5475_v14, %v483_v30  ;;  %v1677_v16 = vadd.f32 %v1549_v61, %v1147_v41  ;;  %v1678_v12 = vadd.f32 %v1550_v39, %v1148_v45 }
  0xf4   :  { %v165_v52 = vpop.permute.xlu0 %164  ;;  %v1556_v0 = vmul.f32 %v5489_v17, %v5403_v42  ;;  %v1149_v30 = vadd.f32 %v1021_v40, %v619_v6  ;;  %v1804_v56 = vmax.f32 %v1676_v36, 0.0  ;;  %v1154_v45 = vadd.f32 %v1026_v48, %v624_v51 }
  0xf5   :  { %v1152_v57 = vadd.f32 %v1024_v62, %v622_v8  ;;  %v487_v37 = vmul.f32 %v5457_v4, %v165_v52  ;;  %v765_v18 = vpop.permute.xlu1 %764  ;;  %v1151_v61 = vadd.f32 %v1023_v3, %v621_v58  ;;  %v1806_v62 = vmax.f32 %v1678_v12, 0.0 }
  0xf6   :  { %4704 = vset.pattern.permute.xlu1 %v7354_v1  ;;  %v1028_v41 = vmul.f32 %v5471_v11, %v765_v18  ;;  %v1803_v8 = vmax.f32 %v1675_v13, 0.0  ;;  %v1805_v53 = vmax.f32 %v1677_v16, 0.0  ;;  %v1808_v59 = vmax.f32 %v1680_v24, 0.0 }
  0xf7   :  { %v1682_v39 = vadd.f32 %v1554_v19, %v1152_v57  ;;  %v626_v60 = vadd.f32 %v5475_v14, %v487_v37  ;;  %816 = vperm.xlu1 %4704, %v5335_v31   ;;  %v1553_v6 = vmul.f32 %v5481_v20, %v5468_v10  ;;  %v486_v40 = vmul.f32 %v5466_v9, %v165_v52 }
  0xf8   :  { %v484_v36 = vmul.f32 %v5466_v9, %v5505_v63  ;;  %v5560_v58 = vpack.c.bf16 %v1806_v62, %v1804_v56  ;;  %v5562_v3 = vpack.c.bf16 %v1805_v53, %v1803_v8  ;;  %v1679_v10 = vadd.f32 %v1551_v15, %v1149_v30 }
  0xf9   :  { %v1810_v43 = vmax.f32 %v1682_v39, 0.0  ;;  %v1681_v31 = vadd.f32 %v1553_v6, %v1151_v61  ;;  %v1156_v48 = vadd.f32 %v1028_v41, %v626_v60  ;;  %v1025_v16 = vmul.f32 %v5461_v7, %v761_v5  ;;  %v175_v6 = vpop.permute.xlu0 %174 }
  0xfa   :  { %v1295_v19 = vpop.permute.xlu1 %1294  ;;  %v1684_v12 = vadd.f32 %v1556_v0, %v1154_v45  ;;  %2768 = vmatprep.mubr.bf16.mxu0 %v5560_v58  ;;  %3121 = vmatprep.mubr.bf16.mxu1 %v5560_v58  ;;  %v625_v53 = vadd.f32 %v5484_v23, %v486_v40  ;;  %v1027_v63 = vmul.f32 %v5461_v7, %v765_v18  ;;  %v7427_v18 = vmov 2  }
  0xfb   :  { %v1558_v13 = vmul.f32 %v5489_v17, %v1295_v19  ;;  %820 = vperm.xlu1 %4704, %v5280_v22   ;;  %v5566_v24 = vpack.c.bf16 %v1810_v43, %v1808_v59  ;;  %2769 = vmatmul.mubr.bf16.vlgmr.msra.gmra.mrb[0].mxu0 %v5562_v3  ;;  %v5580_v59 = vld [vmem:[%s7337_s0 + $0x108] sm:$0xff]  ;;  %v623_v15 = vadd.f32 %v5484_v23, %v484_v36  ;;  %v1809_v0 = vmax.f32 %v1681_v31, 0.0 }
  0xfc   :  { %3122 = vmatmul.mubr.bf16.vlgmr.msra.gmra.mrb[0].mxu1 %v5562_v3  ;;  %v1557_v5 = vmul.f32 %v5481_v20, %v1295_v19  ;;  %304 = vperm.xlu0 %4733, %v5580_v59   ;;  %v1812_v30 = vmax.f32 %v1684_v12, 0.0  ;;  %v1555_v51 = vmul.f32 %v5481_v20, %v5403_v42  ;;  %v1807_v56 = vmax.f32 %v1679_v10, 0.0 }
  0xfd   :  { %v1686_v52 = vadd.f32 %v1558_v13, %v1156_v48  ;;  %2778 = vmatprep.mubr.bf16.mxu0 %v5566_v24  ;;  %3131 = vmatprep.mubr.bf16.mxu1 %v5566_v24  ;;  %v1153_v61 = vadd.f32 %v1025_v16, %v623_v15  ;;  %v1155_v39 = vadd.f32 %v1027_v63, %v625_v53  ;;  %v7428_v40 = vmov 0  }
  0xfe   :  { %v5593_v8 = vpack.c.bf16 %v1809_v0, %v1807_v56  ;;  %v490_v19 = vmul.f32 %v5466_v9, %v175_v6  ;;  %v491_v31 = vmul.f32 %v5457_v4, %v175_v6  ;;  %v1559_v16 = vmul.f32 %v5481_v20, %v5411_v46 }
  0xff   :  { %v1814_v57 = vmax.f32 %v1686_v52, 0.0  ;;  %4705 = vset.pattern.permute.xlu1 %v7427_v18  ;;  %v170_v37 = vpop.permute.xlu1 %169  ;;  %v1685_v41 = vadd.f32 %v1557_v5, %v1155_v39  ;;  %v1560_v53 = vmul.f32 %v5489_v17, %v5411_v46 }
 0x100   :  { %1350 = vperm.xlu1 %4705, %v5280_v22   ;;  %v488_v45 = vmul.f32 %v5466_v9, %v170_v37  ;;  %v489_v62 = vmul.f32 %v5457_v4, %v170_v37  ;;  %v1683_v22 = vadd.f32 %v1555_v51, %v1153_v61  ;;  %v629_v5 = vadd.f32 %v5484_v23, %v490_v19  ;;  %v5627_v19 = vld [vmem:[%s7337_s0 + $0x118] sm:$0xff] }
 0x101   :  { %v5589_v60 = vpack.c.bf16 %v1814_v57, %v1812_v30  ;;  %v1813_v48 = vmax.f32 %v1685_v41, 0.0  ;;  %v630_v57 = vadd.f32 %v5475_v14, %v491_v31  ;;  %314 = vperm.xlu0 %4733, %v5627_v19  }
 0x102   :  { %v627_v13 = vadd.f32 %v5484_v23, %v488_v45  ;;  %v628_v10 = vadd.f32 %v5475_v14, %v489_v62  ;;  %v1811_v63 = vmax.f32 %v1683_v22, 0.0 }
 0x103   :  { %2779 = vmatmul.mubr.bf16.gmra.mrb[4].mxu0 %v5593_v8 }
 0x104   :  { %4706 = vset.pattern.permute.xlu1 %v7428_v40  ;;  %v769_v43 = vpop.permute.xlu1 %768  ;;  %3132 = vmatmul.mubr.bf16.gmra.mrb[4].mxu1 %v5593_v8  ;;  %v5616_v30 = vpack.c.bf16 %v1813_v48, %v1811_v63 }
 0x105   :  { %v1029_v42 = vmul.f32 %v5461_v7, %v769_v43  ;;  %v1030_v36 = vmul.f32 %v5471_v11, %v769_v43  ;;  %2788 = vmatprep.mubr.bf16.mxu0 %v5589_v60  ;;  %3141 = vmatprep.mubr.bf16.mxu1 %v5589_v60 }
 0x106   :  { %239 = vperm.xlu1 %4706, %v5342_v32  }
 0x107   :  { %v1157_v52 = vadd.f32 %v1029_v42, %v627_v13  ;;  %v1158_v15 = vadd.f32 %v1030_v36, %v628_v10 }
 0x108   :  { %v773_v12 = vpop.permute.xlu1 %772 }
 0x109   :  { %v1031_v37 = vmul.f32 %v5461_v7, %v773_v12  ;;  %v1032_v0 = vmul.f32 %v5471_v11, %v773_v12  ;;  %v1687_v51 = vadd.f32 %v1559_v16, %v1157_v52  ;;  %v1688_v56 = vadd.f32 %v1560_v53, %v1158_v15  ;;  %v185_v16 = vpop.permute.xlu0 %184 }
 0x10a   :  { %4707 = vset.pattern.permute.xlu1 %v7354_v1  ;;  %v495_v52 = vmul.f32 %v5457_v4, %v185_v16 }
 0x10b   :  { %824 = vperm.xlu1 %4707, %v5342_v32   ;;  %2789 = vmatmul.mubr.bf16.gmra.mrb[8].mxu0 %v5616_v30  ;;  %v1159_v61 = vadd.f32 %v1031_v37, %v629_v5  ;;  %v1160_v39 = vadd.f32 %v1032_v0, %v630_v57  ;;  %v1815_v43 = vmax.f32 %v1687_v51, 0.0  ;;  %v1816_v22 = vmax.f32 %v1688_v56, 0.0 }
 0x10c   :  { %3142 = vmatmul.mubr.bf16.gmra.mrb[8].mxu1 %v5616_v30  ;;  %v1563_v37 = vmul.f32 %v5481_v20, %v5423_v50  ;;  %v1564_v0 = vmul.f32 %v5489_v17, %v5423_v50  ;;  %v5663_v50 = vld [vmem:[%s7337_s0 + $0x128] sm:$0xff] }
 0x10d   :  { %v1303_v46 = vpop.permute.xlu1 %1302  ;;  %324 = vperm.xlu0 %4733, %v5663_v50  }
 0x10e   :  { %v1561_v41 = vmul.f32 %v5481_v20, %v1303_v46  ;;  %v1562_v45 = vmul.f32 %v5489_v17, %v1303_v46 }
 0x10f   :  { %828 = vperm.xlu1 %4707, %v5288_v25  }
 0x110   :  { %v1689_v62 = vadd.f32 %v1561_v41, %v1159_v61  ;;  %v1690_v6 = vadd.f32 %v1562_v45, %v1160_v39  ;;  %v634_v61 = vadd.f32 %v5475_v14, %v495_v52  ;;  %v195_v45 = vpop.permute.xlu0 %194 }
 0x112   :  { %v1817_v32 = vmax.f32 %v1689_v62, 0.0  ;;  %v1818_v42 = vmax.f32 %v1690_v6, 0.0  ;;  %v180_v36 = vpop.permute.xlu1 %179 }
 0x113   :  { %4708 = vset.pattern.permute.xlu1 %v7427_v18  ;;  %v492_v13 = vmul.f32 %v5466_v9, %v180_v36  ;;  %v493_v10 = vmul.f32 %v5457_v4, %v180_v36 }
 0x114   :  { %v5631_v31 = vpack.c.bf16 %v1818_v42, %v1816_v22  ;;  %v5633_v48 = vpack.c.bf16 %v1817_v32, %v1815_v43  ;;  %1358 = vperm.xlu1 %4708, %v5288_v25   ;;  %v494_v25 = vmul.f32 %v5466_v9, %v185_v16  ;;  %v5674_v16 = vld [vmem:[%s7337_s0 + $0x138] sm:$0xff] }
 0x115   :  { %v631_v15 = vadd.f32 %v5484_v23, %v492_v13  ;;  %v632_v5 = vadd.f32 %v5475_v14, %v493_v10  ;;  %v5668_v13 = vpop.permute.xlu0 %204  ;;  %334 = vperm.xlu0 %4733, %v5674_v16  }
 0x116   :  { %2798 = vmatprep.mubr.bf16.mxu0 %v5631_v31  ;;  %3151 = vmatprep.mubr.bf16.mxu1 %v5631_v31  ;;  %v633_v46 = vadd.f32 %v5484_v23, %v494_v25 }
 0x117   :  { %2799 = vmatmul.mubr.bf16.gmra.mrb[12].mxu0 %v5633_v48  ;;  %3152 = vmatmul.mubr.bf16.gmra.mrb[12].mxu1 %v5633_v48  ;;  %v777_v12 = vpop.permute.xlu1 %776 }
 0x118   :  { %v1033_v53 = vmul.f32 %v5461_v7, %v777_v12  ;;  %v1034_v63 = vmul.f32 %v5471_v11, %v777_v12  ;;  %4709 = vset.pattern.permute.xlu1 %v7428_v40 }
 0x119   :  { %249 = vperm.xlu1 %4709, %v5350_v21  }
 0x11a   :  { %v1161_v51 = vadd.f32 %v1033_v53, %v631_v15  ;;  %v1162_v56 = vadd.f32 %v1034_v63, %v632_v5 }
 0x11b   :  { %v781_v57 = vpop.permute.xlu1 %780 }
 0x11c   :  { %v1035_v39 = vmul.f32 %v5461_v7, %v781_v57  ;;  %v1036_v41 = vmul.f32 %v5471_v11, %v781_v57  ;;  %v1691_v62 = vadd.f32 %v1563_v37, %v1161_v51  ;;  %v1692_v6 = vadd.f32 %v1564_v0, %v1162_v56  ;;  %v5683_v57 = vpop.permute.xlu0 %214  ;;  %v5688_v37 = vld [vmem:[%s7337_s0 + $0x148] sm:$0xff] }
 0x11d   :  { %4710 = vset.pattern.permute.xlu1 %v7354_v1  ;;  %344 = vperm.xlu0 %4733, %v5688_v37  }
 0x11e   :  { %832 = vperm.xlu1 %4710, %v5350_v21   ;;  %v1163_v22 = vadd.f32 %v1035_v39, %v633_v46  ;;  %v1164_v32 = vadd.f32 %v1036_v41, %v634_v61  ;;  %v1819_v12 = vmax.f32 %v1691_v62, 0.0  ;;  %v1820_v53 = vmax.f32 %v1692_v6, 0.0  ;;  %v114_v41 = vld [vmem:[%s7337_s0 + $0x158] sm:$0xff] }
 0x11f   :  { %v498_v61 = vmul.f32 %v5466_v9, %v195_v45  ;;  %v499_v39 = vmul.f32 %v5457_v4, %v195_v45 }
 0x120   :  { %v1311_v43 = vpop.permute.xlu1 %1310 }
 0x121   :  { %v1565_v42 = vmul.f32 %v5481_v20, %v1311_v43  ;;  %v1566_v36 = vmul.f32 %v5489_v17, %v1311_v43  ;;  %354 = vperm.xlu0 %4733, %v114_v41  }
 0x122   :  { %836 = vperm.xlu1 %4710, %v5298_v26  }
 0x123   :  { %v1693_v10 = vadd.f32 %v1565_v42, %v1163_v22  ;;  %v1694_v21 = vadd.f32 %v1566_v36, %v1164_v32  ;;  %v5708_v22 = vpop.permute.xlu0 %224  ;;  %v1567_v32 = vmul.f32 %v5481_v20, %v5437_v55  ;;  %v1568_v42 = vmul.f32 %v5489_v17, %v5437_v55 }
 0x125   :  { %v1821_v63 = vmax.f32 %v1693_v10, 0.0  ;;  %v1822_v25 = vmax.f32 %v1694_v21, 0.0  ;;  %v190_v52 = vpop.permute.xlu1 %189  ;;  %v637_v10 = vadd.f32 %v5484_v23, %v498_v61  ;;  %v638_v21 = vadd.f32 %v5475_v14, %v499_v39  ;;  %v118_v61 = vld [vmem:[%s7337_s0 + $0x178] sm:$0xff] }
 0x126   :  { %4711 = vset.pattern.permute.xlu1 %v7427_v18  ;;  %v496_v0 = vmul.f32 %v5466_v9, %v190_v52  ;;  %v497_v51 = vmul.f32 %v5457_v4, %v190_v52 }
 0x127   :  { %v5678_v15 = vpack.c.bf16 %v1822_v25, %v1820_v53  ;;  %v5680_v5 = vpack.c.bf16 %v1821_v63, %v1819_v12  ;;  %1366 = vperm.xlu1 %4711, %v5298_v26   ;;  %v116_v63 = vld [vmem:[%s7337_s0 + $0x168] sm:$0xff] }
 0x128   :  { %v635_v62 = vadd.f32 %v5484_v23, %v496_v0  ;;  %v636_v6 = vadd.f32 %v5475_v14, %v497_v51  ;;  %364 = vperm.xlu0 %4733, %v116_v63  }
 0x129   :  { %2808 = vmatprep.mubr.bf16.mxu0 %v5678_v15  ;;  %3161 = vmatprep.mubr.bf16.mxu1 %v5678_v15 }
 0x12a   :  { %2809 = vmatmul.mubr.bf16.gmra.mrb[16].mxu0 %v5680_v5  ;;  %3162 = vmatmul.mubr.bf16.gmra.mrb[16].mxu1 %v5680_v5  ;;  %v785_v26 = vpop.permute.xlu1 %784 }
 0x12b   :  { %v1037_v56 = vmul.f32 %v5461_v7, %v785_v26  ;;  %v1038_v46 = vmul.f32 %v5471_v11, %v785_v26  ;;  %4712 = vset.pattern.permute.xlu1 %v7428_v40 }
 0x12c   :  { %259 = vperm.xlu1 %4712, %v5358_v33   ;;  %374 = vperm.xlu0 %4733, %v118_v61   ;;  %v1572_v61 = vmul.f32 %v5489_v17, %v5451_v2 }
 0x12d   :  { %v1165_v45 = vadd.f32 %v1037_v56, %v635_v62  ;;  %v1166_v36 = vadd.f32 %v1038_v46, %v636_v6  ;;  %v5725_v46 = vpop.permute.xlu0 %234 }
 0x12e   :  { %v789_v43 = vpop.permute.xlu1 %788 }
 0x12f   :  { %v1039_v12 = vmul.f32 %v5461_v7, %v789_v43  ;;  %v1040_v53 = vmul.f32 %v5471_v11, %v789_v43  ;;  %v1695_v55 = vadd.f32 %v1567_v32, %v1165_v45  ;;  %v1696_v25 = vadd.f32 %v1568_v42, %v1166_v36 }
 0x130   :  { %4713 = vset.pattern.permute.xlu1 %v7354_v1  ;;  %4748 = vset.pattern.permute.xlu0 %v7427_v18 }
 0x131   :  { %840 = vperm.xlu1 %4713, %v5358_v33   ;;  %v1167_v0 = vadd.f32 %v1039_v12, %v637_v10  ;;  %v1168_v51 = vadd.f32 %v1040_v53, %v638_v21  ;;  %v1823_v33 = vmax.f32 %v1695_v55, 0.0  ;;  %v1824_v62 = vmax.f32 %v1696_v25, 0.0  ;;  %v5736_v36 = vpop.permute.xlu0 %244  ;;  %v5749_v53 = vld [vmem:[%s7337_s0 + $0x130] sm:$0xff] }
 0x132   :  { %1426 = vperm.xlu0 %4748, %v5749_v53   ;;  %v502_v55 = vmul.f32 %v5466_v9, %v5668_v13  ;;  %v503_v25 = vmul.f32 %v5457_v4, %v5668_v13 }
 0x133   :  { %v1319_v52 = vpop.permute.xlu1 %1318 }
 0x134   :  { %v1569_v26 = vmul.f32 %v5481_v20, %v1319_v52  ;;  %v1570_v56 = vmul.f32 %v5489_v17, %v1319_v52  ;;  %v641_v13 = vadd.f32 %v5484_v23, %v502_v55 }
 0x135   :  { %844 = vperm.xlu1 %4713, %v5306_v27  }
 0x136   :  { %v1697_v39 = vadd.f32 %v1569_v26, %v1167_v0  ;;  %v1698_v41 = vadd.f32 %v1570_v56, %v1168_v51  ;;  %v5762_v51 = vpop.permute.xlu0 %254  ;;  %v1571_v56 = vmul.f32 %v5481_v20, %v5451_v2 }
 0x138   :  { %v1825_v6 = vmax.f32 %v1697_v39, 0.0  ;;  %v1826_v43 = vmax.f32 %v1698_v41, 0.0  ;;  %v200_v32 = vpop.permute.xlu1 %199 }
 0x139   :  { %4714 = vset.pattern.permute.xlu1 %v7427_v18  ;;  %v500_v10 = vmul.f32 %v5466_v9, %v200_v32  ;;  %v501_v21 = vmul.f32 %v5457_v4, %v200_v32 }
 0x13a   :  { %v5732_v42 = vpack.c.bf16 %v1826_v43, %v1824_v62  ;;  %v5734_v45 = vpack.c.bf16 %v1825_v6, %v1823_v33  ;;  %1374 = vperm.xlu1 %4714, %v5306_v27   ;;  %v642_v33 = vadd.f32 %v5475_v14, %v503_v25  ;;  %v5777_v43 = vld [vmem:[%s7337_s0 + $0x140] sm:$0xff] }
 0x13b   :  { %v639_v52 = vadd.f32 %v5484_v23, %v500_v10  ;;  %v640_v0 = vadd.f32 %v5475_v14, %v501_v21  ;;  %v5779_v21 = vpop.permute.xlu0 %264  ;;  %1434 = vperm.xlu0 %4748, %v5777_v43  }
 0x13c   :  { %2818 = vmatprep.mubr.bf16.mxu0 %v5732_v42  ;;  %3171 = vmatprep.mubr.bf16.mxu1 %v5732_v42 }
 0x13d   :  { %2819 = vmatmul.mubr.bf16.gmra.mrb[20].mxu0 %v5734_v45  ;;  %3172 = vmatmul.mubr.bf16.gmra.mrb[20].mxu1 %v5734_v45  ;;  %v793_v12 = vpop.permute.xlu1 %792 }
 0x13e   :  { %v1041_v27 = vmul.f32 %v5461_v7, %v793_v12  ;;  %v1042_v63 = vmul.f32 %v5471_v11, %v793_v12  ;;  %4715 = vset.pattern.permute.xlu1 %v7428_v40 }
 0x13f   :  { %269 = vperm.xlu1 %4715, %v5366_v34  }
 0x140   :  { %v1169_v39 = vadd.f32 %v1041_v27, %v639_v52  ;;  %v1170_v41 = vadd.f32 %v1042_v63, %v640_v0 }
 0x141   :  { %v797_v26 = vpop.permute.xlu1 %796 }
 0x142   :  { %v1043_v62 = vmul.f32 %v5461_v7, %v797_v26  ;;  %v1044_v6 = vmul.f32 %v5471_v11, %v797_v26  ;;  %v1699_v2 = vadd.f32 %v1571_v56, %v1169_v39  ;;  %v1700_v32 = vadd.f32 %v1572_v61, %v1170_v41  ;;  %v5785_v39 = vpop.permute.xlu0 %274 }
 0x143   :  { %4717 = vset.pattern.permute.xlu1 %v7354_v1 }
 0x144   :  { %848 = vperm.xlu1 %4717, %v5366_v34   ;;  %v1171_v12 = vadd.f32 %v1043_v62, %v641_v13  ;;  %v1172_v27 = vadd.f32 %v1044_v6, %v642_v33  ;;  %v1827_v52 = vmax.f32 %v1699_v2, 0.0  ;;  %v1828_v0 = vmax.f32 %v1700_v32, 0.0 }
 0x146   :  { %v1327_v10 = vpop.permute.xlu1 %1326 }
 0x147   :  { %v1573_v63 = vmul.f32 %v5481_v20, %v1327_v10  ;;  %v1574_v55 = vmul.f32 %v5489_v17, %v1327_v10  ;;  %v507_v10 = vmul.f32 %v5457_v4, %v5683_v57 }
 0x148   :  { %852 = vperm.xlu1 %4717, %v5313_v28  }
 0x149   :  { %v1701_v25 = vadd.f32 %v1573_v63, %v1171_v12  ;;  %v1702_v34 = vadd.f32 %v1574_v55, %v1172_v27  ;;  %v1331_v12 = vpop.permute.xlu0 %1330 }
 0x14b   :  { %v1829_v26 = vmax.f32 %v1701_v25, 0.0  ;;  %v1830_v56 = vmax.f32 %v1702_v34, 0.0  ;;  %v210_v61 = vpop.permute.xlu1 %209 }
 0x14c   :  { %4718 = vset.pattern.permute.xlu1 %v7427_v18  ;;  %v504_v33 = vmul.f32 %v5466_v9, %v210_v61  ;;  %v505_v62 = vmul.f32 %v5457_v4, %v210_v61 }
 0x14d   :  { %v5788_v41 = vpack.c.bf16 %v1830_v56, %v1828_v0  ;;  %v5790_v13 = vpack.c.bf16 %v1829_v26, %v1827_v52  ;;  %1382 = vperm.xlu1 %4718, %v5313_v28   ;;  %v506_v28 = vmul.f32 %v5466_v9, %v5683_v57  ;;  %v1575_v52 = vmul.f32 %v5481_v20, %v1331_v12 }
 0x14e   :  { %v643_v27 = vadd.f32 %v5484_v23, %v504_v33  ;;  %v644_v63 = vadd.f32 %v5475_v14, %v505_v62  ;;  %v1576_v0 = vmul.f32 %v5489_v17, %v1331_v12  ;;  %v646_v57 = vadd.f32 %v5475_v14, %v507_v10 }
 0x14f   :  { %2828 = vmatprep.mubr.bf16.mxu0 %v5788_v41  ;;  %3181 = vmatprep.mubr.bf16.mxu1 %v5788_v41  ;;  %v645_v26 = vadd.f32 %v5484_v23, %v506_v28 }
 0x150   :  { %2829 = vmatmul.mubr.bf16.gmra.mrb[24].mxu0 %v5790_v13  ;;  %3182 = vmatmul.mubr.bf16.gmra.mrb[24].mxu1 %v5790_v13  ;;  %v801_v6 = vpop.permute.xlu1 %800 }
 0x151   :  { %v1045_v2 = vmul.f32 %v5461_v7, %v801_v6  ;;  %v1046_v32 = vmul.f32 %v5471_v11, %v801_v6  ;;  %4719 = vset.pattern.permute.xlu1 %v7428_v40 }
 0x152   :  { %279 = vperm.xlu1 %4719, %v5373_v35  }
 0x153   :  { %v1173_v25 = vadd.f32 %v1045_v2, %v643_v27  ;;  %v1174_v34 = vadd.f32 %v1046_v32, %v644_v63  ;;  %v5820_v2 = vld [vmem:[%s7337_s0 + $0x150] sm:$0xff] }
 0x154   :  { %v805_v55 = vpop.permute.xlu1 %804  ;;  %1442 = vperm.xlu0 %4748, %v5820_v2  }
 0x155   :  { %v1047_v56 = vmul.f32 %v5461_v7, %v805_v55  ;;  %v1048_v61 = vmul.f32 %v5471_v11, %v805_v55  ;;  %v1703_v33 = vadd.f32 %v1575_v52, %v1173_v25  ;;  %v1704_v62 = vadd.f32 %v1576_v0, %v1174_v34 }
 0x156   :  { %4720 = vset.pattern.permute.xlu1 %v7354_v1 }
 0x157   :  { %856 = vperm.xlu1 %4720, %v5373_v35   ;;  %v1175_v32 = vadd.f32 %v1047_v56, %v645_v26  ;;  %v1176_v28 = vadd.f32 %v1048_v61, %v646_v57  ;;  %v1831_v35 = vmax.f32 %v1703_v33, 0.0  ;;  %v1832_v55 = vmax.f32 %v1704_v62, 0.0 }
 0x159   :  { %v1335_v6 = vpop.permute.xlu1 %1334 }
 0x15a   :  { %v1577_v10 = vmul.f32 %v5481_v20, %v1335_v6  ;;  %v1578_v12 = vmul.f32 %v5489_v17, %v1335_v6  ;;  %v511_v6 = vmul.f32 %v5457_v4, %v5708_v22 }
 0x15b   :  { %860 = vperm.xlu1 %4720, %v5416_v47  }
 0x15c   :  { %v1705_v27 = vadd.f32 %v1577_v10, %v1175_v32  ;;  %v1706_v63 = vadd.f32 %v1578_v12, %v1176_v28  ;;  %v1339_v32 = vpop.permute.xlu0 %1338 }
 0x15e   :  { %v1833_v25 = vmax.f32 %v1705_v27, 0.0  ;;  %v1834_v34 = vmax.f32 %v1706_v63, 0.0  ;;  %v220_v52 = vpop.permute.xlu1 %219 }
 0x15f   :  { %4721 = vset.pattern.permute.xlu1 %v7427_v18  ;;  %v508_v57 = vmul.f32 %v5466_v9, %v220_v52  ;;  %v509_v56 = vmul.f32 %v5457_v4, %v220_v52 }
 0x160   :  { %v5827_v0 = vpack.c.bf16 %v1834_v34, %v1832_v55  ;;  %v5829_v26 = vpack.c.bf16 %v1833_v25, %v1831_v35  ;;  %1390 = vperm.xlu1 %4721, %v5416_v47   ;;  %v510_v47 = vmul.f32 %v5466_v9, %v5708_v22  ;;  %v1579_v35 = vmul.f32 %v5481_v20, %v1339_v32 }
 0x161   :  { %v647_v28 = vadd.f32 %v5484_v23, %v508_v57  ;;  %v648_v10 = vadd.f32 %v5475_v14, %v509_v56  ;;  %v1580_v55 = vmul.f32 %v5489_v17, %v1339_v32  ;;  %v650_v22 = vadd.f32 %v5475_v14, %v511_v6 }
 0x162   :  { %2838 = vmatprep.mubr.bf16.mxu0 %v5827_v0  ;;  %3191 = vmatprep.mubr.bf16.mxu1 %v5827_v0  ;;  %v649_v25 = vadd.f32 %v5484_v23, %v510_v47 }
 0x163   :  { %2839 = vmatmul.mubr.bf16.gmra.mrb[28].mxu0 %v5829_v26  ;;  %3192 = vmatmul.mubr.bf16.gmra.mrb[28].mxu1 %v5829_v26  ;;  %v809_v61 = vpop.permute.xlu1 %808 }
 0x164   :  { %v1049_v33 = vmul.f32 %v5461_v7, %v809_v61  ;;  %v1050_v62 = vmul.f32 %v5471_v11, %v809_v61  ;;  %4722 = vset.pattern.permute.xlu1 %v7428_v40 }
 0x165   :  { %289 = vperm.xlu1 %4722, %v5381_v29  }
 0x166   :  { %v1177_v27 = vadd.f32 %v1049_v33, %v647_v28  ;;  %v1178_v63 = vadd.f32 %v1050_v62, %v648_v10  ;;  %v5859_v33 = vld [vmem:[%s7337_s0 + $0x160] sm:$0xff] }
 0x167   :  { %v813_v12 = vpop.permute.xlu1 %812  ;;  %1450 = vperm.xlu0 %4748, %v5859_v33  }
 0x168   :  { %v1051_v34 = vmul.f32 %v5461_v7, %v813_v12  ;;  %v1052_v52 = vmul.f32 %v5471_v11, %v813_v12  ;;  %v1707_v57 = vadd.f32 %v1579_v35, %v1177_v27  ;;  %v1708_v56 = vadd.f32 %v1580_v55, %v1178_v63 }
 0x169   :  { %4723 = vset.pattern.permute.xlu1 %v7354_v1 }
 0x16a   :  { %864 = vperm.xlu1 %4723, %v5381_v29   ;;  %v1179_v62 = vadd.f32 %v1051_v34, %v649_v25  ;;  %v1180_v47 = vadd.f32 %v1052_v52, %v650_v22  ;;  %v1835_v29 = vmax.f32 %v1707_v57, 0.0  ;;  %v1836_v12 = vmax.f32 %v1708_v56, 0.0 }
 0x16c   :  { %v1343_v61 = vpop.permute.xlu1 %1342 }
 0x16d   :  { %v1581_v6 = vmul.f32 %v5481_v20, %v1343_v61  ;;  %v1582_v32 = vmul.f32 %v5489_v17, %v1343_v61  ;;  %v515_v61 = vmul.f32 %v5457_v4, %v5725_v46 }
 0x16e   :  { %868 = vperm.xlu1 %4723, %v5497_v44  }
 0x16f   :  { %v1709_v28 = vadd.f32 %v1581_v6, %v1179_v62  ;;  %v1710_v10 = vadd.f32 %v1582_v32, %v1180_v47  ;;  %v1347_v62 = vpop.permute.xlu0 %1346 }
 0x171   :  { %v1837_v27 = vmax.f32 %v1709_v28, 0.0  ;;  %v1838_v63 = vmax.f32 %v1710_v10, 0.0  ;;  %v230_v35 = vpop.permute.xlu1 %229 }
 0x172   :  { %4724 = vset.pattern.permute.xlu1 %v7427_v18  ;;  %v512_v22 = vmul.f32 %v5466_v9, %v230_v35  ;;  %v513_v34 = vmul.f32 %v5457_v4, %v230_v35 }
 0x173   :  { %v5866_v55 = vpack.c.bf16 %v1838_v63, %v1836_v12  ;;  %v5868_v25 = vpack.c.bf16 %v1837_v27, %v1835_v29  ;;  %1398 = vperm.xlu1 %4724, %v5497_v44   ;;  %v514_v44 = vmul.f32 %v5466_v9, %v5725_v46  ;;  %v1583_v29 = vmul.f32 %v5481_v20, %v1347_v62 }
 0x174   :  { %v651_v47 = vadd.f32 %v5484_v23, %v512_v22  ;;  %v652_v6 = vadd.f32 %v5475_v14, %v513_v34  ;;  %v1584_v12 = vmul.f32 %v5489_v17, %v1347_v62  ;;  %v654_v46 = vadd.f32 %v5475_v14, %v515_v61 }
 0x175   :  { %7429 = vst [vmem:[#allocation18_spill] sm:$0xff] %v5868_v25  ;;  %2848 = vmatprep.mubr.bf16.mxu0 %v5866_v55  ;;  %3201 = vmatprep.mubr.bf16.mxu1 %v5866_v55  ;;  %v653_v27 = vadd.f32 %v5484_v23, %v514_v44 }
 0x176   :  { %2849 = vmatmul.mubr.bf16.gmra.mrb[32].mxu0 %v5868_v25  ;;  %3202 = vmatmul.mubr.bf16.gmra.mrb[32].mxu1 %v5868_v25  ;;  %v817_v52 = vpop.permute.xlu1 %816 }
 0x177   :  { %v1053_v57 = vmul.f32 %v5461_v7, %v817_v52  ;;  %v1054_v56 = vmul.f32 %v5471_v11, %v817_v52  ;;  %4725 = vset.pattern.permute.xlu1 %v7428_v40 }
 0x178   :  { %299 = vperm.xlu1 %4725, %v5392_v38  }
 0x179   :  { %v1181_v28 = vadd.f32 %v1053_v57, %v651_v47  ;;  %v1182_v10 = vadd.f32 %v1054_v56, %v652_v6  ;;  %v5898_v57 = vld [vmem:[%s7337_s0 + $0x170] sm:$0xff] }
 0x17a   :  { %v821_v32 = vpop.permute.xlu1 %820  ;;  %1458 = vperm.xlu0 %4748, %v5898_v57  }
 0x17b   :  { %v1055_v63 = vmul.f32 %v5461_v7, %v821_v32  ;;  %v1056_v35 = vmul.f32 %v5471_v11, %v821_v32  ;;  %v1711_v22 = vadd.f32 %v1583_v29, %v1181_v28  ;;  %v1712_v34 = vadd.f32 %v1584_v12, %v1182_v10 }
 0x17c   :  { %4726 = vset.pattern.permute.xlu1 %v7354_v1 }
 0x17d   :  { %872 = vperm.xlu1 %4726, %v5392_v38   ;;  %v1183_v56 = vadd.f32 %v1055_v63, %v653_v27  ;;  %v1184_v44 = vadd.f32 %v1056_v35, %v654_v46  ;;  %v1839_v38 = vmax.f32 %v1711_v22, 0.0  ;;  %v1840_v32 = vmax.f32 %v1712_v34, 0.0 }
 0x17e   :  { %v518_v35 = vmul.f32 %v5466_v9, %v5736_v36 }
 0x17f   :  { %v1351_v52 = vpop.permute.xlu1 %1350 }
 0x180   :  { %v1585_v61 = vmul.f32 %v5481_v20, %v1351_v52  ;;  %v1586_v62 = vmul.f32 %v5489_v17, %v1351_v52 }
 0x181   :  { %876 = vperm.xlu1 %4726, %v5580_v59  }
 0x182   :  { %v1713_v47 = vadd.f32 %v1585_v61, %v1183_v56  ;;  %v1714_v6 = vadd.f32 %v1586_v62, %v1184_v44  ;;  %v4939_v56 = vld [vmem:[%s7337_s0 + $0x110] sm:$0xff]  ;;  %v519_v44 = vmul.f32 %v5457_v4, %v5736_v36  ;;  %v1355_v61 = vpop.permute.xlu0 %1354 }
 0x184   :  { %v1841_v28 = vmax.f32 %v1713_v47, 0.0  ;;  %v1842_v10 = vmax.f32 %v1714_v6, 0.0  ;;  %v121_v6 = vld [vmem:[%s7337_s0 + $0x190] sm:$0xff]  ;;  %v658_v36 = vadd.f32 %v5475_v14, %v519_v44 }
 0x185   :  { %4727 = vset.pattern.permute.xlu1 %v7427_v18  ;;  %v240_v29 = vpop.permute.xlu1 %239 }
 0x186   :  { %v5905_v12 = vpack.c.bf16 %v1842_v10, %v1840_v32  ;;  %v5907_v27 = vpack.c.bf16 %v1841_v28, %v1839_v38  ;;  %1406 = vperm.xlu1 %4727, %v5580_v59   ;;  %v516_v46 = vmul.f32 %v5466_v9, %v240_v29  ;;  %v517_v63 = vmul.f32 %v5457_v4, %v240_v29  ;;  %v119_v59 = vld [vmem:[%s7337_s0 + $0x180] sm:$0xff] }
 0x187   :  { %1466 = vperm.xlu0 %4748, %v119_v59   ;;  %v657_v38 = vadd.f32 %v5484_v23, %v518_v35  ;;  %v1587_v29 = vmul.f32 %v5481_v20, %v1355_v61 }
 0x188   :  { %7430 = vst [vmem:[#allocation19_spill] sm:$0xff] %v5905_v12  ;;  %7431 = vst [vmem:[#allocation20_spill] sm:$0xff] %v5907_v27  ;;  %2858 = vmatprep.mubr.bf16.mxu0 %v5905_v12  ;;  %3211 = vmatprep.mubr.bf16.mxu1 %v5905_v12  ;;  %v655_v62 = vadd.f32 %v5484_v23, %v516_v46  ;;  %v656_v47 = vadd.f32 %v5475_v14, %v517_v63 }
 0x189   :  { %2859 = vmatmul.mubr.bf16.gmra.mrb[36].mxu0 %v5907_v27  ;;  %3212 = vmatmul.mubr.bf16.gmra.mrb[36].mxu1 %v5907_v27 }
 0x18a   :  { %4728 = vset.pattern.permute.xlu1 %v7428_v40  ;;  %v825_v22 = vpop.permute.xlu1 %824 }
 0x18b   :  { %v1057_v34 = vmul.f32 %v5461_v7, %v825_v22  ;;  %v1058_v52 = vmul.f32 %v5471_v11, %v825_v22  ;;  %309 = vperm.xlu1 %4728, %v4939_v56   ;;  %v1588_v22 = vmul.f32 %v5489_v17, %v1355_v61  ;;  %1474 = vperm.xlu0 %4748, %v121_v6  }
 0x18d   :  { %v1185_v28 = vadd.f32 %v1057_v34, %v655_v62  ;;  %v1186_v10 = vadd.f32 %v1058_v52, %v656_v47  ;;  %v123_v34 = vld [vmem:[%s7337_s0 + $0x1a0] sm:$0xff] }
 0x18e   :  { %v829_v32 = vpop.permute.xlu1 %828 }
 0x18f   :  { %4729 = vset.pattern.permute.xlu1 %v7354_v1  ;;  %v1059_v46 = vmul.f32 %v5461_v7, %v829_v32  ;;  %v1060_v63 = vmul.f32 %v5471_v11, %v829_v32  ;;  %v1715_v59 = vadd.f32 %v1587_v29, %v1185_v28  ;;  %v1716_v27 = vadd.f32 %v1588_v22, %v1186_v10 }
 0x190   :  { %880 = vperm.xlu1 %4729, %v4939_v56   ;;  %1482 = vperm.xlu0 %4748, %v123_v34   ;;  %v120_v56 = vld [vmem:[%s7337_s0 + $0x188] sm:$0xff]  ;;  %v522_v34 = vmul.f32 %v5466_v9, %v5762_v51 }
 0x191   :  { %v1187_v52 = vadd.f32 %v1059_v46, %v657_v38  ;;  %v1188_v62 = vadd.f32 %v1060_v63, %v658_v36  ;;  %v1843_v6 = vmax.f32 %v1715_v59, 0.0  ;;  %v1844_v28 = vmax.f32 %v1716_v27, 0.0 }
 0x193   :  { %v1359_v35 = vpop.permute.xlu1 %1358 }
 0x194   :  { %v1589_v61 = vmul.f32 %v5481_v20, %v1359_v35  ;;  %v1590_v47 = vmul.f32 %v5489_v17, %v1359_v35  ;;  %884 = vperm.xlu1 %4729, %v5627_v19   ;;  %4759 = vset.pattern.permute.xlu0 %v7428_v40  ;;  %v4940_v35 = vld [vmem:[%s7337_s0 + $0x120] sm:$0xff] }
 0x195   :  { %384 = vperm.xlu0 %4759, %v120_v56  }
 0x196   :  { %v1717_v44 = vadd.f32 %v1589_v61, %v1187_v52  ;;  %v1718_v32 = vadd.f32 %v1590_v47, %v1188_v62  ;;  %v523_v52 = vmul.f32 %v5457_v4, %v5762_v51  ;;  %v1363_v62 = vpop.permute.xlu0 %1362 }
 0x198   :  { %v1845_v10 = vmax.f32 %v1717_v44, 0.0  ;;  %v1846_v29 = vmax.f32 %v1718_v32, 0.0  ;;  %4730 = vset.pattern.permute.xlu1 %v7427_v18  ;;  %v250_v38 = vpop.permute.xlu1 %249 }
 0x199   :  { %1414 = vperm.xlu1 %4730, %v5627_v19   ;;  %v520_v46 = vmul.f32 %v5466_v9, %v250_v38  ;;  %v521_v63 = vmul.f32 %v5457_v4, %v250_v38 }
 0x19a   :  { %v5953_v22 = vpack.c.bf16 %v1846_v29, %v1844_v28  ;;  %v5955_v36 = vpack.c.bf16 %v1845_v10, %v1843_v6  ;;  %v1591_v6 = vmul.f32 %v5481_v20, %v1363_v62  ;;  %v1592_v28 = vmul.f32 %v5489_v17, %v1363_v62 }
 0x19b   :  { %v659_v61 = vadd.f32 %v5484_v23, %v520_v46  ;;  %v660_v47 = vadd.f32 %v5475_v14, %v521_v63  ;;  %v661_v10 = vadd.f32 %v5484_v23, %v522_v34  ;;  %v662_v29 = vadd.f32 %v5475_v14, %v523_v52  ;;  %v122_v52 = vld [vmem:[%s7337_s0 + $0x198] sm:$0xff] }
 0x19c   :  { %7432 = vst [vmem:[#allocation21_spill] sm:$0xff] %v5953_v22  ;;  %7433 = vst [vmem:[#allocation22_spill] sm:$0xff] %v5955_v36  ;;  %2868 = vmatprep.mubr.bf16.mxu0 %v5953_v22  ;;  %3221 = vmatprep.mubr.bf16.mxu1 %v5953_v22 }
 0x19d   :  { %4731 = vset.pattern.permute.xlu1 %v7428_v40  ;;  %2869 = vmatmul.mubr.bf16.gmra.mrb[40].mxu0 %v5955_v36  ;;  %v833_v19 = vpop.permute.xlu1 %832 }
 0x19e   :  { %3222 = vmatmul.mubr.bf16.gmra.mrb[40].mxu1 %v5955_v36  ;;  %v1061_v27 = vmul.f32 %v5461_v7, %v833_v19  ;;  %v1062_v59 = vmul.f32 %v5471_v11, %v833_v19  ;;  %319 = vperm.xlu1 %4731, %v4940_v35  }
 0x19f   :  { %394 = vperm.xlu0 %4759, %v122_v52   ;;  %v4878_v52 = vld [vmem:[#allocation7 + $0x18] ss:$28 sps:$4 sm:$0xff]  }
 0x1a0   :  { %v1189_v32 = vadd.f32 %v1061_v27, %v659_v61  ;;  %v1190_v56 = vadd.f32 %v1062_v59, %v660_v47  ;;  %3796 = vmatpush1.bf16.msra.mxu1 %v4878_v52 }
 0x1a1   :  { %v837_v44 = vpop.permute.xlu1 %836  ;;  %3797 = vmatprep.subr.bf16.mxu1 %v7428_v40 }
 0x1a2   :  { %4732 = vset.pattern.permute.xlu1 %v7354_v1  ;;  %v1063_v51 = vmul.f32 %v5461_v7, %v837_v44  ;;  %v1064_v38 = vmul.f32 %v5471_v11, %v837_v44  ;;  %v1719_v46 = vadd.f32 %v1591_v6, %v1189_v32  ;;  %v1720_v63 = vadd.f32 %v1592_v28, %v1190_v56  ;;  %v1371_v6 = vpop.permute.xlu0 %1370 }
 0x1a3   :  { %888 = vperm.xlu1 %4732, %v4940_v35  }
 0x1a4   :  { %v1191_v27 = vadd.f32 %v1063_v51, %v661_v10  ;;  %v1192_v59 = vadd.f32 %v1064_v38, %v662_v29  ;;  %v1847_v1 = vmax.f32 %v1719_v46, 0.0  ;;  %v1848_v44 = vmax.f32 %v1720_v63, 0.0 }
 0x1a5   :  { %v526_v38 = vmul.f32 %v5466_v9, %v5779_v21 }
 0x1a6   :  { %v1367_v19 = vpop.permute.xlu1 %1366  ;;  %v6002_v46 = vpop.permute.xlu0 %1378 }
 0x1a7   :  { %v1593_v61 = vmul.f32 %v5481_v20, %v1367_v19  ;;  %v1594_v62 = vmul.f32 %v5489_v17, %v1367_v19  ;;  %892 = vperm.xlu1 %4732, %v5663_v50   ;;  %v527_v19 = vmul.f32 %v5457_v4, %v5779_v21 }
 0x1a9   :  { %v1721_v47 = vadd.f32 %v1593_v61, %v1191_v27  ;;  %v1722_v34 = vadd.f32 %v1594_v62, %v1192_v59  ;;  %v4875_v61 = vld [vmem:[#allocation7 + $0x10] ss:$28 sps:$4 sm:$0xff]   ;;  %v666_v21 = vadd.f32 %v5475_v14, %v527_v19 }
 0x1aa   :  { %v4877_v62 = vld [vmem:[#allocation7 + $0x14] ss:$28 sps:$4 sm:$0xff]  }
 0x1ab   :  { %v1849_v35 = vmax.f32 %v1721_v47, 0.0  ;;  %v1850_v32 = vmax.f32 %v1722_v34, 0.0  ;;  %4734 = vset.pattern.permute.xlu1 %v7427_v18  ;;  %v260_v56 = vpop.permute.xlu1 %259  ;;  %v665_v47 = vadd.f32 %v5484_v23, %v526_v38  ;;  %3442 = vmatprep.subr.bf16.mxu0 %v4877_v62 }
 0x1ac   :  { %1422 = vperm.xlu1 %4734, %v5663_v50   ;;  %v524_v29 = vmul.f32 %v5466_v9, %v260_v56  ;;  %v525_v51 = vmul.f32 %v5457_v4, %v260_v56  ;;  %v1596_v56 = vmul.f32 %v5489_v17, %v1371_v6  ;;  %3443 = vmatpush1.bf16.msra.mxu0 %v4875_v61  ;;  %v124_v61 = vld [vmem:[%s7337_s0 + $0x1a8] sm:$0xff] }
 0x1ad   :  { %v5990_v28 = vpack.c.bf16 %v1850_v32, %v1848_v44  ;;  %v5992_v10 = vpack.c.bf16 %v1849_v35, %v1847_v1  ;;  %v1595_v32 = vmul.f32 %v5481_v20, %v1371_v6  ;;  %404 = vperm.xlu0 %4759, %v124_v61   ;;  %v4882_v61 = vld [vmem:[#allocation7 + $0x50] ss:$28 sps:$4 sm:$0xff]  }
 0x1ae   :  { %v663_v27 = vadd.f32 %v5484_v23, %v524_v29  ;;  %v664_v59 = vadd.f32 %v5475_v14, %v525_v51  ;;  %3798 = vmatpush1.bf16.msra.mxu1 %v4882_v61 }
 0x1af   :  { %7434 = vst [vmem:[#allocation23_spill] sm:$0xff] %v5990_v28  ;;  %7435 = vst [vmem:[#allocation24_spill] sm:$0xff] %v5992_v10  ;;  %2878 = vmatprep.mubr.bf16.mxu0 %v5990_v28  ;;  %3231 = vmatprep.mubr.bf16.mxu1 %v5990_v28 }
 0x1b0   :  { %4735 = vset.pattern.permute.xlu1 %v7428_v40  ;;  %2879 = vmatmul.mubr.bf16.gmra.mrb[44].mxu0 %v5992_v10  ;;  %v841_v50 = vpop.permute.xlu1 %840 }
 0x1b1   :  { %3232 = vmatmul.mubr.bf16.gmra.mrb[44].mxu1 %v5992_v10  ;;  %v1065_v1 = vmul.f32 %v5461_v7, %v841_v50  ;;  %v1066_v63 = vmul.f32 %v5471_v11, %v841_v50  ;;  %329 = vperm.xlu1 %4735, %v5749_v53   ;;  %v7436_v50 = vmov 1   ;;  %v6020_v10 = vpop.permute.xlu0 %1386 }
 0x1b2   :  { %3799 = vmatprep.subr.bf16.mxu1 %v7428_v40 }
 0x1b3   :  { %v1193_v44 = vadd.f32 %v1065_v1, %v663_v27  ;;  %v1194_v35 = vadd.f32 %v1066_v63, %v664_v59 }
 0x1b4   :  { %v845_v34 = vpop.permute.xlu1 %844 }
 0x1b5   :  { %4736 = vset.pattern.permute.xlu1 %v7436_v50  ;;  %v1067_v29 = vmul.f32 %v5461_v7, %v845_v34  ;;  %v1068_v51 = vmul.f32 %v5471_v11, %v845_v34  ;;  %v1723_v38 = vadd.f32 %v1595_v32, %v1193_v44  ;;  %v1724_v1 = vadd.f32 %v1596_v56, %v1194_v35  ;;  %v6026_v28 = vpop.permute.xlu0 %1394 }
 0x1b6   :  { %896 = vperm.xlu1 %4736, %v5749_v53  }
 0x1b7   :  { %v1195_v63 = vadd.f32 %v1067_v29, %v665_v47  ;;  %v1196_v27 = vadd.f32 %v1068_v51, %v666_v21  ;;  %v1851_v62 = vmax.f32 %v1723_v38, 0.0  ;;  %v1852_v52 = vmax.f32 %v1724_v1, 0.0 }
 0x1b8   :  { %v530_v38 = vmul.f32 %v5466_v9, %v5785_v39 }
 0x1b9   :  { %v1375_v6 = vpop.permute.xlu1 %1374  ;;  %v6041_v51 = vpop.permute.xlu0 %1402 }
 0x1ba   :  { %v1597_v19 = vmul.f32 %v5481_v20, %v1375_v6  ;;  %v1598_v59 = vmul.f32 %v5489_v17, %v1375_v6  ;;  %900 = vperm.xlu1 %4736, %v5674_v16  }
 0x1bc   :  { %v1725_v34 = vadd.f32 %v1597_v19, %v1195_v63  ;;  %v1726_v53 = vadd.f32 %v1598_v59, %v1196_v27  ;;  %v126_v63 = vld [vmem:[%s7337_s0 + $0x1b8] sm:$0xff]  ;;  %v531_v27 = vmul.f32 %v5457_v4, %v5785_v39  ;;  %v4879_v19 = vld [vmem:[#allocation7 + $0x48] ss:$28 sps:$4 sm:$0xff]   ;;  %v1599_v39 = vmul.f32 %v5481_v20, %v6002_v46 }
 0x1bd   :  { %414 = vperm.xlu0 %4759, %v126_v63   ;;  %v4881_v59 = vld [vmem:[#allocation7 + $0x4c] ss:$28 sps:$4 sm:$0xff]   ;;  %v6068_v63 = vpop.permute.xlu0 %1410 }
 0x1be   :  { %v1853_v44 = vmax.f32 %v1725_v34, 0.0  ;;  %v1854_v35 = vmax.f32 %v1726_v53, 0.0  ;;  %4737 = vset.pattern.permute.xlu1 %v7427_v18  ;;  %v270_v47 = vpop.permute.xlu1 %269  ;;  %3444 = vmatprep.subr.bf16.mxu0 %v4881_v59 }
 0x1bf   :  { %1430 = vperm.xlu1 %4737, %v5674_v16   ;;  %v528_v21 = vmul.f32 %v5466_v9, %v270_v47  ;;  %v529_v29 = vmul.f32 %v5457_v4, %v270_v47  ;;  %v1600_v47 = vmul.f32 %v5489_v17, %v6002_v46  ;;  %3445 = vmatpush1.bf16.msra.mxu0 %v4879_v19 }
 0x1c0   :  { %v6033_v32 = vpack.c.bf16 %v1854_v35, %v1852_v52  ;;  %v6035_v56 = vpack.c.bf16 %v1853_v44, %v1851_v62  ;;  %v2139_v62 = vsub.s32 3, %v5421_v49  ;;  %v669_v52 = vadd.f32 %v5484_v23, %v530_v38  ;;  %v128_v35 = vld [vmem:[%s7337_s0 + $0x1c8] sm:$0xff] }
 0x1c1   :  { %v667_v34 = vadd.f32 %v5484_v23, %v528_v21  ;;  %v668_v53 = vadd.f32 %v5475_v14, %v529_v29  ;;  %v2123_v29 = vld [vmem:[#allocation8] sm:$0xff]  ;;  %v670_v38 = vadd.f32 %v5475_v14, %v531_v27  ;;  %424 = vperm.xlu0 %4759, %v128_v35  }
 0x1c2   :  { %7437 = vst [vmem:[#allocation25_spill] sm:$0xff] %v6033_v32  ;;  %7438 = vst [vmem:[#allocation26_spill] sm:$0xff] %v6035_v56  ;;  %2888 = vmatprep.mubr.bf16.mxu0 %v6033_v32  ;;  %3241 = vmatprep.mubr.bf16.mxu1 %v6033_v32  ;;  %v6075_v46 = vrot.slane %v2123_v29, %v5434_v54 }
 0x1c3   :  { %4738 = vset.pattern.permute.xlu1 %v7428_v40  ;;  %2889 = vmatmul.mubr.bf16.gmra.mrb[48].mxu0 %v6035_v56  ;;  %v849_v16 = vpop.permute.xlu1 %848 }
 0x1c4   :  { %3242 = vmatmul.mubr.bf16.gmra.mrb[48].mxu1 %v6035_v56  ;;  %v1069_v1 = vmul.f32 %v5461_v7, %v849_v16  ;;  %v1070_v6 = vmul.f32 %v5471_v11, %v849_v16  ;;  %339 = vperm.xlu1 %4738, %v5777_v43   ;;  %v7440_v56 = vld [vmem:[#allocation16_spill] sm:$0xff] }
 0x1c5   :  { %v6082_v32 = vrot.slane %v2123_v29, %v7440_v56 }
 0x1c6   :  { %v1197_v21 = vadd.f32 %v1069_v1, %v667_v34  ;;  %v1198_v16 = vadd.f32 %v1070_v6, %v668_v53  ;;  %v7439_v1 = vld [vmem:[#allocation17_spill] sm:$0xff] }
 0x1c7   :  { %v853_v44 = vpop.permute.xlu1 %852  ;;  %v6078_v6 = vrot.slane %v2123_v29, %v7439_v1 }
 0x1c8   :  { %4739 = vset.pattern.permute.xlu1 %v7436_v50  ;;  %v1071_v59 = vmul.f32 %v5461_v7, %v853_v44  ;;  %v1072_v49 = vmul.f32 %v5471_v11, %v853_v44  ;;  %v1727_v34 = vadd.f32 %v1599_v39, %v1197_v21  ;;  %v1728_v53 = vadd.f32 %v1600_v47, %v1198_v16  ;;  %v6092_v39 = vpop.permute.xlu0 %1418 }
 0x1c9   :  { %904 = vperm.xlu1 %4739, %v5777_v43   ;;  %v6084_v44 = vrot.slane %v2123_v29, %v2139_v62  ;;  %v130_v43 = vld [vmem:[%s7337_s0 + $0x1d8] sm:$0xff] }
 0x1ca   :  { %v1199_v19 = vadd.f32 %v1071_v59, %v669_v52  ;;  %v1200_v54 = vadd.f32 %v1072_v49, %v670_v38  ;;  %434 = vperm.xlu0 %4759, %v130_v43   ;;  %v1855_v16 = vmax.f32 %v1727_v34, 0.0  ;;  %v1856_v29 = vmax.f32 %v1728_v53, 0.0 }
 0x1cc   :  { %v1383_v27 = vpop.permute.xlu1 %1382 }
 0x1cd   :  { %v1601_v61 = vmul.f32 %v5481_v20, %v1383_v27  ;;  %v1602_v35 = vmul.f32 %v5489_v17, %v1383_v27  ;;  %908 = vperm.xlu1 %4739, %v5688_v37  }
 0x1ce   :  { %v2770_v21 = vpop.f32.mrb[0].mxu0  ;;  %4768 = vset.pattern.permute.xlu0 %v7427_v18 }
 0x1cf   :  { %v1729_v47 = vadd.f32 %v1601_v61, %v1199_v19  ;;  %v1730_v56 = vadd.f32 %v1602_v35, %v1200_v54  ;;  %v3123_v62 = vpop.f32.mrb[0].mxu1  ;;  %v2771_v1 = vadd.f32 %v2770_v21, %v6075_v46  ;;  %v2772_v49 = vpop.f32.mrb[1].mxu0  ;;  %v125_v61 = vld [vmem:[%s7337_s0 + $0x1b0] sm:$0xff] }
 0x1d0   :  { %v3124_v52 = vadd.f32 %v3123_v62, %v6078_v6  ;;  %v3125_v38 = vpop.f32.mrb[1].mxu1  ;;  %v2773_v27 = vadd.f32 %v2772_v49, %v6082_v32  ;;  %v2774_v12 = vpop.f32.mrb[2].mxu0  ;;  %1490 = vperm.xlu0 %4768, %v125_v61   ;;  %v4886_v61 = vld [vmem:[#allocation7 + $0x88] ss:$28 sps:$4 sm:$0xff]  }
 0x1d1   :  { %v1857_v59 = vmax.f32 %v1729_v47, 0.0  ;;  %v1858_v36 = vmax.f32 %v1730_v56, 0.0  ;;  %v3126_v22 = vadd.f32 %v3125_v38, %v6084_v44  ;;  %v3127_v43 = vpop.f32.mrb[2].mxu1  ;;  %4740 = vset.pattern.permute.xlu1 %v7427_v18  ;;  %4084 = vst [vmem:[#allocation10] sm:$0xff] %v2771_v1  ;;  %v2775_v34 = vadd.f32 %v2774_v12, %v6075_v46  ;;  %v2776_v19 = vpop.f32.mrb[3].mxu0  ;;  %3800 = vmatpush1.bf16.msra.mxu1 %v4886_v61  ;;  %v4941_v61 = vld [vmem:[%s7337_s0 + $0x158] sm:$0xff] }
 0x1d2   :  { %4086 = vst [vmem:[#allocation10 + $0x10] sm:$0xff] %v3124_v52  ;;  %v3128_v53 = vadd.f32 %v3127_v43, %v6078_v6  ;;  %v3129_v54 = vpop.f32.mrb[3].mxu1  ;;  %1438 = vperm.xlu1 %4740, %v5688_v37   ;;  %4085 = vst [vmem:[#allocation10 + $0x8] sm:$0xff] %v2773_v27  ;;  %v2777_v35 = vadd.f32 %v2776_v19, %v6082_v32  ;;  %v280_v56 = vpop.permute.xlu1 %279  ;;  %v4883_v38 = vld [vmem:[#allocation7 + $0x80] ss:$28 sps:$4 sm:$0xff]   ;;  %3801 = vmatprep.subr.bf16.mxu1 %v7428_v40 }
 0x1d3   :  { %4087 = vst [vmem:[#allocation10 + $0x18] sm:$0xff] %v3126_v22  ;;  %v3130_v47 = vadd.f32 %v3129_v54, %v6084_v44  ;;  %v6108_v12 = vpack.c.bf16 %v1858_v36, %v1856_v29  ;;  %v6110_v21 = vpack.c.bf16 %v1857_v59, %v1855_v16  ;;  %4091 = vst [vmem:[#allocation10 + $0x38] sm:$0xff] %v2775_v34  ;;  %v285_v22 = vpop.permute.xlu0 %284  ;;  %v4885_v59 = vld [vmem:[#allocation7 + $0x84] ss:$28 sps:$4 sm:$0xff]  }
 0x1d4   :  { %4093 = vst [vmem:[#allocation10 + $0x48] sm:$0xff] %v3128_v53  ;;  %4092 = vst [vmem:[#allocation10 + $0x40] sm:$0xff] %v2777_v35  ;;  %v532_v37 = vmul.f32 %v5466_v9, %v280_v56  ;;  %v533_v36 = vmul.f32 %v5457_v4, %v280_v56  ;;  %v534_v19 = vmul.f32 %v5466_v9, %v285_v22  ;;  %3446 = vmatprep.subr.bf16.mxu0 %v4885_v59 }
 0x1d5   :  { %7441 = vst [vmem:[#allocation17_spill] sm:$0xff] %v6108_v12  ;;  %7442 = vst [vmem:[#allocation16_spill] sm:$0xff] %v6110_v21  ;;  %2898 = vmatprep.mubr.bf16.mxu0 %v6108_v12  ;;  %3251 = vmatprep.mubr.bf16.mxu1 %v6108_v12  ;;  %v535_v56 = vmul.f32 %v5457_v4, %v285_v22 }
 0x1d6   :  { %4094 = vst [vmem:[#allocation10 + $0x50] sm:$0xff] %v3130_v47  ;;  %4741 = vset.pattern.permute.xlu1 %v7428_v40  ;;  %2899 = vmatmul.mubr.bf16.gmra.mrb[52].mxu0 %v6110_v21  ;;  %v2780_v62 = vpop.f32.mrb[4].mxu0  ;;  %v857_v52 = vpop.permute.xlu1 %856  ;;  %v671_v35 = vadd.f32 %v5484_v23, %v532_v37  ;;  %v1603_v37 = vmul.f32 %v5481_v20, %v6020_v10 }
 0x1d7   :  { %v3133_v16 = vpop.f32.mrb[4].mxu1  ;;  %3252 = vmatmul.mubr.bf16.gmra.mrb[52].mxu1 %v6110_v21  ;;  %349 = vperm.xlu1 %4741, %v5820_v2   ;;  %v2781_v29 = vadd.f32 %v2780_v62, %v6075_v46  ;;  %v2782_v49 = vpop.f32.mrb[5].mxu0  ;;  %v1073_v27 = vmul.f32 %v5461_v7, %v857_v52  ;;  %v1074_v43 = vmul.f32 %v5471_v11, %v857_v52 }
 0x1d8   :  { %v3134_v1 = vadd.f32 %v3133_v16, %v6078_v6  ;;  %v2783_v34 = vadd.f32 %v2782_v49, %v6082_v32  ;;  %v3135_v53 = vpop.f32.mrb[5].mxu1  ;;  %v2784_v54 = vpop.f32.mrb[6].mxu0  ;;  %v672_v52 = vadd.f32 %v5475_v14, %v533_v36  ;;  %3447 = vmatpush1.bf16.msra.mxu0 %v4883_v38  ;;  %v1604_v36 = vmul.f32 %v5489_v17, %v6020_v10 }
 0x1d9   :  { %4098 = vst [vmem:[#allocation10 + $0x70] sm:$0xff] %v2781_v29  ;;  %v3136_v47 = vadd.f32 %v3135_v53, %v6084_v44  ;;  %v2785_v62 = vadd.f32 %v2784_v54, %v6075_v46  ;;  %v3137_v16 = vpop.f32.mrb[6].mxu1  ;;  %v2786_v21 = vpop.f32.mrb[7].mxu0  ;;  %v1201_v29 = vadd.f32 %v1073_v27, %v671_v35  ;;  %v127_v27 = vld [vmem:[%s7337_s0 + $0x1c0] sm:$0xff] }
 0x1da   :  { %4100 = vst [vmem:[#allocation10 + $0x80] sm:$0xff] %v3134_v1  ;;  %4099 = vst [vmem:[#allocation10 + $0x78] sm:$0xff] %v2783_v34  ;;  %v3138_v49 = vadd.f32 %v3137_v16, %v6078_v6  ;;  %v2787_v12 = vadd.f32 %v2786_v21, %v6082_v32  ;;  %v3139_v25 = vpop.f32.mrb[7].mxu1  ;;  %v861_v1 = vpop.permute.xlu1 %860  ;;  %v1202_v59 = vadd.f32 %v1074_v43, %v672_v52  ;;  %1498 = vperm.xlu0 %4768, %v127_v27  }
 0x1db   :  { %4742 = vset.pattern.permute.xlu1 %v7436_v50  ;;  %4101 = vst [vmem:[#allocation10 + $0x88] sm:$0xff] %v3136_v47  ;;  %4105 = vst [vmem:[#allocation10 + $0xa8] sm:$0xff] %v2785_v62  ;;  %v3140_v22 = vadd.f32 %v3139_v25, %v6084_v44  ;;  %v673_v21 = vadd.f32 %v5484_v23, %v534_v19  ;;  %v1075_v34 = vmul.f32 %v5461_v7, %v861_v1 }
 0x1dc   :  { %912 = vperm.xlu1 %4742, %v5820_v2   ;;  %4107 = vst [vmem:[#allocation10 + $0xb8] sm:$0xff] %v3138_v49  ;;  %4106 = vst [vmem:[#allocation10 + $0xb0] sm:$0xff] %v2787_v12  ;;  %v674_v25 = vadd.f32 %v5475_v14, %v535_v56  ;;  %v1076_v2 = vmul.f32 %v5471_v11, %v861_v1  ;;  %v1731_v43 = vadd.f32 %v1603_v37, %v1201_v29 }
 0x1dd   :  { %4108 = vst [vmem:[#allocation10 + $0xc0] sm:$0xff] %v3140_v22  ;;  %v1732_v35 = vadd.f32 %v1604_v36, %v1202_v59  ;;  %v1203_v47 = vadd.f32 %v1075_v34, %v673_v21  ;;  %v4887_v34 = vld [vmem:[#allocation7 + $0xb8] ss:$28 sps:$4 sm:$0xff]  }
 0x1de   :  { %v2790_v10 = vpop.f32.mrb[8].mxu0  ;;  %v1204_v49 = vadd.f32 %v1076_v2, %v674_v25 }
 0x1df   :  { %v3143_v38 = vpop.f32.mrb[8].mxu1  ;;  %v2791_v12 = vadd.f32 %v2790_v10, %v6075_v46  ;;  %v2792_v19 = vpop.f32.mrb[9].mxu0  ;;  %v4889_v10 = vld [vmem:[#allocation7 + $0xbc] ss:$28 sps:$4 sm:$0xff]  }
 0x1e0   :  { %v3144_v53 = vadd.f32 %v3143_v38, %v6078_v6  ;;  %v3145_v54 = vpop.f32.mrb[9].mxu1  ;;  %916 = vperm.xlu1 %4742, %v4941_v61   ;;  %v2793_v56 = vadd.f32 %v2792_v19, %v6082_v32  ;;  %v1391_v16 = vpop.permute.xlu1 %1390  ;;  %3448 = vmatprep.subr.bf16.mxu0 %v4889_v10  ;;  %v1860_v19 = vmax.f32 %v1732_v35, 0.0 }
 0x1e1   :  { %v3146_v62 = vadd.f32 %v3145_v54, %v6084_v44  ;;  %v2794_v52 = vpop.f32.mrb[10].mxu0  ;;  %4112 = vst [vmem:[#allocation10 + $0xe0] sm:$0xff] %v2791_v12  ;;  %v1605_v37 = vmul.f32 %v5481_v20, %v1391_v16  ;;  %v1606_v29 = vmul.f32 %v5489_v17, %v1391_v16  ;;  %v3147_v1 = vpop.f32.mrb[10].mxu1  ;;  %3449 = vmatpush1.bf16.msra.mxu0 %v4887_v34 }
 0x1e2   :  { %4114 = vst [vmem:[#allocation10 + $0xf0] sm:$0xff] %v3144_v53  ;;  %v2795_v22 = vadd.f32 %v2794_v52, %v6075_v46  ;;  %v2796_v27 = vpop.f32.mrb[11].mxu0  ;;  %4113 = vst [vmem:[#allocation10 + $0xe8] sm:$0xff] %v2793_v56  ;;  %v3148_v36 = vadd.f32 %v3147_v1, %v6078_v6  ;;  %v3149_v21 = vpop.f32.mrb[11].mxu1  ;;  %v1859_v53 = vmax.f32 %v1731_v43, 0.0 }
 0x1e3   :  { %4115 = vst [vmem:[#allocation10 + $0xf8] sm:$0xff] %v3146_v62  ;;  %v2797_v59 = vadd.f32 %v2796_v27, %v6082_v32  ;;  %v1733_v25 = vadd.f32 %v1605_v37, %v1203_v47  ;;  %v1734_v2 = vadd.f32 %v1606_v29, %v1204_v49  ;;  %v3150_v38 = vadd.f32 %v3149_v21, %v6084_v44  ;;  %v295_v62 = vpop.permute.xlu0 %294 }
 0x1e4   :  { %4119 = vst [vmem:[#allocation10 + $0x118] sm:$0xff] %v2795_v22  ;;  %4743 = vset.pattern.permute.xlu1 %v7427_v18  ;;  %4121 = vst [vmem:[#allocation10 + $0x128] sm:$0xff] %v3148_v36  ;;  %v290_v12 = vpop.permute.xlu1 %289  ;;  %v539_v36 = vmul.f32 %v5457_v4, %v295_v62 }
 0x1e5   :  { %4120 = vst [vmem:[#allocation10 + $0x120] sm:$0xff] %v2797_v59  ;;  %1446 = vperm.xlu1 %4743, %v4941_v61   ;;  %v1861_v54 = vmax.f32 %v1733_v25, 0.0  ;;  %v1862_v56 = vmax.f32 %v1734_v2, 0.0  ;;  %4122 = vst [vmem:[#allocation10 + $0x130] sm:$0xff] %v3150_v38  ;;  %v536_v47 = vmul.f32 %v5466_v9, %v290_v12  ;;  %v537_v16 = vmul.f32 %v5457_v4, %v290_v12  ;;  %v4890_v25 = vld [vmem:[#allocation7 + $0xc0] ss:$28 sps:$4 sm:$0xff]  }
 0x1e6   :  { %v538_v61 = vmul.f32 %v5466_v9, %v295_v62  ;;  %3802 = vmatpush1.bf16.msra.mxu1 %v4890_v25 }
 0x1e7   :  { %v6164_v52 = vpack.c.bf16 %v1862_v56, %v1860_v19  ;;  %v6166_v49 = vpack.c.bf16 %v1861_v54, %v1859_v53  ;;  %v675_v2 = vadd.f32 %v5484_v23, %v536_v47  ;;  %v676_v38 = vadd.f32 %v5475_v14, %v537_v16  ;;  %3803 = vmatprep.subr.bf16.mxu1 %v7428_v40 }
 0x1e8   :  { %v1607_v56 = vmul.f32 %v5481_v20, %v6026_v28 }
 0x1e9   :  { %7443 = vst [vmem:[#allocation27_spill] sm:$0xff] %v6166_v49  ;;  %4744 = vset.pattern.permute.xlu1 %v7428_v40  ;;  %v865_v37 = vpop.permute.xlu1 %864  ;;  %2908 = vmatprep.mubr.bf16.mxu0 %v6164_v52 }
 0x1ea   :  { %v2800_v43 = vpop.f32.mrb[12].mxu0  ;;  %3261 = vmatprep.mubr.bf16.mxu1 %v6164_v52  ;;  %v1077_v35 = vmul.f32 %v5461_v7, %v865_v37  ;;  %v1078_v29 = vmul.f32 %v5471_v11, %v865_v37  ;;  %v3153_v1 = vpop.f32.mrb[12].mxu1  ;;  %2909 = vmatmul.mubr.bf16.gmra.mrb[56].mxu0 %v6166_v49 }
 0x1eb   :  { %v2801_v22 = vadd.f32 %v2800_v43, %v6075_v46  ;;  %v2802_v27 = vpop.f32.mrb[13].mxu0  ;;  %3262 = vmatmul.mubr.bf16.gmra.mrb[56].mxu1 %v6166_v49  ;;  %v3154_v59 = vadd.f32 %v3153_v1, %v6078_v6  ;;  %v3155_v34 = vpop.f32.mrb[13].mxu1  ;;  %359 = vperm.xlu1 %4744, %v5859_v33   ;;  %v1608_v43 = vmul.f32 %v5489_v17, %v6026_v28  ;;  %v129_v28 = vld [vmem:[%s7337_s0 + $0x1d0] sm:$0xff]  ;;  %v4910_v49 = vld [vmem:[#allocation7 + $0x1d8] ss:$28 sps:$4 sm:$0xff]  }
 0x1ec   :  { %v2803_v21 = vadd.f32 %v2802_v27, %v6082_v32  ;;  %v2804_v10 = vpop.f32.mrb[14].mxu0  ;;  %v3156_v12 = vadd.f32 %v3155_v34, %v6084_v44  ;;  %v3157_v19 = vpop.f32.mrb[14].mxu1  ;;  %v1206_v1 = vadd.f32 %v1078_v29, %v676_v38  ;;  %v677_v27 = vadd.f32 %v5484_v23, %v538_v61  ;;  %1506 = vperm.xlu0 %4768, %v129_v28  }
 0x1ed   :  { %4126 = vst [vmem:[#allocation10 + $0x150] sm:$0xff] %v2801_v22  ;;  %v2805_v53 = vadd.f32 %v2804_v10, %v6075_v46  ;;  %v2806_v54 = vpop.f32.mrb[15].mxu0  ;;  %4128 = vst [vmem:[#allocation10 + $0x160] sm:$0xff] %v3154_v59  ;;  %v3158_v62 = vadd.f32 %v3157_v19, %v6078_v6  ;;  %v869_v37 = vpop.permute.xlu1 %868  ;;  %v1205_v22 = vadd.f32 %v1077_v35, %v675_v2  ;;  %v4942_v19 = vld [vmem:[%s7337_s0 + $0x168] sm:$0xff] }
 0x1ee   :  { %4127 = vst [vmem:[#allocation10 + $0x158] sm:$0xff] %v2803_v21  ;;  %v2807_v47 = vadd.f32 %v2806_v54, %v6082_v32  ;;  %v3159_v16 = vpop.f32.mrb[15].mxu1  ;;  %4129 = vst [vmem:[#allocation10 + $0x168] sm:$0xff] %v3156_v12  ;;  %v678_v59 = vadd.f32 %v5475_v14, %v539_v36  ;;  %v1079_v21 = vmul.f32 %v5461_v7, %v869_v37 }
 0x1ef   :  { %4133 = vst [vmem:[#allocation10 + $0x188] sm:$0xff] %v2805_v53  ;;  %4135 = vst [vmem:[#allocation10 + $0x198] sm:$0xff] %v3158_v62  ;;  %v1080_v34 = vmul.f32 %v5471_v11, %v869_v37  ;;  %v3160_v10 = vadd.f32 %v3159_v16, %v6084_v44  ;;  %4745 = vset.pattern.permute.xlu1 %v7436_v50  ;;  %v1735_v61 = vadd.f32 %v1607_v56, %v1205_v22  ;;  %v305_v22 = vpop.permute.xlu0 %304 }
 0x1f0   :  { %4134 = vst [vmem:[#allocation10 + $0x190] sm:$0xff] %v2807_v47  ;;  %920 = vperm.xlu1 %4745, %v5859_v33   ;;  %v1736_v35 = vadd.f32 %v1608_v43, %v1206_v1  ;;  %v1207_v36 = vadd.f32 %v1079_v21, %v677_v27  ;;  %v4893_v47 = vld [vmem:[#allocation7 + $0xf4] ss:$28 sps:$4 sm:$0xff]  }
 0x1f1   :  { %4136 = vst [vmem:[#allocation10 + $0x1a0] sm:$0xff] %v3160_v10  ;;  %v1208_v25 = vadd.f32 %v1080_v34, %v678_v59  ;;  %v1863_v54 = vmax.f32 %v1735_v61, 0.0  ;;  %v4891_v1 = vld [vmem:[#allocation7 + $0xf0] ss:$28 sps:$4 sm:$0xff]   ;;  %v4894_v27 = vld [vmem:[#allocation7 + $0xf8] ss:$28 sps:$4 sm:$0xff]   ;;  %3450 = vmatprep.subr.bf16.mxu0 %v4893_v47  ;;  %v542_v10 = vmul.f32 %v5466_v9, %v305_v22 }
 0x1f2   :  { %v1399_v29 = vpop.permute.xlu1 %1398  ;;  %v1864_v62 = vmax.f32 %v1736_v35, 0.0  ;;  %3451 = vmatpush1.bf16.msra.mxu0 %v4891_v1  ;;  %3804 = vmatpush1.bf16.msra.mxu1 %v4894_v27 }
 0x1f3   :  { %v1609_v2 = vmul.f32 %v5481_v20, %v1399_v29  ;;  %v1610_v38 = vmul.f32 %v5489_v17, %v1399_v29  ;;  %3805 = vmatprep.subr.bf16.mxu1 %v7428_v40 }
 0x1f4   :  { %924 = vperm.xlu1 %4745, %v4942_v19  }
 0x1f5   :  { %v1737_v12 = vadd.f32 %v1609_v2, %v1207_v36  ;;  %v1738_v53 = vadd.f32 %v1610_v38, %v1208_v25  ;;  %v543_v2 = vmul.f32 %v5457_v4, %v305_v22  ;;  %v1611_v22 = vmul.f32 %v5481_v20, %v6041_v51 }
 0x1f7   :  { %v1865_v33 = vmax.f32 %v1737_v12, 0.0  ;;  %v1866_v37 = vmax.f32 %v1738_v53, 0.0  ;;  %v300_v56 = vpop.permute.xlu1 %299 }
 0x1f8   :  { %4746 = vset.pattern.permute.xlu1 %v7427_v18  ;;  %v540_v59 = vmul.f32 %v5466_v9, %v300_v56  ;;  %v541_v21 = vmul.f32 %v5457_v4, %v300_v56 }
 0x1f9   :  { %v6208_v16 = vpack.c.bf16 %v1866_v37, %v1864_v62  ;;  %v6210_v43 = vpack.c.bf16 %v1865_v33, %v1863_v54  ;;  %1454 = vperm.xlu1 %4746, %v4942_v19  }
 0x1fa   :  { %v679_v54 = vadd.f32 %v5484_v23, %v540_v59  ;;  %v680_v62 = vadd.f32 %v5475_v14, %v541_v21 }
 0x1fb   :  { %7444 = vst [vmem:[#allocation28_spill] sm:$0xff] %v6208_v16  ;;  %7445 = vst [vmem:[#allocation29_spill] sm:$0xff] %v6210_v43  ;;  %2918 = vmatprep.mubr.bf16.mxu0 %v6208_v16  ;;  %3271 = vmatprep.mubr.bf16.mxu1 %v6208_v16  ;;  %v4906_v16 = vld [vmem:[#allocation7 + $0x1a0] ss:$28 sps:$4 sm:$0xff]  }
 0x1fc   :  { %2919 = vmatmul.mubr.bf16.gmra.mrb[60].mxu0 %v6210_v43  ;;  %3272 = vmatmul.mubr.bf16.gmra.mrb[60].mxu1 %v6210_v43  ;;  %v873_v34 = vpop.permute.xlu1 %872  ;;  %v4905_v43 = vld [vmem:[#allocation7 + $0x19c] ss:$28 sps:$4 sm:$0xff]  }
 0x1fd   :  { %v2810_v28 = vpop.f32.mrb[16].mxu0  ;;  %v1081_v61 = vmul.f32 %v5461_v7, %v873_v34  ;;  %v1082_v35 = vmul.f32 %v5471_v11, %v873_v34  ;;  %v3163_v36 = vpop.f32.mrb[16].mxu1  ;;  %4747 = vset.pattern.permute.xlu1 %v7428_v40 }
 0x1fe   :  { %v2811_v29 = vadd.f32 %v2810_v28, %v6075_v46  ;;  %v2812_v25 = vpop.f32.mrb[17].mxu0  ;;  %v3164_v38 = vadd.f32 %v3163_v36, %v6078_v6  ;;  %v3165_v53 = vpop.f32.mrb[17].mxu1  ;;  %369 = vperm.xlu1 %4747, %v5898_v57   ;;  %v1612_v57 = vmul.f32 %v5489_v17, %v6041_v51  ;;  %v682_v36 = vadd.f32 %v5475_v14, %v543_v2  ;;  %v4943_v51 = vld [vmem:[%s7337_s0 + $0x170] sm:$0xff] }
 0x1ff   :  { %v2813_v12 = vadd.f32 %v2812_v25, %v6082_v32  ;;  %v2814_v19 = vpop.f32.mrb[18].mxu0  ;;  %v3166_v33 = vadd.f32 %v3165_v53, %v6084_v44  ;;  %v3167_v56 = vpop.f32.mrb[18].mxu1  ;;  %v1209_v34 = vadd.f32 %v1081_v61, %v679_v54  ;;  %v1210_v28 = vadd.f32 %v1082_v35, %v680_v62 }
 0x200   :  { %4140 = vst [vmem:[#allocation10 + $0x1c0] sm:$0xff] %v2811_v29  ;;  %v2815_v37 = vadd.f32 %v2814_v19, %v6075_v46  ;;  %v2816_v47 = vpop.f32.mrb[19].mxu0  ;;  %4142 = vst [vmem:[#allocation10 + $0x1d0] sm:$0xff] %v3164_v38  ;;  %v3168_v1 = vadd.f32 %v3167_v56, %v6078_v6  ;;  %v877_v27 = vpop.permute.xlu1 %876  ;;  %v681_v29 = vadd.f32 %v5484_v23, %v542_v10  ;;  %v131_v10 = vld [vmem:[%s7337_s0 + $0x1e0] sm:$0xff]  ;;  %v4944_v56 = vld [vmem:[%s7337_s0 + $0x178] sm:$0xff] }
 0x201   :  { %4141 = vst [vmem:[#allocation10 + $0x1c8] sm:$0xff] %v2813_v12  ;;  %v2817_v59 = vadd.f32 %v2816_v47, %v6082_v32  ;;  %v3169_v21 = vpop.f32.mrb[19].mxu1  ;;  %4143 = vst [vmem:[#allocation10 + $0x1d8] sm:$0xff] %v3166_v33  ;;  %v1083_v25 = vmul.f32 %v5461_v7, %v877_v27  ;;  %v1084_v38 = vmul.f32 %v5471_v11, %v877_v27  ;;  %1514 = vperm.xlu0 %4768, %v131_v10  }
 0x202   :  { %4147 = vst [vmem:[#allocation10 + $0x1f8] sm:$0xff] %v2815_v37  ;;  %4149 = vst [vmem:[#allocation10 + $0x208] sm:$0xff] %v3168_v1  ;;  %v3170_v12 = vadd.f32 %v3169_v21, %v6084_v44  ;;  %4749 = vset.pattern.permute.xlu1 %v7436_v50  ;;  %v1739_v61 = vadd.f32 %v1611_v22, %v1209_v34  ;;  %v1740_v35 = vadd.f32 %v1612_v57, %v1210_v28  ;;  %v315_v21 = vpop.permute.xlu0 %314  ;;  %v4895_v57 = vld [vmem:[#allocation7 + $0x128] ss:$28 sps:$4 sm:$0xff]  }
 0x203   :  { %4148 = vst [vmem:[#allocation10 + $0x200] sm:$0xff] %v2817_v59  ;;  %928 = vperm.xlu1 %4749, %v4943_v51   ;;  %v1211_v53 = vadd.f32 %v1083_v25, %v681_v29  ;;  %v1212_v19 = vadd.f32 %v1084_v38, %v682_v36  ;;  %v4897_v34 = vld [vmem:[#allocation7 + $0x12c] ss:$28 sps:$4 sm:$0xff]   ;;  %v132_v25 = vld [vmem:[%s7337_s0 + $0x1e8] sm:$0xff] }
 0x204   :  { %4150 = vst [vmem:[#allocation10 + $0x210] sm:$0xff] %v3170_v12  ;;  %v1867_v47 = vmax.f32 %v1739_v61, 0.0  ;;  %v1868_v1 = vmax.f32 %v1740_v35, 0.0  ;;  %3452 = vmatprep.subr.bf16.mxu0 %v4897_v34  ;;  %v4898_v36 = vld [vmem:[#allocation7 + $0x130] ss:$28 sps:$4 sm:$0xff]   ;;  %v546_v61 = vmul.f32 %v5466_v9, %v315_v21 }
 0x205   :  { %v1407_v2 = vpop.permute.xlu1 %1406  ;;  %4773 = vset.pattern.permute.xlu0 %v7428_v40  ;;  %3453 = vmatpush1.bf16.msra.mxu0 %v4895_v57 }
 0x206   :  { %v1613_v54 = vmul.f32 %v5481_v20, %v1407_v2  ;;  %v1614_v62 = vmul.f32 %v5489_v17, %v1407_v2  ;;  %v6268_v51 = vpop.permute.xlu0 %324  ;;  %3806 = vmatpush1.bf16.msra.mxu1 %v4898_v36  ;;  %444 = vperm.xlu0 %4773, %v132_v25   ;;  %v1615_v25 = vmul.f32 %v5481_v20, %v6068_v63 }
 0x207   :  { %932 = vperm.xlu1 %4749, %v4944_v56   ;;  %3807 = vmatprep.subr.bf16.mxu1 %v7428_v40 }
 0x208   :  { %v1741_v33 = vadd.f32 %v1613_v54, %v1211_v53  ;;  %v1742_v37 = vadd.f32 %v1614_v62, %v1212_v19 }
 0x20a   :  { %v1869_v22 = vmax.f32 %v1741_v33, 0.0  ;;  %v1870_v27 = vmax.f32 %v1742_v37, 0.0  ;;  %v310_v59 = vpop.permute.xlu1 %309  ;;  %v547_v33 = vmul.f32 %v5457_v4, %v315_v21 }
 0x20b   :  { %4750 = vset.pattern.permute.xlu1 %v7427_v18  ;;  %v544_v38 = vmul.f32 %v5466_v9, %v310_v59  ;;  %v545_v12 = vmul.f32 %v5457_v4, %v310_v59  ;;  %v4945_v59 = vld [vmem:[%s7337_s0 + $0x180] sm:$0xff] }
 0x20c   :  { %v6257_v28 = vpack.c.bf16 %v1870_v27, %v1868_v1  ;;  %v6259_v29 = vpack.c.bf16 %v1869_v22, %v1867_v47  ;;  %1462 = vperm.xlu1 %4750, %v4944_v56  }
 0x20d   :  { %v683_v22 = vadd.f32 %v5484_v23, %v544_v38  ;;  %v684_v27 = vadd.f32 %v5475_v14, %v545_v12 }
 0x20e   :  { %7446 = vst [vmem:[#allocation30_spill] sm:$0xff] %v6257_v28  ;;  %7447 = vst [vmem:[#allocation31_spill] sm:$0xff] %v6259_v29  ;;  %2928 = vmatprep.mubr.bf16.mxu0 %v6257_v28  ;;  %3281 = vmatprep.mubr.bf16.mxu1 %v6257_v28  ;;  %v4903_v28 = vld [vmem:[#allocation7 + $0x198] ss:$28 sps:$4 sm:$0xff]  }
 0x20f   :  { %2929 = vmatmul.mubr.bf16.gmra.mrb[64].mxu0 %v6259_v29  ;;  %3282 = vmatmul.mubr.bf16.gmra.mrb[64].mxu1 %v6259_v29  ;;  %v881_v10 = vpop.permute.xlu1 %880  ;;  %v4899_v29 = vld [vmem:[#allocation7 + $0x160] ss:$28 sps:$4 sm:$0xff]  }
 0x210   :  { %v2820_v35 = vpop.f32.mrb[20].mxu0  ;;  %v1085_v2 = vmul.f32 %v5461_v7, %v881_v10  ;;  %v1086_v53 = vmul.f32 %v5471_v11, %v881_v10  ;;  %v3173_v54 = vpop.f32.mrb[20].mxu1  ;;  %4751 = vset.pattern.permute.xlu1 %v7428_v40 }
 0x211   :  { %v2821_v19 = vadd.f32 %v2820_v35, %v6075_v46  ;;  %v2822_v62 = vpop.f32.mrb[21].mxu0  ;;  %v3174_v37 = vadd.f32 %v3173_v54, %v6078_v6  ;;  %v3175_v47 = vpop.f32.mrb[21].mxu1  ;;  %379 = vperm.xlu1 %4751, %v4945_v59  }
 0x212   :  { %v2823_v56 = vadd.f32 %v2822_v62, %v6082_v32  ;;  %v2824_v1 = vpop.f32.mrb[22].mxu0  ;;  %v3176_v21 = vadd.f32 %v3175_v47, %v6084_v44  ;;  %v3177_v34 = vpop.f32.mrb[22].mxu1  ;;  %v1213_v54 = vadd.f32 %v1085_v2, %v683_v22  ;;  %v1214_v62 = vadd.f32 %v1086_v53, %v684_v27 }
 0x213   :  { %4154 = vst [vmem:[#allocation10 + $0x230] sm:$0xff] %v2821_v19  ;;  %v2825_v57 = vadd.f32 %v2824_v1, %v6075_v46  ;;  %v2826_v36 = vpop.f32.mrb[23].mxu0  ;;  %4156 = vst [vmem:[#allocation10 + $0x240] sm:$0xff] %v3174_v37  ;;  %v3178_v38 = vadd.f32 %v3177_v34, %v6078_v6  ;;  %v885_v12 = vpop.permute.xlu1 %884  ;;  %v1616_v19 = vmul.f32 %v5489_v17, %v6068_v63  ;;  %v4901_v63 = vld [vmem:[#allocation7 + $0x164] ss:$28 sps:$4 sm:$0xff]  }
 0x214   :  { %4155 = vst [vmem:[#allocation10 + $0x238] sm:$0xff] %v2823_v56  ;;  %v2827_v10 = vadd.f32 %v2826_v36, %v6082_v32  ;;  %v3179_v35 = vpop.f32.mrb[23].mxu1  ;;  %v685_v47 = vadd.f32 %v5484_v23, %v546_v61  ;;  %4157 = vst [vmem:[#allocation10 + $0x248] sm:$0xff] %v3176_v21  ;;  %v686_v1 = vadd.f32 %v5475_v14, %v547_v33  ;;  %v6299_v36 = vpop.permute.xlu0 %334  ;;  %3454 = vmatprep.subr.bf16.mxu0 %v4901_v63 }
 0x215   :  { %4161 = vst [vmem:[#allocation10 + $0x268] sm:$0xff] %v2825_v57  ;;  %4163 = vst [vmem:[#allocation10 + $0x278] sm:$0xff] %v3178_v38  ;;  %v1087_v37 = vmul.f32 %v5461_v7, %v885_v12  ;;  %v1088_v56 = vmul.f32 %v5471_v11, %v885_v12  ;;  %v3180_v34 = vadd.f32 %v3179_v35, %v6084_v44  ;;  %4752 = vset.pattern.permute.xlu1 %v7436_v50  ;;  %v134_v57 = vld [vmem:[%s7337_s0 + $0x1f8] sm:$0xff] }
 0x216   :  { %4162 = vst [vmem:[#allocation10 + $0x270] sm:$0xff] %v2827_v10  ;;  %936 = vperm.xlu1 %4752, %v4945_v59   ;;  %v1743_v61 = vadd.f32 %v1615_v25, %v1213_v54  ;;  %v1744_v2 = vadd.f32 %v1616_v19, %v1214_v62  ;;  %3455 = vmatpush1.bf16.msra.mxu0 %v4899_v29  ;;  %v4946_v59 = vld [vmem:[%s7337_s0 + $0x188] sm:$0xff] }
 0x217   :  { %4164 = vst [vmem:[#allocation10 + $0x280] sm:$0xff] %v3180_v34  ;;  %v1215_v33 = vadd.f32 %v1087_v37, %v685_v47  ;;  %v1216_v22 = vadd.f32 %v1088_v56, %v686_v1  ;;  %454 = vperm.xlu0 %4773, %v134_v57   ;;  %v4902_v62 = vld [vmem:[#allocation7 + $0x168] ss:$28 sps:$4 sm:$0xff]   ;;  %3456 = vmatprep.subr.bf16.mxu0 %v4905_v43  ;;  %v4948_v43 = vld [vmem:[%s7337_s0 + $0x198] sm:$0xff] }
 0x218   :  { %v1415_v53 = vpop.permute.xlu1 %1414  ;;  %v6310_v25 = vpop.permute.xlu0 %344  ;;  %v1871_v29 = vmax.f32 %v1743_v61, 0.0  ;;  %v1872_v10 = vmax.f32 %v1744_v2, 0.0  ;;  %3808 = vmatpush1.bf16.msra.mxu1 %v4902_v62  ;;  %v6321_v37 = vld [vmem:[%s7337_s0 + $0x1f0] sm:$0xff] }
 0x219   :  { %v1617_v27 = vmul.f32 %v5481_v20, %v1415_v53  ;;  %v1618_v21 = vmul.f32 %v5489_v17, %v1415_v53  ;;  %v550_v53 = vmul.f32 %v5466_v9, %v6268_v51  ;;  %3809 = vmatprep.subr.bf16.mxu1 %v7428_v40 }
 0x21a   :  { %940 = vperm.xlu1 %4752, %v4946_v59   ;;  %3457 = vmatpush1.bf16.msra.mxu0 %v4903_v28 }
 0x21b   :  { %v1745_v38 = vadd.f32 %v1617_v27, %v1215_v33  ;;  %v1746_v12 = vadd.f32 %v1618_v21, %v1216_v22  ;;  %4777 = vset.pattern.permute.xlu0 %v7427_v18 }
 0x21c   :  { %1522 = vperm.xlu0 %4777, %v6321_v37   ;;  %v6328_v63 = vpop.permute.xlu0 %354  ;;  %3810 = vmatpush1.bf16.msra.mxu1 %v4906_v16 }
 0x21d   :  { %v1873_v35 = vmax.f32 %v1745_v38, 0.0  ;;  %v1874_v19 = vmax.f32 %v1746_v12, 0.0  ;;  %v320_v54 = vpop.permute.xlu1 %319  ;;  %v551_v38 = vmul.f32 %v5457_v4, %v6268_v51  ;;  %3811 = vmatprep.subr.bf16.mxu1 %v7428_v40 }
 0x21e   :  { %4753 = vset.pattern.permute.xlu1 %v7427_v18  ;;  %v548_v56 = vmul.f32 %v5466_v9, %v320_v54  ;;  %v549_v34 = vmul.f32 %v5457_v4, %v320_v54  ;;  %v4947_v54 = vld [vmem:[%s7337_s0 + $0x190] sm:$0xff] }
 0x21f   :  { %v6314_v47 = vpack.c.bf16 %v1874_v19, %v1872_v10  ;;  %v6316_v1 = vpack.c.bf16 %v1873_v35, %v1871_v29  ;;  %1470 = vperm.xlu1 %4753, %v4946_v59  }
 0x220   :  { %v687_v35 = vadd.f32 %v5484_v23, %v548_v56  ;;  %v688_v19 = vadd.f32 %v5475_v14, %v549_v34  ;;  %3812 = vmatpush1.bf16.msra.mxu1 %v4910_v49 }
 0x221   :  { %7448 = vst [vmem:[#allocation32_spill] sm:$0xff] %v6314_v47  ;;  %7449 = vst [vmem:[#allocation33_spill] sm:$0xff] %v6316_v1  ;;  %2938 = vmatprep.mubr.bf16.mxu0 %v6314_v47  ;;  %3291 = vmatprep.mubr.bf16.mxu1 %v6314_v47 }
 0x222   :  { %2939 = vmatmul.mubr.bf16.gmra.mrb[68].mxu0 %v6316_v1  ;;  %3292 = vmatmul.mubr.bf16.gmra.mrb[68].mxu1 %v6316_v1  ;;  %v889_v61 = vpop.permute.xlu1 %888 }
 0x223   :  { %v2830_v2 = vpop.f32.mrb[24].mxu0  ;;  %v1089_v33 = vmul.f32 %v5461_v7, %v889_v61  ;;  %v1090_v22 = vmul.f32 %v5471_v11, %v889_v61  ;;  %v3183_v21 = vpop.f32.mrb[24].mxu1  ;;  %4754 = vset.pattern.permute.xlu1 %v7428_v40  ;;  %3813 = vmatprep.subr.bf16.mxu1 %v7428_v40 }
 0x224   :  { %v2831_v27 = vadd.f32 %v2830_v2, %v6075_v46  ;;  %v2832_v57 = vpop.f32.mrb[25].mxu0  ;;  %v3184_v12 = vadd.f32 %v3183_v21, %v6078_v6  ;;  %v3185_v29 = vpop.f32.mrb[25].mxu1  ;;  %389 = vperm.xlu1 %4754, %v4947_v54   ;;  %v1619_v21 = vmul.f32 %v5481_v20, %v6092_v39 }
 0x225   :  { %v2833_v59 = vadd.f32 %v2832_v57, %v6082_v32  ;;  %v2834_v10 = vpop.f32.mrb[26].mxu0  ;;  %v3186_v51 = vadd.f32 %v3185_v29, %v6084_v44  ;;  %v3187_v61 = vpop.f32.mrb[26].mxu1  ;;  %v689_v29 = vadd.f32 %v5484_v23, %v550_v53  ;;  %v1217_v47 = vadd.f32 %v1089_v33, %v687_v35 }
 0x226   :  { %4168 = vst [vmem:[#allocation10 + $0x2a0] sm:$0xff] %v2831_v27  ;;  %v2835_v62 = vadd.f32 %v2834_v10, %v6075_v46  ;;  %v2836_v2 = vpop.f32.mrb[27].mxu0  ;;  %4170 = vst [vmem:[#allocation10 + $0x2b0] sm:$0xff] %v3184_v12  ;;  %v3188_v56 = vadd.f32 %v3187_v61, %v6078_v6  ;;  %v893_v34 = vpop.permute.xlu1 %892  ;;  %v1620_v27 = vmul.f32 %v5489_v17, %v6092_v39 }
 0x227   :  { %4169 = vst [vmem:[#allocation10 + $0x2a8] sm:$0xff] %v2833_v59  ;;  %v2837_v57 = vadd.f32 %v2836_v2, %v6082_v32  ;;  %v3189_v1 = vpop.f32.mrb[27].mxu1  ;;  %v1218_v10 = vadd.f32 %v1090_v22, %v688_v19  ;;  %4171 = vst [vmem:[#allocation10 + $0x2b8] sm:$0xff] %v3186_v51  ;;  %v690_v12 = vadd.f32 %v5475_v14, %v551_v38  ;;  %v6361_v39 = vpop.permute.xlu0 %364 }
 0x228   :  { %4175 = vst [vmem:[#allocation10 + $0x2d8] sm:$0xff] %v2835_v62  ;;  %4177 = vst [vmem:[#allocation10 + $0x2e8] sm:$0xff] %v3188_v56  ;;  %v1091_v59 = vmul.f32 %v5461_v7, %v893_v34  ;;  %v1092_v61 = vmul.f32 %v5471_v11, %v893_v34  ;;  %v3190_v2 = vadd.f32 %v3189_v1, %v6084_v44  ;;  %4755 = vset.pattern.permute.xlu1 %v7436_v50 }
 0x229   :  { %4176 = vst [vmem:[#allocation10 + $0x2e0] sm:$0xff] %v2837_v57  ;;  %944 = vperm.xlu1 %4755, %v4947_v54   ;;  %v1747_v53 = vadd.f32 %v1619_v21, %v1217_v47  ;;  %v1748_v33 = vadd.f32 %v1620_v27, %v1218_v10 }
 0x22a   :  { %4178 = vst [vmem:[#allocation10 + $0x2f0] sm:$0xff] %v3190_v2  ;;  %v1219_v38 = vadd.f32 %v1091_v59, %v689_v29  ;;  %v1220_v35 = vadd.f32 %v1092_v61, %v690_v12  ;;  %v554_v12 = vmul.f32 %v5466_v9, %v6299_v36 }
 0x22b   :  { %v1423_v22 = vpop.permute.xlu1 %1422  ;;  %v6370_v28 = vpop.permute.xlu0 %374  ;;  %v1875_v47 = vmax.f32 %v1747_v53, 0.0  ;;  %v1876_v54 = vmax.f32 %v1748_v33, 0.0 }
 0x22c   :  { %v1621_v19 = vmul.f32 %v5481_v20, %v1423_v22  ;;  %v1622_v51 = vmul.f32 %v5489_v17, %v1423_v22 }
 0x22d   :  { %948 = vperm.xlu1 %4755, %v4948_v43  }
 0x22e   :  { %v1749_v1 = vadd.f32 %v1621_v19, %v1219_v38  ;;  %v1750_v62 = vadd.f32 %v1622_v51, %v1220_v35  ;;  %v555_v35 = vmul.f32 %v5457_v4, %v6299_v36 }
 0x22f   :  { %v1427_v10 = vpop.permute.xlu0 %1426 }
 0x230   :  { %v1877_v16 = vmax.f32 %v1749_v1, 0.0  ;;  %v1878_v21 = vmax.f32 %v1750_v62, 0.0  ;;  %v330_v56 = vpop.permute.xlu1 %329 }
 0x231   :  { %4756 = vset.pattern.permute.xlu1 %v7427_v18  ;;  %v552_v27 = vmul.f32 %v5466_v9, %v330_v56  ;;  %v553_v29 = vmul.f32 %v5457_v4, %v330_v56 }
 0x232   :  { %v6373_v34 = vpack.c.bf16 %v1878_v21, %v1876_v54  ;;  %v6375_v57 = vpack.c.bf16 %v1877_v16, %v1875_v47  ;;  %1478 = vperm.xlu1 %4756, %v4948_v43   ;;  %v4949_v54 = vld [vmem:[%s7337_s0 + $0x1a0] sm:$0xff] }
 0x233   :  { %v691_v43 = vadd.f32 %v5484_v23, %v552_v27  ;;  %v692_v47 = vadd.f32 %v5475_v14, %v553_v29 }
 0x234   :  { %7450 = vst [vmem:[#allocation34_spill] sm:$0xff] %v6373_v34  ;;  %7451 = vst [vmem:[#allocation35_spill] sm:$0xff] %v6375_v57  ;;  %2948 = vmatprep.mubr.bf16.mxu0 %v6373_v34  ;;  %3301 = vmatprep.mubr.bf16.mxu1 %v6373_v34 }
 0x235   :  { %2949 = vmatmul.mubr.bf16.gmra.mrb[72].mxu0 %v6375_v57  ;;  %3302 = vmatmul.mubr.bf16.gmra.mrb[72].mxu1 %v6375_v57  ;;  %v897_v59 = vpop.permute.xlu1 %896  ;;  %v4909_v57 = vld [vmem:[#allocation7 + $0x1d4] ss:$28 sps:$4 sm:$0xff]  }
 0x236   :  { %v2840_v61 = vpop.f32.mrb[28].mxu0  ;;  %v1093_v2 = vmul.f32 %v5461_v7, %v897_v59  ;;  %v1094_v53 = vmul.f32 %v5471_v11, %v897_v59  ;;  %v3193_v22 = vpop.f32.mrb[28].mxu1  ;;  %4757 = vset.pattern.permute.xlu1 %v7428_v40  ;;  %v693_v59 = vadd.f32 %v5484_v23, %v554_v12  ;;  %v694_v12 = vadd.f32 %v5475_v14, %v555_v35 }
 0x237   :  { %v2841_v33 = vadd.f32 %v2840_v61, %v6075_v46  ;;  %v2842_v38 = vpop.f32.mrb[29].mxu0  ;;  %v3194_v19 = vadd.f32 %v3193_v22, %v6078_v6  ;;  %v3195_v1 = vpop.f32.mrb[29].mxu1  ;;  %399 = vperm.xlu1 %4757, %v4949_v54   ;;  %3458 = vmatprep.subr.bf16.mxu0 %v4909_v57  ;;  %v4950_v57 = vld [vmem:[%s7337_s0 + $0x1a8] sm:$0xff] }
 0x238   :  { %v2843_v51 = vadd.f32 %v2842_v38, %v6082_v32  ;;  %v2844_v62 = vpop.f32.mrb[30].mxu0  ;;  %v3196_v36 = vadd.f32 %v3195_v1, %v6084_v44  ;;  %v3197_v21 = vpop.f32.mrb[30].mxu1  ;;  %v4907_v38 = vld [vmem:[#allocation7 + $0x1d0] ss:$28 sps:$4 sm:$0xff]   ;;  %v1221_v34 = vadd.f32 %v1093_v2, %v691_v43  ;;  %v1623_v1 = vmul.f32 %v5481_v20, %v1427_v10 }
 0x239   :  { %4182 = vst [vmem:[#allocation10 + $0x310] sm:$0xff] %v2841_v33  ;;  %v2845_v16 = vadd.f32 %v2844_v62, %v6075_v46  ;;  %v2846_v56 = vpop.f32.mrb[31].mxu0  ;;  %4184 = vst [vmem:[#allocation10 + $0x320] sm:$0xff] %v3194_v19  ;;  %v3198_v27 = vadd.f32 %v3197_v21, %v6078_v6  ;;  %v901_v61 = vpop.permute.xlu1 %900  ;;  %v1222_v33 = vadd.f32 %v1094_v53, %v692_v47  ;;  %3459 = vmatpush1.bf16.msra.mxu0 %v4907_v38  ;;  %v4911_v38 = vld [vmem:[#allocation7 + $0x208] ss:$28 sps:$4 sm:$0xff]  }
 0x23a   :  { %4183 = vst [vmem:[#allocation10 + $0x318] sm:$0xff] %v2843_v51  ;;  %v2847_v29 = vadd.f32 %v2846_v56, %v6082_v32  ;;  %v3199_v22 = vpop.f32.mrb[31].mxu1  ;;  %v1624_v62 = vmul.f32 %v5489_v17, %v1427_v10  ;;  %4185 = vst [vmem:[#allocation10 + $0x328] sm:$0xff] %v3196_v36  ;;  %v1095_v19 = vmul.f32 %v5461_v7, %v901_v61 }
 0x23b   :  { %4189 = vst [vmem:[#allocation10 + $0x348] sm:$0xff] %v2845_v16  ;;  %4191 = vst [vmem:[#allocation10 + $0x358] sm:$0xff] %v3198_v27  ;;  %v1096_v51 = vmul.f32 %v5471_v11, %v901_v61  ;;  %v3200_v21 = vadd.f32 %v3199_v22, %v6084_v44  ;;  %4758 = vset.pattern.permute.xlu1 %v7436_v50  ;;  %v1751_v10 = vadd.f32 %v1623_v1, %v1221_v34  ;;  %v4913_v22 = vld [vmem:[#allocation7 + $0x20c] ss:$28 sps:$4 sm:$0xff]  }
 0x23c   :  { %4190 = vst [vmem:[#allocation10 + $0x350] sm:$0xff] %v2847_v29  ;;  %952 = vperm.xlu1 %4758, %v4949_v54   ;;  %v1752_v2 = vadd.f32 %v1624_v62, %v1222_v33  ;;  %v1223_v35 = vadd.f32 %v1095_v19, %v693_v59  ;;  %v1435_v62 = vpop.permute.xlu0 %1434  ;;  %3460 = vmatprep.subr.bf16.mxu0 %v4913_v22 }
 0x23d   :  { %4192 = vst [vmem:[#allocation10 + $0x360] sm:$0xff] %v3200_v21  ;;  %v1224_v43 = vadd.f32 %v1096_v51, %v694_v12  ;;  %v1879_v54 = vmax.f32 %v1751_v10, 0.0  ;;  %v558_v12 = vmul.f32 %v5466_v9, %v6310_v25  ;;  %3461 = vmatpush1.bf16.msra.mxu0 %v4911_v38 }
 0x23e   :  { %v1431_v53 = vpop.permute.xlu1 %1430  ;;  %v1880_v49 = vmax.f32 %v1752_v2, 0.0 }
 0x23f   :  { %v1625_v47 = vmul.f32 %v5481_v20, %v1431_v53  ;;  %v1626_v36 = vmul.f32 %v5489_v17, %v1431_v53  ;;  %v697_v22 = vadd.f32 %v5484_v23, %v558_v12 }
 0x240   :  { %956 = vperm.xlu1 %4758, %v4950_v57  }
 0x241   :  { %v1753_v16 = vadd.f32 %v1625_v47, %v1223_v35  ;;  %v1754_v56 = vadd.f32 %v1626_v36, %v1224_v43  ;;  %v559_v43 = vmul.f32 %v5457_v4, %v6310_v25 }
 0x243   :  { %v1881_v34 = vmax.f32 %v1753_v16, 0.0  ;;  %v1882_v27 = vmax.f32 %v1754_v56, 0.0  ;;  %v340_v61 = vpop.permute.xlu1 %339 }
 0x244   :  { %4760 = vset.pattern.permute.xlu1 %v7427_v18  ;;  %v556_v33 = vmul.f32 %v5466_v9, %v340_v61  ;;  %v557_v1 = vmul.f32 %v5457_v4, %v340_v61 }
 0x245   :  { %v6416_v29 = vpack.c.bf16 %v1881_v34, %v1879_v54  ;;  %v6418_v59 = vpack.c.bf16 %v1882_v27, %v1880_v49  ;;  %1486 = vperm.xlu1 %4760, %v4950_v57   ;;  %v4951_v49 = vld [vmem:[%s7337_s0 + $0x1b0] sm:$0xff] }
 0x246   :  { %v695_v57 = vadd.f32 %v5484_v23, %v556_v33  ;;  %v696_v54 = vadd.f32 %v5475_v14, %v557_v1 }
 0x247   :  { %7452 = vst [vmem:[#allocation36_spill] sm:$0xff] %v6416_v29  ;;  %2958 = vmatprep.mubr.bf16.mxu0 %v6418_v59  ;;  %3311 = vmatprep.mubr.bf16.mxu1 %v6418_v59 }
 0x248   :  { %2959 = vmatmul.mubr.bf16.gmra.mrb[76].mxu0 %v6416_v29  ;;  %3312 = vmatmul.mubr.bf16.gmra.mrb[76].mxu1 %v6416_v29  ;;  %v905_v19 = vpop.permute.xlu1 %904 }
 0x249   :  { %v2850_v51 = vpop.f32.mrb[32].mxu0  ;;  %v1097_v21 = vmul.f32 %v5461_v7, %v905_v19  ;;  %v1098_v10 = vmul.f32 %v5471_v11, %v905_v19  ;;  %v3203_v53 = vpop.f32.mrb[32].mxu1  ;;  %4761 = vset.pattern.permute.xlu1 %v7428_v40 }
 0x24a   :  { %v2851_v2 = vadd.f32 %v2850_v51, %v6075_v46  ;;  %v2852_v35 = vpop.f32.mrb[33].mxu0  ;;  %v3204_v47 = vadd.f32 %v3203_v53, %v6078_v6  ;;  %v3205_v16 = vpop.f32.mrb[33].mxu1  ;;  %409 = vperm.xlu1 %4761, %v4951_v49   ;;  %v4914_v51 = vld [vmem:[#allocation7 + $0x210] ss:$28 sps:$4 sm:$0xff]  }
 0x24b   :  { %v2853_v36 = vadd.f32 %v2852_v35, %v6082_v32  ;;  %v2854_v56 = vpop.f32.mrb[34].mxu0  ;;  %v3206_v25 = vadd.f32 %v3205_v16, %v6084_v44  ;;  %v3207_v27 = vpop.f32.mrb[34].mxu1  ;;  %v1225_v53 = vadd.f32 %v1097_v21, %v695_v57  ;;  %v1226_v35 = vadd.f32 %v1098_v10, %v696_v54  ;;  %3814 = vmatpush1.bf16.msra.mxu1 %v4914_v51  ;;  %v4917_v51 = vld [vmem:[#allocation7 + $0x244] ss:$28 sps:$4 sm:$0xff]  }
 0x24c   :  { %4196 = vst [vmem:[#allocation10 + $0x380] sm:$0xff] %v2851_v2  ;;  %v2855_v34 = vadd.f32 %v2854_v56, %v6075_v46  ;;  %v2856_v61 = vpop.f32.mrb[35].mxu0  ;;  %4198 = vst [vmem:[#allocation10 + $0x390] sm:$0xff] %v3204_v47  ;;  %v3208_v38 = vadd.f32 %v3207_v27, %v6078_v6  ;;  %v909_v33 = vpop.permute.xlu1 %908  ;;  %v1627_v2 = vmul.f32 %v5481_v20, %v1435_v62  ;;  %3815 = vmatprep.subr.bf16.mxu1 %v7428_v40 }
 0x24d   :  { %4197 = vst [vmem:[#allocation10 + $0x388] sm:$0xff] %v2853_v36  ;;  %v2857_v1 = vadd.f32 %v2856_v61, %v6082_v32  ;;  %v3209_v19 = vpop.f32.mrb[35].mxu1  ;;  %v1628_v16 = vmul.f32 %v5489_v17, %v1435_v62  ;;  %4199 = vst [vmem:[#allocation10 + $0x398] sm:$0xff] %v3206_v25  ;;  %v698_v56 = vadd.f32 %v5475_v14, %v559_v43  ;;  %v4952_v61 = vld [vmem:[%s7337_s0 + $0x1b8] sm:$0xff]  ;;  %3462 = vmatprep.subr.bf16.mxu0 %v4917_v51 }
 0x24e   :  { %4203 = vst [vmem:[#allocation10 + $0x3b8] sm:$0xff] %v2855_v34  ;;  %4205 = vst [vmem:[#allocation10 + $0x3c8] sm:$0xff] %v3208_v38  ;;  %v1099_v12 = vmul.f32 %v5461_v7, %v909_v33  ;;  %v1100_v47 = vmul.f32 %v5471_v11, %v909_v33  ;;  %v3210_v36 = vadd.f32 %v3209_v19, %v6084_v44  ;;  %4762 = vset.pattern.permute.xlu1 %v7436_v50 }
 0x24f   :  { %4204 = vst [vmem:[#allocation10 + $0x3c0] sm:$0xff] %v2857_v1  ;;  %960 = vperm.xlu1 %4762, %v4951_v49   ;;  %v1755_v62 = vadd.f32 %v1627_v2, %v1225_v53  ;;  %v1756_v21 = vadd.f32 %v1628_v16, %v1226_v35  ;;  %v4915_v35 = vld [vmem:[#allocation7 + $0x240] ss:$28 sps:$4 sm:$0xff]   ;;  %v4918_v2 = vld [vmem:[#allocation7 + $0x248] ss:$28 sps:$4 sm:$0xff]  }
 0x250   :  { %4206 = vst [vmem:[#allocation10 + $0x3d0] sm:$0xff] %v3210_v36  ;;  %v1227_v57 = vadd.f32 %v1099_v12, %v697_v22  ;;  %v1228_v43 = vadd.f32 %v1100_v47, %v698_v56  ;;  %v1443_v12 = vpop.permute.xlu0 %1442  ;;  %v562_v47 = vmul.f32 %v5466_v9, %v6328_v63  ;;  %3463 = vmatpush1.bf16.msra.mxu0 %v4915_v35 }
 0x251   :  { %v1439_v10 = vpop.permute.xlu1 %1438  ;;  %v1883_v38 = vmax.f32 %v1755_v62, 0.0  ;;  %v1884_v33 = vmax.f32 %v1756_v21, 0.0  ;;  %3816 = vmatpush1.bf16.msra.mxu1 %v4918_v2 }
 0x252   :  { %v1629_v54 = vmul.f32 %v5481_v20, %v1439_v10  ;;  %v1630_v25 = vmul.f32 %v5489_v17, %v1439_v10  ;;  %3817 = vmatprep.subr.bf16.mxu1 %v7428_v40  ;;  %v701_v2 = vadd.f32 %v5484_v23, %v562_v47 }
 0x253   :  { %964 = vperm.xlu1 %4762, %v4952_v61  }
 0x254   :  { %v1757_v34 = vadd.f32 %v1629_v54, %v1227_v57  ;;  %v1758_v27 = vadd.f32 %v1630_v25, %v1228_v43  ;;  %v563_v25 = vmul.f32 %v5457_v4, %v6328_v63 }
 0x256   :  { %v1885_v1 = vmax.f32 %v1757_v34, 0.0  ;;  %v1886_v49 = vmax.f32 %v1758_v27, 0.0  ;;  %v350_v19 = vpop.permute.xlu1 %349 }
 0x257   :  { %4763 = vset.pattern.permute.xlu1 %v7427_v18  ;;  %v560_v16 = vmul.f32 %v5466_v9, %v350_v19  ;;  %v561_v56 = vmul.f32 %v5457_v4, %v350_v19 }
 0x258   :  { %v6460_v53 = vpack.c.bf16 %v1885_v1, %v1883_v38  ;;  %v6462_v22 = vpack.c.bf16 %v1886_v49, %v1884_v33  ;;  %1494 = vperm.xlu1 %4763, %v4952_v61   ;;  %v4953_v49 = vld [vmem:[%s7337_s0 + $0x1c0] sm:$0xff] }
 0x259   :  { %v699_v33 = vadd.f32 %v5484_v23, %v560_v16  ;;  %v700_v1 = vadd.f32 %v5475_v14, %v561_v56 }
 0x25a   :  { %7453 = vst [vmem:[#allocation37_spill] sm:$0xff] %v6460_v53  ;;  %7454 = vst [vmem:[#allocation38_spill] sm:$0xff] %v6462_v22  ;;  %2968 = vmatprep.mubr.bf16.mxu0 %v6462_v22  ;;  %3321 = vmatprep.mubr.bf16.mxu1 %v6462_v22 }
 0x25b   :  { %2969 = vmatmul.mubr.bf16.gmra.mrb[80].mxu0 %v6460_v53  ;;  %3322 = vmatmul.mubr.bf16.gmra.mrb[80].mxu1 %v6460_v53  ;;  %v913_v36 = vpop.permute.xlu1 %912  ;;  %v4930_v53 = vld [vmem:[#allocation7 + $0x2f0] ss:$28 sps:$4 sm:$0xff]  }
 0x25c   :  { %v2860_v62 = vpop.f32.mrb[36].mxu0  ;;  %v1101_v21 = vmul.f32 %v5461_v7, %v913_v36  ;;  %v1102_v10 = vmul.f32 %v5471_v11, %v913_v36  ;;  %v3213_v43 = vpop.f32.mrb[36].mxu1  ;;  %4764 = vset.pattern.permute.xlu1 %v7428_v40 }
 0x25d   :  { %v2861_v57 = vadd.f32 %v2860_v62, %v6075_v46  ;;  %v2862_v54 = vpop.f32.mrb[37].mxu0  ;;  %v3214_v34 = vadd.f32 %v3213_v43, %v6078_v6  ;;  %v3215_v61 = vpop.f32.mrb[37].mxu1  ;;  %419 = vperm.xlu1 %4764, %v4953_v49  }
 0x25e   :  { %v2863_v27 = vadd.f32 %v2862_v54, %v6082_v32  ;;  %v2864_v38 = vpop.f32.mrb[38].mxu0  ;;  %v3216_v63 = vadd.f32 %v3215_v61, %v6084_v44  ;;  %v3217_v51 = vpop.f32.mrb[38].mxu1  ;;  %v1229_v43 = vadd.f32 %v1101_v21, %v699_v33  ;;  %v1230_v54 = vadd.f32 %v1102_v10, %v700_v1 }
 0x25f   :  { %4210 = vst [vmem:[#allocation10 + $0x3f0] sm:$0xff] %v2861_v57  ;;  %v2865_v19 = vadd.f32 %v2864_v38, %v6075_v46  ;;  %v2866_v35 = vpop.f32.mrb[39].mxu0  ;;  %4212 = vst [vmem:[#allocation10 + $0x400] sm:$0xff] %v3214_v34  ;;  %v3218_v16 = vadd.f32 %v3217_v51, %v6078_v6  ;;  %v917_v36 = vpop.permute.xlu1 %916  ;;  %v1631_v57 = vmul.f32 %v5481_v20, %v1443_v12 }
 0x260   :  { %4211 = vst [vmem:[#allocation10 + $0x3f8] sm:$0xff] %v2863_v27  ;;  %v2867_v56 = vadd.f32 %v2866_v35, %v6082_v32  ;;  %v3219_v62 = vpop.f32.mrb[39].mxu1  ;;  %v1632_v61 = vmul.f32 %v5489_v17, %v1443_v12  ;;  %4213 = vst [vmem:[#allocation10 + $0x408] sm:$0xff] %v3216_v63  ;;  %v702_v38 = vadd.f32 %v5475_v14, %v563_v25  ;;  %v4954_v35 = vld [vmem:[%s7337_s0 + $0x1c8] sm:$0xff] }
 0x261   :  { %4217 = vst [vmem:[#allocation10 + $0x428] sm:$0xff] %v2865_v19  ;;  %4219 = vst [vmem:[#allocation10 + $0x438] sm:$0xff] %v3218_v16  ;;  %v1103_v47 = vmul.f32 %v5461_v7, %v917_v36  ;;  %v1104_v34 = vmul.f32 %v5471_v11, %v917_v36  ;;  %v3220_v27 = vadd.f32 %v3219_v62, %v6084_v44  ;;  %4765 = vset.pattern.permute.xlu1 %v7436_v50  ;;  %v4919_v62 = vld [vmem:[#allocation7 + $0x278] ss:$28 sps:$4 sm:$0xff]  }
 0x262   :  { %4218 = vst [vmem:[#allocation10 + $0x430] sm:$0xff] %v2867_v56  ;;  %968 = vperm.xlu1 %4765, %v4953_v49   ;;  %v1759_v21 = vadd.f32 %v1631_v57, %v1229_v43  ;;  %v1760_v10 = vadd.f32 %v1632_v61, %v1230_v54  ;;  %v4921_v43 = vld [vmem:[#allocation7 + $0x27c] ss:$28 sps:$4 sm:$0xff]  }
 0x263   :  { %4220 = vst [vmem:[#allocation10 + $0x440] sm:$0xff] %v3220_v27  ;;  %v1231_v12 = vadd.f32 %v1103_v47, %v701_v2  ;;  %v1232_v1 = vadd.f32 %v1104_v34, %v702_v38  ;;  %3464 = vmatprep.subr.bf16.mxu0 %v4921_v43  ;;  %v4922_v61 = vld [vmem:[#allocation7 + $0x280] ss:$28 sps:$4 sm:$0xff]   ;;  %v1451_v34 = vpop.permute.xlu0 %1450  ;;  %v566_v27 = vmul.f32 %v5466_v9, %v6361_v39 }
 0x264   :  { %v1447_v33 = vpop.permute.xlu1 %1446  ;;  %v1887_v16 = vmax.f32 %v1759_v21, 0.0  ;;  %v1888_v36 = vmax.f32 %v1760_v10, 0.0  ;;  %3465 = vmatpush1.bf16.msra.mxu0 %v4919_v62  ;;  %3818 = vmatpush1.bf16.msra.mxu1 %v4922_v61 }
 0x265   :  { %v1633_v63 = vmul.f32 %v5481_v20, %v1447_v33  ;;  %v1634_v25 = vmul.f32 %v5489_v17, %v1447_v33  ;;  %3819 = vmatprep.subr.bf16.mxu1 %v7428_v40 }
 0x266   :  { %972 = vperm.xlu1 %4765, %v4954_v35  }
 0x267   :  { %v1761_v19 = vadd.f32 %v1633_v63, %v1231_v12  ;;  %v1762_v51 = vadd.f32 %v1634_v25, %v1232_v1  ;;  %v4955_v1 = vld [vmem:[%s7337_s0 + $0x1d0] sm:$0xff] }
 0x269   :  { %v1889_v56 = vmax.f32 %v1761_v19, 0.0  ;;  %v1890_v49 = vmax.f32 %v1762_v51, 0.0  ;;  %v567_v51 = vmul.f32 %v5457_v4, %v6361_v39 }
 0x26a   :  { %4766 = vset.pattern.permute.xlu1 %v7427_v18  ;;  %v360_v57 = vpop.permute.xlu1 %359 }
 0x26b   :  { %v6504_v54 = vpack.c.bf16 %v1889_v56, %v1887_v16  ;;  %v6506_v2 = vpack.c.bf16 %v1890_v49, %v1888_v36  ;;  %1502 = vperm.xlu1 %4766, %v4954_v35   ;;  %v564_v38 = vmul.f32 %v5466_v9, %v360_v57  ;;  %v565_v47 = vmul.f32 %v5457_v4, %v360_v57 }
 0x26d   :  { %7455 = vst [vmem:[#allocation39_spill] sm:$0xff] %v6504_v54  ;;  %7456 = vst [vmem:[#allocation40_spill] sm:$0xff] %v6506_v2  ;;  %2978 = vmatprep.mubr.bf16.mxu0 %v6506_v2  ;;  %3331 = vmatprep.mubr.bf16.mxu1 %v6506_v2  ;;  %v703_v49 = vadd.f32 %v5484_v23, %v564_v38  ;;  %v704_v62 = vadd.f32 %v5475_v14, %v565_v47 }
 0x26e   :  { %2979 = vmatmul.mubr.bf16.gmra.mrb[84].mxu0 %v6504_v54  ;;  %3332 = vmatmul.mubr.bf16.gmra.mrb[84].mxu1 %v6504_v54  ;;  %v1635_v47 = vmul.f32 %v5481_v20, %v1451_v34 }
 0x26f   :  { %4767 = vset.pattern.permute.xlu1 %v7428_v40  ;;  %v921_v21 = vpop.permute.xlu1 %920 }
 0x270   :  { %v2870_v10 = vpop.f32.mrb[40].mxu0  ;;  %v1105_v33 = vmul.f32 %v5461_v7, %v921_v21  ;;  %v1106_v12 = vmul.f32 %v5471_v11, %v921_v21  ;;  %429 = vperm.xlu1 %4767, %v4955_v1  }
 0x271   :  { %v2871_v63 = vadd.f32 %v2870_v10, %v6075_v46  ;;  %v3223_v25 = vpop.f32.mrb[40].mxu1  ;;  %v2872_v19 = vpop.f32.mrb[41].mxu0  ;;  %v705_v10 = vadd.f32 %v5484_v23, %v566_v27  ;;  %v4925_v27 = vld [vmem:[#allocation7 + $0x2b4] ss:$28 sps:$4 sm:$0xff]  }
 0x272   :  { %v3224_v35 = vadd.f32 %v3223_v25, %v6078_v6  ;;  %v2873_v16 = vadd.f32 %v2872_v19, %v6082_v32  ;;  %v3225_v36 = vpop.f32.mrb[41].mxu1  ;;  %v2874_v56 = vpop.f32.mrb[42].mxu0  ;;  %v1233_v38 = vadd.f32 %v1105_v33, %v703_v49  ;;  %v1234_v2 = vadd.f32 %v1106_v12, %v704_v62  ;;  %3466 = vmatprep.subr.bf16.mxu0 %v4925_v27 }
 0x273   :  { %4224 = vst [vmem:[#allocation10 + $0x460] sm:$0xff] %v2871_v63  ;;  %v3226_v43 = vadd.f32 %v3225_v36, %v6084_v44  ;;  %v2875_v57 = vadd.f32 %v2874_v56, %v6075_v46  ;;  %v3227_v61 = vpop.f32.mrb[42].mxu1  ;;  %v2876_v21 = vpop.f32.mrb[43].mxu0  ;;  %v1636_v63 = vmul.f32 %v5489_v17, %v1451_v34  ;;  %v4923_v36 = vld [vmem:[#allocation7 + $0x2b0] ss:$28 sps:$4 sm:$0xff]  }
 0x274   :  { %4226 = vst [vmem:[#allocation10 + $0x470] sm:$0xff] %v3224_v35  ;;  %4225 = vst [vmem:[#allocation10 + $0x468] sm:$0xff] %v2873_v16  ;;  %v3228_v39 = vadd.f32 %v3227_v61, %v6078_v6  ;;  %v925_v25 = vpop.permute.xlu1 %924  ;;  %v2877_v19 = vadd.f32 %v2876_v21, %v6082_v32  ;;  %v3229_v54 = vpop.f32.mrb[43].mxu1  ;;  %4769 = vset.pattern.permute.xlu1 %v7436_v50  ;;  %v706_v35 = vadd.f32 %v5475_v14, %v567_v51  ;;  %v4956_v21 = vld [vmem:[%s7337_s0 + $0x1d8] sm:$0xff] }
 0x275   :  { %4227 = vst [vmem:[#allocation10 + $0x478] sm:$0xff] %v3226_v43  ;;  %4231 = vst [vmem:[#allocation10 + $0x498] sm:$0xff] %v2875_v57  ;;  %v1107_v16 = vmul.f32 %v5461_v7, %v925_v25  ;;  %v1108_v56 = vmul.f32 %v5471_v11, %v925_v25  ;;  %v3230_v33 = vadd.f32 %v3229_v54, %v6084_v44  ;;  %976 = vperm.xlu1 %4769, %v4955_v1   ;;  %v6543_v34 = vpop.permute.xlu0 %1458  ;;  %v4926_v25 = vld [vmem:[#allocation7 + $0x2b8] ss:$28 sps:$4 sm:$0xff]  }
 0x276   :  { %4233 = vst [vmem:[#allocation10 + $0x4a8] sm:$0xff] %v3228_v39  ;;  %4232 = vst [vmem:[#allocation10 + $0x4a0] sm:$0xff] %v2877_v19  ;;  %3467 = vmatpush1.bf16.msra.mxu0 %v4923_v36  ;;  %v1763_v12 = vadd.f32 %v1635_v47, %v1233_v38  ;;  %v1764_v49 = vadd.f32 %v1636_v63, %v1234_v2  ;;  %3820 = vmatpush1.bf16.msra.mxu1 %v4926_v25 }
 0x277   :  { %4234 = vst [vmem:[#allocation10 + $0x4b0] sm:$0xff] %v3230_v33  ;;  %v1235_v43 = vadd.f32 %v1107_v16, %v705_v10  ;;  %v1236_v57 = vadd.f32 %v1108_v56, %v706_v35  ;;  %3821 = vmatprep.subr.bf16.mxu1 %v7428_v40  ;;  %v570_v56 = vmul.f32 %v5466_v9, %v6370_v28 }
 0x278   :  { %v1455_v62 = vpop.permute.xlu1 %1454  ;;  %v1891_v19 = vmax.f32 %v1763_v12, 0.0  ;;  %v1892_v38 = vmax.f32 %v1764_v49, 0.0  ;;  %v571_v33 = vmul.f32 %v5457_v4, %v6370_v28  ;;  %v1640_v29 = vmul.f32 %v5489_v17, %v6543_v34 }
 0x279   :  { %v1637_v51 = vmul.f32 %v5481_v20, %v1455_v62  ;;  %v1638_v61 = vmul.f32 %v5489_v17, %v1455_v62  ;;  %980 = vperm.xlu1 %4769, %v4956_v21   ;;  %v6550_v39 = vpop.permute.xlu0 %1466 }
 0x27a   :  { %3822 = vmatpush1.bf16.msra.mxu1 %v4930_v53 }
 0x27b   :  { %v1765_v54 = vadd.f32 %v1637_v51, %v1235_v43  ;;  %v1766_v1 = vadd.f32 %v1638_v61, %v1236_v57  ;;  %v4957_v57 = vld [vmem:[%s7337_s0 + $0x1e0] sm:$0xff]  ;;  %3823 = vmatprep.subr.bf16.mxu1 %v7428_v40 }
 0x27d   :  { %v1893_v2 = vmax.f32 %v1765_v54, 0.0  ;;  %v1894_v47 = vmax.f32 %v1766_v1, 0.0  ;;  %4770 = vset.pattern.permute.xlu1 %v7427_v18  ;;  %v370_v10 = vpop.permute.xlu1 %369  ;;  %v6562_v16 = vpop.permute.xlu0 %1474 }
 0x27e   :  { %1510 = vperm.xlu1 %4770, %v4956_v21   ;;  %v568_v27 = vmul.f32 %v5466_v9, %v370_v10  ;;  %v569_v35 = vmul.f32 %v5457_v4, %v370_v10 }
 0x27f   :  { %v6554_v63 = vpack.c.bf16 %v1893_v2, %v1891_v19  ;;  %v6556_v36 = vpack.c.bf16 %v1894_v47, %v1892_v38 }
 0x280   :  { %v707_v19 = vadd.f32 %v5484_v23, %v568_v27  ;;  %v708_v38 = vadd.f32 %v5475_v14, %v569_v35 }
 0x281   :  { %7457 = vst [vmem:[#allocation41_spill] sm:$0xff] %v6554_v63  ;;  %7458 = vst [vmem:[#allocation42_spill] sm:$0xff] %v6556_v36  ;;  %2988 = vmatprep.mubr.bf16.mxu0 %v6556_v36  ;;  %3341 = vmatprep.mubr.bf16.mxu1 %v6556_v36  ;;  %v709_v36 = vadd.f32 %v5484_v23, %v570_v56 }
 0x282   :  { %4771 = vset.pattern.permute.xlu1 %v7428_v40  ;;  %2989 = vmatmul.mubr.bf16.gmra.mrb[88].mxu0 %v6554_v63  ;;  %v929_v12 = vpop.permute.xlu1 %928 }
 0x283   :  { %v2880_v49 = vpop.f32.mrb[44].mxu0  ;;  %3342 = vmatmul.mubr.bf16.gmra.mrb[88].mxu1 %v6554_v63  ;;  %v1109_v62 = vmul.f32 %v5461_v7, %v929_v12  ;;  %v1110_v43 = vmul.f32 %v5471_v11, %v929_v12  ;;  %439 = vperm.xlu1 %4771, %v4957_v57   ;;  %v4929_v63 = vld [vmem:[#allocation7 + $0x2ec] ss:$28 sps:$4 sm:$0xff]  }
 0x284   :  { %v2881_v51 = vadd.f32 %v2880_v49, %v6075_v46  ;;  %v3233_v28 = vpop.f32.mrb[44].mxu1  ;;  %v2882_v61 = vpop.f32.mrb[45].mxu0  ;;  %v4927_v49 = vld [vmem:[#allocation7 + $0x2e8] ss:$28 sps:$4 sm:$0xff]   ;;  %3468 = vmatprep.subr.bf16.mxu0 %v4929_v63 }
 0x285   :  { %v3234_v21 = vadd.f32 %v3233_v28, %v6078_v6  ;;  %v2883_v54 = vadd.f32 %v2882_v61, %v6082_v32  ;;  %v3235_v1 = vpop.f32.mrb[45].mxu1  ;;  %v2884_v25 = vpop.f32.mrb[46].mxu0  ;;  %v710_v28 = vadd.f32 %v5475_v14, %v571_v33  ;;  %v1238_v22 = vadd.f32 %v1110_v43, %v708_v38  ;;  %3469 = vmatpush1.bf16.msra.mxu0 %v4927_v49 }
 0x286   :  { %4238 = vst [vmem:[#allocation10 + $0x4d0] sm:$0xff] %v2881_v51  ;;  %v3236_v2 = vadd.f32 %v3235_v1, %v6084_v44  ;;  %v2885_v47 = vadd.f32 %v2884_v25, %v6075_v46  ;;  %v3237_v10 = vpop.f32.mrb[46].mxu1  ;;  %v2886_v12 = vpop.f32.mrb[47].mxu0  ;;  %v1237_v1 = vadd.f32 %v1109_v62, %v707_v19  ;;  %v1639_v25 = vmul.f32 %v5481_v20, %v6543_v34 }
 0x287   :  { %4240 = vst [vmem:[#allocation10 + $0x4e0] sm:$0xff] %v3234_v21  ;;  %4239 = vst [vmem:[#allocation10 + $0x4d8] sm:$0xff] %v2883_v54  ;;  %v3238_v61 = vadd.f32 %v3237_v10, %v6078_v6  ;;  %v933_v27 = vpop.permute.xlu1 %932  ;;  %v2887_v35 = vadd.f32 %v2886_v12, %v6082_v32  ;;  %v3239_v51 = vpop.f32.mrb[47].mxu1  ;;  %4772 = vset.pattern.permute.xlu1 %v7436_v50  ;;  %v1768_v62 = vadd.f32 %v1640_v29, %v1238_v22 }
 0x288   :  { %4241 = vst [vmem:[#allocation10 + $0x4e8] sm:$0xff] %v3236_v2  ;;  %4245 = vst [vmem:[#allocation10 + $0x508] sm:$0xff] %v2885_v47  ;;  %v1111_v56 = vmul.f32 %v5461_v7, %v933_v27  ;;  %v1112_v33 = vmul.f32 %v5471_v11, %v933_v27  ;;  %v3240_v21 = vadd.f32 %v3239_v51, %v6084_v44  ;;  %984 = vperm.xlu1 %4772, %v4957_v57   ;;  %v4958_v47 = vld [vmem:[%s7337_s0 + $0x1e8] sm:$0xff]  ;;  %v6601_v63 = vpop.permute.xlu0 %1482 }
 0x289   :  { %4247 = vst [vmem:[#allocation10 + $0x518] sm:$0xff] %v3238_v61  ;;  %4246 = vst [vmem:[#allocation10 + $0x510] sm:$0xff] %v2887_v35  ;;  %v1767_v34 = vadd.f32 %v1639_v25, %v1237_v1  ;;  %v1896_v12 = vmax.f32 %v1768_v62, 0.0 }
 0x28a   :  { %4248 = vst [vmem:[#allocation10 + $0x520] sm:$0xff] %v3240_v21  ;;  %v1239_v54 = vadd.f32 %v1111_v56, %v709_v36  ;;  %v1240_v19 = vadd.f32 %v1112_v33, %v710_v28 }
 0x28b   :  { %v1463_v43 = vpop.permute.xlu1 %1462  ;;  %v1895_v10 = vmax.f32 %v1767_v34, 0.0 }
 0x28c   :  { %v1641_v38 = vmul.f32 %v5481_v20, %v1463_v43  ;;  %v1642_v2 = vmul.f32 %v5489_v17, %v1463_v43  ;;  %988 = vperm.xlu1 %4772, %v4958_v47   ;;  %v385_v61 = vpop.permute.xlu0 %384 }
 0x28d   :  { %v574_v1 = vmul.f32 %v5466_v9, %v385_v61  ;;  %v575_v25 = vmul.f32 %v5457_v4, %v385_v61  ;;  %v1643_v61 = vmul.f32 %v5481_v20, %v6550_v39 }
 0x28e   :  { %v1769_v53 = vadd.f32 %v1641_v38, %v1239_v54  ;;  %v1770_v57 = vadd.f32 %v1642_v2, %v1240_v19 }
 0x290   :  { %v1897_v49 = vmax.f32 %v1769_v53, 0.0  ;;  %v1898_v29 = vmax.f32 %v1770_v57, 0.0  ;;  %4774 = vset.pattern.permute.xlu1 %v7427_v18  ;;  %v380_v22 = vpop.permute.xlu1 %379  ;;  %v4933_v53 = vld [vmem:[#allocation7 + $0x324] ss:$28 sps:$4 sm:$0xff]  }
 0x291   :  { %1518 = vperm.xlu1 %4774, %v4958_v47   ;;  %v572_v27 = vmul.f32 %v5466_v9, %v380_v22  ;;  %v573_v35 = vmul.f32 %v5457_v4, %v380_v22  ;;  %v4931_v47 = vld [vmem:[#allocation7 + $0x320] ss:$28 sps:$4 sm:$0xff]   ;;  %v4934_v22 = vld [vmem:[#allocation7 + $0x328] ss:$28 sps:$4 sm:$0xff]   ;;  %3470 = vmatprep.subr.bf16.mxu0 %v4933_v53 }
 0x292   :  { %v6604_v36 = vpack.c.bf16 %v1897_v49, %v1895_v10  ;;  %v6606_v28 = vpack.c.bf16 %v1898_v29, %v1896_v12  ;;  %3471 = vmatpush1.bf16.msra.mxu0 %v4931_v47  ;;  %3824 = vmatpush1.bf16.msra.mxu1 %v4934_v22 }
 0x293   :  { %v711_v57 = vadd.f32 %v5484_v23, %v572_v27  ;;  %v712_v10 = vadd.f32 %v5475_v14, %v573_v35  ;;  %3825 = vmatprep.subr.bf16.mxu1 %v7428_v40 }
 0x294   :  { %2998 = vmatprep.mubr.bf16.mxu0 %v6606_v28  ;;  %3351 = vmatprep.mubr.bf16.mxu1 %v6606_v28 }
 0x295   :  { %4775 = vset.pattern.permute.xlu1 %v7428_v40  ;;  %2999 = vmatmul.mubr.bf16.gmra.mrb[92].mxu0 %v6604_v36  ;;  %v937_v51 = vpop.permute.xlu1 %936 }
 0x296   :  { %v2890_v56 = vpop.f32.mrb[48].mxu0  ;;  %3352 = vmatmul.mubr.bf16.gmra.mrb[92].mxu1 %v6604_v36  ;;  %v1113_v33 = vmul.f32 %v5461_v7, %v937_v51  ;;  %v1114_v21 = vmul.f32 %v5471_v11, %v937_v51  ;;  %449 = vperm.xlu1 %4775, %v6321_v37   ;;  %v1644_v51 = vmul.f32 %v5489_v17, %v6550_v39 }
 0x297   :  { %v2891_v34 = vadd.f32 %v2890_v56, %v6075_v46  ;;  %v3243_v62 = vpop.f32.mrb[48].mxu1  ;;  %v2892_v43 = vpop.f32.mrb[49].mxu0 }
 0x298   :  { %v3244_v54 = vadd.f32 %v3243_v62, %v6078_v6  ;;  %v2893_v19 = vadd.f32 %v2892_v43, %v6082_v32  ;;  %v3245_v38 = vpop.f32.mrb[49].mxu1  ;;  %v2894_v2 = vpop.f32.mrb[50].mxu0  ;;  %v1241_v62 = vadd.f32 %v1113_v33, %v711_v57  ;;  %v1242_v43 = vadd.f32 %v1114_v21, %v712_v10  ;;  %v4959_v33 = vld [vmem:[%s7337_s0 + $0x1f0] sm:$0xff] }
 0x299   :  { %4252 = vst [vmem:[#allocation10 + $0x540] sm:$0xff] %v2891_v34  ;;  %v3246_v12 = vadd.f32 %v3245_v38, %v6084_v44  ;;  %v2895_v37 = vadd.f32 %v2894_v2, %v6075_v46  ;;  %v3247_v49 = vpop.f32.mrb[50].mxu1  ;;  %v2896_v29 = vpop.f32.mrb[51].mxu0  ;;  %v713_v38 = vadd.f32 %v5484_v23, %v574_v1  ;;  %v714_v2 = vadd.f32 %v5475_v14, %v575_v25 }
 0x29a   :  { %4254 = vst [vmem:[#allocation10 + $0x550] sm:$0xff] %v3244_v54  ;;  %4253 = vst [vmem:[#allocation10 + $0x548] sm:$0xff] %v2893_v19  ;;  %v3248_v27 = vadd.f32 %v3247_v49, %v6078_v6  ;;  %v941_v56 = vpop.permute.xlu1 %940  ;;  %v2897_v35 = vadd.f32 %v2896_v29, %v6082_v32  ;;  %v3249_v34 = vpop.f32.mrb[51].mxu1  ;;  %4776 = vset.pattern.permute.xlu1 %v7436_v50  ;;  %v1771_v1 = vadd.f32 %v1643_v61, %v1241_v62 }
 0x29b   :  { %4255 = vst [vmem:[#allocation10 + $0x558] sm:$0xff] %v3246_v12  ;;  %4259 = vst [vmem:[#allocation10 + $0x578] sm:$0xff] %v2895_v37  ;;  %v1115_v39 = vmul.f32 %v5461_v7, %v941_v56  ;;  %v1116_v54 = vmul.f32 %v5471_v11, %v941_v56  ;;  %v3250_v19 = vadd.f32 %v3249_v34, %v6084_v44  ;;  %992 = vperm.xlu1 %4776, %v4959_v33   ;;  %v4960_v12 = vld [vmem:[%s7337_s0 + $0x1f8] sm:$0xff]  ;;  %v395_v56 = vpop.permute.xlu0 %394  ;;  %s5089_s0 = smov [#allocation10]  }
 0x29c   :  { %4261 = vst [vmem:[#allocation10 + $0x588] sm:$0xff] %v3248_v27  ;;  %4260 = vst [vmem:[#allocation10 + $0x580] sm:$0xff] %v2897_v35  ;;  %v1772_v50 = vadd.f32 %v1644_v51, %v1242_v43  ;;  %v1899_v49 = vmax.f32 %v1771_v1, 0.0  ;;  %v579_v33 = vmul.f32 %v5457_v4, %v395_v56  ;;  %s4537_s14 = sshll.u32 %s5089_s0, 4  ;;  %s4538_s14 = int_to_ptr.vmem [resolvable:$true] %s4537_s14 }
 0x29d   :  { %4262 = vst [vmem:[#allocation10 + $0x590] sm:$0xff] %v3250_v19  ;;  %v1243_v21 = vadd.f32 %v1115_v39, %v713_v38  ;;  %v1244_v53 = vadd.f32 %v1116_v54, %v714_v2  ;;  %v578_v2 = vmul.f32 %v5466_v9, %v395_v56  ;;  %s5050_s2 = scalar_lea.vmem %s4538_s14, 57344  ;;  %p5055_p5 = scmp.lt.s32.totalorder %s4538_s14, %s4538_s14 }
 0x29e   :  { %v1471_v25 = vpop.permute.xlu1 %1470  ;;  %v1900_v29 = vmax.f32 %v1772_v50, 0.0  ;;  %p5051_p4 = scmp.ne.s32.totalorder %s4538_s14, %s5050_s2  ;;  %p5056_p6 = scmp.lt.s32.totalorder %s5050_s2, %s5050_s2 }
 0x29f   :  { %v1645_v57 = vmul.f32 %v5481_v20, %v1471_v25  ;;  %v1646_v10 = vmul.f32 %v5489_v17, %v1471_v25  ;;  %996 = vperm.xlu1 %4776, %v4960_v12  }
 0x2a0   :  { %p5057_p7 = por %p5056_p6, %p5055_p5 }
 0x2a1   :  { %v1773_v37 = vadd.f32 %v1645_v57, %v1243_v21  ;;  %v1774_v47 = vadd.f32 %v1646_v10, %v1244_v53  ;;  %v4935_v53 = vld [vmem:[#allocation7 + $0x358] ss:$28 sps:$4 sm:$0xff]  }
 0x2a2   :  { %v4937_v57 = vld [vmem:[#allocation7 + $0x35c] ss:$28 sps:$4 sm:$0xff]   ;;  %p5058_p8 = pnand %p5057_p7, %p5051_p4 }
 0x2a3   :  { %v1901_v22 = vmax.f32 %v1773_v37, 0.0  ;;  %v1902_v40 = vmax.f32 %v1774_v47, 0.0  ;;  %4778 = vset.pattern.permute.xlu1 %v7427_v18  ;;  %v390_v61 = vpop.permute.xlu1 %389  ;;  %3472 = vmatprep.subr.bf16.mxu0 %v4937_v57 }
 0x2a4   :  { %1526 = vperm.xlu1 %4778, %v4960_v12   ;;  %v576_v35 = vmul.f32 %v5466_v9, %v390_v61  ;;  %v577_v34 = vmul.f32 %v5457_v4, %v390_v61  ;;  %3473 = vmatpush1.bf16.msra.mxu0 %v4935_v53 }
 0x2a5   :  { %v6649_v51 = vpack.c.bf16 %v1901_v22, %v1899_v49  ;;  %v6651_v27 = vpack.c.bf16 %v1902_v40, %v1900_v29  ;;  %v4938_v22 = vld [vmem:[#allocation7 + $0x360] ss:$28 sps:$4 sm:$0xff]   ;;  %v1647_v40 = vmul.f32 %v5481_v20, %v6562_v16 }
 0x2a6   :  { %v715_v10 = vadd.f32 %v5484_v23, %v576_v35  ;;  %v716_v12 = vadd.f32 %v5475_v14, %v577_v34  ;;  %v1648_v34 = vmul.f32 %v5489_v17, %v6562_v16  ;;  %3826 = vmatpush1.bf16.msra.mxu1 %v4938_v22 }
 0x2a7   :  { %3008 = vmatprep.mubr.bf16.mxu0 %v6651_v27  ;;  %3361 = vmatprep.mubr.bf16.mxu1 %v6651_v27 }
 0x2a8   :  { %3009 = vmatmul.mubr.bf16.gmra.mrb[96].mxu0 %v6649_v51  ;;  %3362 = vmatmul.mubr.bf16.gmra.mrb[96].mxu1 %v6649_v51  ;;  %v945_v18 = vpop.permute.xlu1 %944 }
 0x2a9   :  { %v2900_v62 = vpop.f32.mrb[52].mxu0  ;;  %v1117_v43 = vmul.f32 %v5461_v7, %v945_v18  ;;  %v1118_v38 = vmul.f32 %v5471_v11, %v945_v18 }
 0x2aa   :  { %v2901_v39 = vadd.f32 %v2900_v62, %v6075_v46  ;;  %v3253_v54 = vpop.f32.mrb[52].mxu1  ;;  %v2902_v19 = vpop.f32.mrb[53].mxu0 }
 0x2ab   :  { %v3254_v1 = vadd.f32 %v3253_v54, %v6078_v6  ;;  %v2903_v50 = vadd.f32 %v2902_v19, %v6082_v32  ;;  %v3255_v25 = vpop.f32.mrb[53].mxu1  ;;  %v2904_v21 = vpop.f32.mrb[54].mxu0  ;;  %v1245_v62 = vadd.f32 %v1117_v43, %v715_v10  ;;  %v717_v54 = vadd.f32 %v5484_v23, %v578_v2 }
 0x2ac   :  { %4266 = vst [vmem:[#allocation10 + $0x5b0] sm:$0xff] %v2901_v39  ;;  %v3256_v37 = vadd.f32 %v3255_v25, %v6084_v44  ;;  %v2905_v47 = vadd.f32 %v2904_v21, %v6075_v46  ;;  %v3257_v49 = vpop.f32.mrb[54].mxu1  ;;  %v2906_v29 = vpop.f32.mrb[55].mxu0  ;;  %v1246_v39 = vadd.f32 %v1118_v38, %v716_v12  ;;  %v718_v19 = vadd.f32 %v5475_v14, %v579_v33 }
 0x2ad   :  { %4268 = vst [vmem:[#allocation10 + $0x5c0] sm:$0xff] %v3254_v1  ;;  %4267 = vst [vmem:[#allocation10 + $0x5b8] sm:$0xff] %v2903_v50  ;;  %v3258_v61 = vadd.f32 %v3257_v49, %v6078_v6  ;;  %v949_v56 = vpop.permute.xlu1 %948  ;;  %v2907_v35 = vadd.f32 %v2906_v29, %v6082_v32  ;;  %v3259_v18 = vpop.f32.mrb[55].mxu1  ;;  %v1775_v16 = vadd.f32 %v1647_v40, %v1245_v62 }
 0x2ae   :  { %4269 = vst [vmem:[#allocation10 + $0x5c8] sm:$0xff] %v3256_v37  ;;  %4273 = vst [vmem:[#allocation10 + $0x5e8] sm:$0xff] %v2905_v47  ;;  %v1119_v1 = vmul.f32 %v5461_v7, %v949_v56  ;;  %v1120_v50 = vmul.f32 %v5471_v11, %v949_v56  ;;  %v3260_v25 = vadd.f32 %v3259_v18, %v6084_v44 }
 0x2af   :  { %4275 = vst [vmem:[#allocation10 + $0x5f8] sm:$0xff] %v3258_v61  ;;  %4274 = vst [vmem:[#allocation10 + $0x5f0] sm:$0xff] %v2907_v35  ;;  %v1776_v43 = vadd.f32 %v1648_v34, %v1246_v39  ;;  %v1903_v12 = vmax.f32 %v1775_v16, 0.0  ;;  %v405_v61 = vpop.permute.xlu0 %404 }
 0x2b0   :  { %4276 = vst [vmem:[#allocation10 + $0x600] sm:$0xff] %v3260_v25  ;;  %v1247_v21 = vadd.f32 %v1119_v1, %v717_v54  ;;  %v1248_v2 = vadd.f32 %v1120_v50, %v718_v19  ;;  %v582_v34 = vmul.f32 %v5466_v9, %v405_v61  ;;  %v1651_v19 = vmul.f32 %v5481_v20, %v6601_v63 }
 0x2b1   :  { %v1479_v38 = vpop.permute.xlu1 %1478  ;;  %v1904_v37 = vmax.f32 %v1776_v43, 0.0  ;;  %v583_v1 = vmul.f32 %v5457_v4, %v405_v61 }
 0x2b2   :  { %v1649_v57 = vmul.f32 %v5481_v20, %v1479_v38  ;;  %v1650_v53 = vmul.f32 %v5489_v17, %v1479_v38 }
 0x2b3   :  { %v6694_v62 = vpop.permute.xlu0 %414 }
 0x2b4   :  { %v1777_v33 = vadd.f32 %v1649_v57, %v1247_v21  ;;  %v1778_v10 = vadd.f32 %v1650_v53, %v1248_v2  ;;  %v1652_v53 = vmul.f32 %v5489_v17, %v6601_v63  ;;  %v722_v63 = vadd.f32 %v5475_v14, %v583_v1 }
 0x2b6   :  { %v1905_v47 = vmax.f32 %v1777_v33, 0.0  ;;  %v1906_v49 = vmax.f32 %v1778_v10, 0.0  ;;  %v400_v29 = vpop.permute.xlu1 %399  ;;  %v721_v33 = vadd.f32 %v5484_v23, %v582_v34 }
 0x2b7   :  { %v580_v40 = vmul.f32 %v5466_v9, %v400_v29  ;;  %v581_v35 = vmul.f32 %v5457_v4, %v400_v29 }
 0x2b8   :  { %v6683_v56 = vpack.c.bf16 %v1905_v47, %v1903_v12  ;;  %v6685_v22 = vpack.c.bf16 %v1906_v49, %v1904_v37 }
 0x2b9   :  { %v719_v16 = vadd.f32 %v5484_v23, %v580_v40  ;;  %v720_v43 = vadd.f32 %v5475_v14, %v581_v35 }
 0x2ba   :  { %3018 = vmatprep.mubr.bf16.mxu0 %v6685_v22  ;;  %3371 = vmatprep.mubr.bf16.mxu1 %v6685_v22 }
 0x2bb   :  { %3019 = vmatmul.mubr.bf16.gmra.mrb[100].mxu0 %v6683_v56  ;;  %3372 = vmatmul.mubr.bf16.gmra.mrb[100].mxu1 %v6683_v56  ;;  %v953_v18 = vpop.permute.xlu1 %952 }
 0x2bc   :  { %v1121_v39 = vmul.f32 %v5461_v7, %v953_v18  ;;  %v1122_v54 = vmul.f32 %v5471_v11, %v953_v18 }
 0x2bd   :  { %v2910_v50 = vpop.f32.mrb[56].mxu0 }
 0x2be   :  { %v3263_v25 = vpop.f32.mrb[56].mxu1  ;;  %v2911_v38 = vadd.f32 %v2910_v50, %v6075_v46  ;;  %v2912_v2 = vpop.f32.mrb[57].mxu0  ;;  %v1249_v49 = vadd.f32 %v1121_v39, %v719_v16  ;;  %v1250_v29 = vadd.f32 %v1122_v54, %v720_v43 }
 0x2bf   :  { %v3264_v21 = vadd.f32 %v3263_v25, %v6078_v6  ;;  %v3265_v57 = vpop.f32.mrb[57].mxu1  ;;  %v2913_v10 = vadd.f32 %v2912_v2, %v6082_v32  ;;  %v2914_v37 = vpop.f32.mrb[58].mxu0 }
 0x2c0   :  { %v3266_v12 = vadd.f32 %v3265_v57, %v6084_v44  ;;  %v3267_v47 = vpop.f32.mrb[58].mxu1  ;;  %4280 = vst [vmem:[#allocation10 + $0x620] sm:$0xff] %v2911_v38  ;;  %v2915_v61 = vadd.f32 %v2914_v37, %v6075_v46  ;;  %v957_v35 = vpop.permute.xlu1 %956  ;;  %v1779_v43 = vadd.f32 %v1651_v19, %v1249_v49  ;;  %v1780_v38 = vadd.f32 %v1652_v53, %v1250_v29 }
 0x2c1   :  { %4282 = vst [vmem:[#allocation10 + $0x630] sm:$0xff] %v3264_v21  ;;  %v3268_v40 = vadd.f32 %v3267_v47, %v6078_v6  ;;  %v2916_v18 = vpop.f32.mrb[59].mxu0  ;;  %4281 = vst [vmem:[#allocation10 + $0x628] sm:$0xff] %v2913_v10  ;;  %v1123_v34 = vmul.f32 %v5461_v7, %v957_v35  ;;  %v1124_v50 = vmul.f32 %v5471_v11, %v957_v35  ;;  %v3269_v39 = vpop.f32.mrb[59].mxu1 }
 0x2c2   :  { %4283 = vst [vmem:[#allocation10 + $0x638] sm:$0xff] %v3266_v12  ;;  %v2917_v25 = vadd.f32 %v2916_v18, %v6082_v32  ;;  %v6716_v54 = vpop.permute.xlu0 %424  ;;  %4287 = vst [vmem:[#allocation10 + $0x658] sm:$0xff] %v2915_v61  ;;  %v3270_v16 = vadd.f32 %v3269_v39, %v6084_v44  ;;  %v1907_v35 = vmax.f32 %v1779_v43, 0.0  ;;  %v1908_v61 = vmax.f32 %v1780_v38, 0.0 }
 0x2c3   :  { %4289 = vst [vmem:[#allocation10 + $0x668] sm:$0xff] %v3268_v40  ;;  %v1251_v21 = vadd.f32 %v1123_v34, %v721_v33  ;;  %v1252_v2 = vadd.f32 %v1124_v50, %v722_v63  ;;  %v586_v29 = vmul.f32 %v5466_v9, %v6694_v62 }
 0x2c4   :  { %4288 = vst [vmem:[#allocation10 + $0x660] sm:$0xff] %v2917_v25  ;;  %4290 = vst [vmem:[#allocation10 + $0x670] sm:$0xff] %v3270_v16  ;;  %v1487_v1 = vpop.permute.xlu1 %1486 }
 0x2c5   :  { %v1653_v57 = vmul.f32 %v5481_v20, %v1487_v1  ;;  %v1654_v10 = vmul.f32 %v5489_v17, %v1487_v1 }
 0x2c6   :  { %v6721_v47 = vpop.permute.xlu0 %434 }
 0x2c7   :  { %v1781_v12 = vadd.f32 %v1653_v57, %v1251_v21  ;;  %v1782_v37 = vadd.f32 %v1654_v10, %v1252_v2  ;;  %v587_v21 = vmul.f32 %v5457_v4, %v6694_v62 }
 0x2c9   :  { %v1909_v40 = vmax.f32 %v1781_v12, 0.0  ;;  %v1910_v18 = vmax.f32 %v1782_v37, 0.0  ;;  %v410_v39 = vpop.permute.xlu1 %409 }
 0x2ca   :  { %v584_v53 = vmul.f32 %v5466_v9, %v410_v39  ;;  %v585_v33 = vmul.f32 %v5457_v4, %v410_v39  ;;  %v1491_v49 = vpop.permute.xlu0 %1490 }
 0x2cb   :  { %v6723_v25 = vpack.c.bf16 %v1909_v40, %v1907_v35  ;;  %v6725_v19 = vpack.c.bf16 %v1910_v18, %v1908_v61 }
 0x2cc   :  { %v723_v37 = vadd.f32 %v5484_v23, %v584_v53  ;;  %v724_v35 = vadd.f32 %v5475_v14, %v585_v33  ;;  %v1655_v33 = vmul.f32 %v5481_v20, %v1491_v49 }
 0x2cd   :  { %7459 = vst [vmem:[#allocation43_spill] sm:$0xff] %v6723_v25  ;;  %7460 = vst [vmem:[#allocation44_spill] sm:$0xff] %v6725_v19  ;;  %3028 = vmatprep.mubr.bf16.mxu0 %v6725_v19  ;;  %3381 = vmatprep.mubr.bf16.mxu1 %v6725_v19 }
 0x2ce   :  { %3029 = vmatmul.mubr.bf16.gmra.mrb[104].mxu0 %v6723_v25  ;;  %3382 = vmatmul.mubr.bf16.gmra.mrb[104].mxu1 %v6723_v25  ;;  %v961_v63 = vpop.permute.xlu1 %960 }
 0x2cf   :  { %v2920_v34 = vpop.f32.mrb[60].mxu0  ;;  %v1125_v50 = vmul.f32 %v5461_v7, %v961_v63  ;;  %v1126_v16 = vmul.f32 %v5471_v11, %v961_v63  ;;  %v3273_v38 = vpop.f32.mrb[60].mxu1  ;;  %v725_v63 = vadd.f32 %v5484_v23, %v586_v29 }
 0x2d0   :  { %v2921_v43 = vadd.f32 %v2920_v34, %v6075_v46  ;;  %v2922_v1 = vpop.f32.mrb[61].mxu0  ;;  %v3274_v2 = vadd.f32 %v3273_v38, %v6078_v6  ;;  %v3275_v10 = vpop.f32.mrb[61].mxu1 }
 0x2d1   :  { %v2923_v57 = vadd.f32 %v2922_v1, %v6082_v32  ;;  %v2924_v12 = vpop.f32.mrb[62].mxu0  ;;  %v3276_v61 = vadd.f32 %v3275_v10, %v6084_v44  ;;  %v3277_v18 = vpop.f32.mrb[62].mxu1  ;;  %v1253_v53 = vadd.f32 %v1125_v50, %v723_v37  ;;  %v1254_v25 = vadd.f32 %v1126_v16, %v724_v35 }
 0x2d2   :  { %4294 = vst [vmem:[#allocation10 + $0x690] sm:$0xff] %v2921_v43  ;;  %v2925_v40 = vadd.f32 %v2924_v12, %v6075_v46  ;;  %v2926_v39 = vpop.f32.mrb[63].mxu0  ;;  %4296 = vst [vmem:[#allocation10 + $0x6a0] sm:$0xff] %v3274_v2  ;;  %v3278_v62 = vadd.f32 %v3277_v18, %v6078_v6  ;;  %v965_v34 = vpop.permute.xlu1 %964  ;;  %v1656_v43 = vmul.f32 %v5489_v17, %v1491_v49 }
 0x2d3   :  { %4295 = vst [vmem:[#allocation10 + $0x698] sm:$0xff] %v2923_v57  ;;  %v2927_v38 = vadd.f32 %v2926_v39, %v6082_v32  ;;  %v3279_v1 = vpop.f32.mrb[63].mxu1  ;;  %4297 = vst [vmem:[#allocation10 + $0x6a8] sm:$0xff] %v3276_v61  ;;  %v726_v10 = vadd.f32 %v5475_v14, %v587_v21  ;;  %v1127_v29 = vmul.f32 %v5461_v7, %v965_v34 }
 0x2d4   :  { %4301 = vst [vmem:[#allocation10 + $0x6c8] sm:$0xff] %v2925_v40  ;;  %4303 = vst [vmem:[#allocation10 + $0x6d8] sm:$0xff] %v3278_v62  ;;  %v1128_v2 = vmul.f32 %v5471_v11, %v965_v34  ;;  %v3280_v57 = vadd.f32 %v3279_v1, %v6084_v44  ;;  %v1783_v12 = vadd.f32 %v1655_v33, %v1253_v53  ;;  %v1499_v53 = vpop.permute.xlu0 %1498 }
 0x2d5   :  { %4302 = vst [vmem:[#allocation10 + $0x6d0] sm:$0xff] %v2927_v38  ;;  %v1784_v50 = vadd.f32 %v1656_v43, %v1254_v25  ;;  %v1255_v37 = vadd.f32 %v1127_v29, %v725_v63  ;;  %v590_v33 = vmul.f32 %v5466_v9, %v6716_v54 }
 0x2d6   :  { %4304 = vst [vmem:[#allocation10 + $0x6e0] sm:$0xff] %v3280_v57  ;;  %v1256_v35 = vadd.f32 %v1128_v2, %v726_v10  ;;  %v1911_v18 = vmax.f32 %v1783_v12, 0.0 }
 0x2d7   :  { %v1495_v16 = vpop.permute.xlu1 %1494  ;;  %v1912_v39 = vmax.f32 %v1784_v50, 0.0  ;;  %v591_v50 = vmul.f32 %v5457_v4, %v6716_v54 }
 0x2d8   :  { %v1657_v49 = vmul.f32 %v5481_v20, %v1495_v16  ;;  %v1658_v61 = vmul.f32 %v5489_v17, %v1495_v16 }
 0x2da   :  { %v1785_v40 = vadd.f32 %v1657_v49, %v1255_v37  ;;  %v1786_v21 = vadd.f32 %v1658_v61, %v1256_v35 }
 0x2dc   :  { %v1913_v62 = vmax.f32 %v1785_v40, 0.0  ;;  %v1914_v19 = vmax.f32 %v1786_v21, 0.0  ;;  %v420_v34 = vpop.permute.xlu1 %419 }
 0x2dd   :  { %v588_v25 = vmul.f32 %v5466_v9, %v420_v34  ;;  %v589_v63 = vmul.f32 %v5457_v4, %v420_v34  ;;  %v729_v34 = vadd.f32 %v5484_v23, %v590_v33 }
 0x2de   :  { %v6757_v38 = vpack.c.bf16 %v1913_v62, %v1911_v18  ;;  %v6759_v1 = vpack.c.bf16 %v1914_v19, %v1912_v39 }
 0x2df   :  { %v727_v61 = vadd.f32 %v5484_v23, %v588_v25  ;;  %v728_v40 = vadd.f32 %v5475_v14, %v589_v63  ;;  %v1659_v63 = vmul.f32 %v5481_v20, %v1499_v53 }
 0x2e0   :  { %7461 = vst [vmem:[#allocation45_spill] sm:$0xff] %v6757_v38  ;;  %3038 = vmatprep.mubr.bf16.mxu0 %v6759_v1  ;;  %3391 = vmatprep.mubr.bf16.mxu1 %v6759_v1 }
 0x2e1   :  { %3039 = vmatmul.mubr.bf16.gmra.mrb[108].mxu0 %v6757_v38  ;;  %3392 = vmatmul.mubr.bf16.gmra.mrb[108].mxu1 %v6757_v38  ;;  %v969_v43 = vpop.permute.xlu1 %968 }
 0x2e2   :  { %v2930_v10 = vpop.f32.mrb[64].mxu0  ;;  %v1129_v19 = vmul.f32 %v5461_v7, %v969_v43  ;;  %v1130_v29 = vmul.f32 %v5471_v11, %v969_v43  ;;  %v3283_v57 = vpop.f32.mrb[64].mxu1 }
 0x2e3   :  { %v2931_v2 = vadd.f32 %v2930_v10, %v6075_v46  ;;  %v2932_v12 = vpop.f32.mrb[65].mxu0  ;;  %v3284_v16 = vadd.f32 %v3283_v57, %v6078_v6  ;;  %v3285_v35 = vpop.f32.mrb[65].mxu1 }
 0x2e4   :  { %v2933_v37 = vadd.f32 %v2932_v12, %v6082_v32  ;;  %v2934_v49 = vpop.f32.mrb[66].mxu0  ;;  %v3286_v21 = vadd.f32 %v3285_v35, %v6084_v44  ;;  %v3287_v39 = vpop.f32.mrb[66].mxu1  ;;  %v1257_v25 = vadd.f32 %v1129_v19, %v727_v61  ;;  %v1258_v12 = vadd.f32 %v1130_v29, %v728_v40 }
 0x2e5   :  { %4308 = vst [vmem:[#allocation10 + $0x700] sm:$0xff] %v2931_v2  ;;  %v2935_v18 = vadd.f32 %v2934_v49, %v6075_v46  ;;  %v2936_v62 = vpop.f32.mrb[67].mxu0  ;;  %4310 = vst [vmem:[#allocation10 + $0x710] sm:$0xff] %v3284_v16  ;;  %v3288_v54 = vadd.f32 %v3287_v39, %v6078_v6  ;;  %v973_v43 = vpop.permute.xlu1 %972  ;;  %v1660_v2 = vmul.f32 %v5489_v17, %v1499_v53 }
 0x2e6   :  { %4309 = vst [vmem:[#allocation10 + $0x708] sm:$0xff] %v2933_v37  ;;  %v2937_v10 = vadd.f32 %v2936_v62, %v6082_v32  ;;  %v3289_v57 = vpop.f32.mrb[67].mxu1  ;;  %4311 = vst [vmem:[#allocation10 + $0x718] sm:$0xff] %v3286_v21  ;;  %v730_v35 = vadd.f32 %v5475_v14, %v591_v50  ;;  %v1131_v33 = vmul.f32 %v5461_v7, %v973_v43 }
 0x2e7   :  { %4315 = vst [vmem:[#allocation10 + $0x738] sm:$0xff] %v2935_v18  ;;  %4317 = vst [vmem:[#allocation10 + $0x748] sm:$0xff] %v3288_v54  ;;  %v1132_v16 = vmul.f32 %v5471_v11, %v973_v43  ;;  %v3290_v37 = vadd.f32 %v3289_v57, %v6084_v44  ;;  %v1787_v49 = vadd.f32 %v1659_v63, %v1257_v25 }
 0x2e8   :  { %4316 = vst [vmem:[#allocation10 + $0x740] sm:$0xff] %v2937_v10  ;;  %v1788_v19 = vadd.f32 %v1660_v2, %v1258_v12  ;;  %v1259_v61 = vadd.f32 %v1131_v33, %v729_v34  ;;  %v1507_v12 = vpop.permute.xlu0 %1506 }
 0x2e9   :  { %4318 = vst [vmem:[#allocation10 + $0x750] sm:$0xff] %v3290_v37  ;;  %v1260_v40 = vadd.f32 %v1132_v16, %v730_v35  ;;  %v1915_v39 = vmax.f32 %v1787_v49, 0.0 }
 0x2ea   :  { %v1503_v29 = vpop.permute.xlu1 %1502  ;;  %v1916_v62 = vmax.f32 %v1788_v19, 0.0 }
 0x2eb   :  { %v1661_v53 = vmul.f32 %v5481_v20, %v1503_v29  ;;  %v1662_v21 = vmul.f32 %v5489_v17, %v1503_v29 }
 0x2ed   :  { %v1789_v18 = vadd.f32 %v1661_v53, %v1259_v61  ;;  %v1790_v50 = vadd.f32 %v1662_v21, %v1260_v40 }
 0x2ef   :  { %v1917_v54 = vmax.f32 %v1789_v18, 0.0  ;;  %v1918_v38 = vmax.f32 %v1790_v50, 0.0  ;;  %v430_v43 = vpop.permute.xlu1 %429 }
 0x2f0   :  { %v592_v25 = vmul.f32 %v5466_v9, %v430_v43  ;;  %v593_v34 = vmul.f32 %v5457_v4, %v430_v43 }
 0x2f1   :  { %v6791_v10 = vpack.c.bf16 %v1917_v54, %v1915_v39  ;;  %v6793_v57 = vpack.c.bf16 %v1918_v38, %v1916_v62  ;;  %v594_v62 = vmul.f32 %v5466_v9, %v6721_v47  ;;  %v595_v54 = vmul.f32 %v5457_v4, %v6721_v47 }
 0x2f2   :  { %v731_v40 = vadd.f32 %v5484_v23, %v592_v25  ;;  %v732_v53 = vadd.f32 %v5475_v14, %v593_v34 }
 0x2f3   :  { %7462 = vst [vmem:[#allocation46_spill] sm:$0xff] %v6791_v10  ;;  %7463 = vst [vmem:[#allocation47_spill] sm:$0xff] %v6793_v57  ;;  %3048 = vmatprep.mubr.bf16.mxu0 %v6793_v57  ;;  %3401 = vmatprep.mubr.bf16.mxu1 %v6793_v57 }
 0x2f4   :  { %3049 = vmatmul.mubr.bf16.gmra.mrb[112].mxu0 %v6791_v10  ;;  %3402 = vmatmul.mubr.bf16.gmra.mrb[112].mxu1 %v6791_v10  ;;  %v977_v63 = vpop.permute.xlu1 %976 }
 0x2f5   :  { %v2940_v2 = vpop.f32.mrb[68].mxu0  ;;  %v1133_v35 = vmul.f32 %v5461_v7, %v977_v63  ;;  %v1134_v38 = vmul.f32 %v5471_v11, %v977_v63  ;;  %v3293_v16 = vpop.f32.mrb[68].mxu1 }
 0x2f6   :  { %v2941_v33 = vadd.f32 %v2940_v2, %v6075_v46  ;;  %v2942_v37 = vpop.f32.mrb[69].mxu0  ;;  %v3294_v49 = vadd.f32 %v3293_v16, %v6078_v6  ;;  %v3295_v29 = vpop.f32.mrb[69].mxu1  ;;  %v1663_v16 = vmul.f32 %v5481_v20, %v1507_v12 }
 0x2f7   :  { %v2943_v19 = vadd.f32 %v2942_v37, %v6082_v32  ;;  %v2944_v61 = vpop.f32.mrb[70].mxu0  ;;  %v3296_v21 = vadd.f32 %v3295_v29, %v6084_v44  ;;  %v3297_v50 = vpop.f32.mrb[70].mxu1  ;;  %v1261_v2 = vadd.f32 %v1133_v35, %v731_v40  ;;  %v1664_v37 = vmul.f32 %v5489_v17, %v1507_v12 }
 0x2f8   :  { %4322 = vst [vmem:[#allocation10 + $0x770] sm:$0xff] %v2941_v33  ;;  %v2945_v18 = vadd.f32 %v2944_v61, %v6075_v46  ;;  %v2946_v39 = vpop.f32.mrb[71].mxu0  ;;  %4324 = vst [vmem:[#allocation10 + $0x780] sm:$0xff] %v3294_v49  ;;  %v3298_v43 = vadd.f32 %v3297_v50, %v6078_v6  ;;  %v981_v25 = vpop.permute.xlu1 %980  ;;  %v1262_v33 = vadd.f32 %v1134_v38, %v732_v53 }
 0x2f9   :  { %4323 = vst [vmem:[#allocation10 + $0x778] sm:$0xff] %v2943_v19  ;;  %v2947_v34 = vadd.f32 %v2946_v39, %v6082_v32  ;;  %v3299_v63 = vpop.f32.mrb[71].mxu1  ;;  %4325 = vst [vmem:[#allocation10 + $0x788] sm:$0xff] %v3296_v21  ;;  %v1135_v29 = vmul.f32 %v5461_v7, %v981_v25  ;;  %v1136_v47 = vmul.f32 %v5471_v11, %v981_v25 }
 0x2fa   :  { %4329 = vst [vmem:[#allocation10 + $0x7a8] sm:$0xff] %v2945_v18  ;;  %4331 = vst [vmem:[#allocation10 + $0x7b8] sm:$0xff] %v3298_v43  ;;  %v3300_v49 = vadd.f32 %v3299_v63, %v6084_v44  ;;  %v733_v19 = vadd.f32 %v5484_v23, %v594_v62  ;;  %v734_v61 = vadd.f32 %v5475_v14, %v595_v54  ;;  %v1515_v43 = vpop.permute.xlu0 %1514 }
 0x2fb   :  { %4330 = vst [vmem:[#allocation10 + $0x7b0] sm:$0xff] %v2947_v34  ;;  %v1791_v35 = vadd.f32 %v1663_v16, %v1261_v2  ;;  %v1792_v38 = vadd.f32 %v1664_v37, %v1262_v33 }
 0x2fc   :  { %4332 = vst [vmem:[#allocation10 + $0x7c0] sm:$0xff] %v3300_v49  ;;  %v1263_v53 = vadd.f32 %v1135_v29, %v733_v19  ;;  %v1264_v12 = vadd.f32 %v1136_v47, %v734_v61 }
 0x2fd   :  { %v1511_v40 = vpop.permute.xlu1 %1510  ;;  %v1919_v25 = vmax.f32 %v1791_v35, 0.0  ;;  %v1920_v34 = vmax.f32 %v1792_v38, 0.0 }
 0x2fe   :  { %v1665_v21 = vmul.f32 %v5481_v20, %v1511_v40  ;;  %v1666_v18 = vmul.f32 %v5489_v17, %v1511_v40  ;;  %v445_v2 = vpop.permute.xlu0 %444 }
 0x2ff   :  { %v598_v49 = vmul.f32 %v5466_v9, %v445_v2  ;;  %v599_v38 = vmul.f32 %v5457_v4, %v445_v2 }
 0x300   :  { %v1793_v50 = vadd.f32 %v1665_v21, %v1263_v53  ;;  %v1794_v39 = vadd.f32 %v1666_v18, %v1264_v12 }
 0x302   :  { %v1921_v63 = vmax.f32 %v1793_v50, 0.0  ;;  %v1922_v10 = vmax.f32 %v1794_v39, 0.0  ;;  %v440_v62 = vpop.permute.xlu1 %439 }
 0x303   :  { %v596_v33 = vmul.f32 %v5466_v9, %v440_v62  ;;  %v597_v16 = vmul.f32 %v5457_v4, %v440_v62 }
 0x304   :  { %v6825_v57 = vpack.c.bf16 %v1921_v63, %v1919_v25  ;;  %v6827_v54 = vpack.c.bf16 %v1922_v10, %v1920_v34 }
 0x305   :  { %v735_v18 = vadd.f32 %v5484_v23, %v596_v33  ;;  %v736_v50 = vadd.f32 %v5475_v14, %v597_v16  ;;  %v737_v33 = vadd.f32 %v5484_v23, %v598_v49  ;;  %v738_v16 = vadd.f32 %v5475_v14, %v599_v38 }
 0x306   :  { %7464 = vst [vmem:[#allocation48_spill] sm:$0xff] %v6825_v57  ;;  %7465 = vst [vmem:[#allocation49_spill] sm:$0xff] %v6827_v54  ;;  %3058 = vmatprep.mubr.bf16.mxu0 %v6827_v54  ;;  %3411 = vmatprep.mubr.bf16.mxu1 %v6827_v54 }
 0x307   :  { %3059 = vmatmul.mubr.bf16.gmra.mrb[116].mxu0 %v6825_v57  ;;  %3412 = vmatmul.mubr.bf16.gmra.mrb[116].mxu1 %v6825_v57  ;;  %v985_v37 = vpop.permute.xlu1 %984 }
 0x308   :  { %v2950_v29 = vpop.f32.mrb[72].mxu0  ;;  %v1137_v47 = vmul.f32 %v5461_v7, %v985_v37  ;;  %v1138_v10 = vmul.f32 %v5471_v11, %v985_v37  ;;  %v3303_v61 = vpop.f32.mrb[72].mxu1 }
 0x309   :  { %v2951_v19 = vadd.f32 %v2950_v29, %v6075_v46  ;;  %v2952_v35 = vpop.f32.mrb[73].mxu0  ;;  %v3304_v40 = vadd.f32 %v3303_v61, %v6078_v6  ;;  %v3305_v12 = vpop.f32.mrb[73].mxu1 }
 0x30a   :  { %v2953_v53 = vadd.f32 %v2952_v35, %v6082_v32  ;;  %v2954_v21 = vpop.f32.mrb[74].mxu0  ;;  %v3306_v39 = vadd.f32 %v3305_v12, %v6084_v44  ;;  %v3307_v34 = vpop.f32.mrb[74].mxu1  ;;  %v1265_v61 = vadd.f32 %v1137_v47, %v735_v18  ;;  %v1266_v35 = vadd.f32 %v1138_v10, %v736_v50 }
 0x30b   :  { %4336 = vst [vmem:[#allocation10 + $0x7e0] sm:$0xff] %v2951_v19  ;;  %v2955_v25 = vadd.f32 %v2954_v21, %v6075_v46  ;;  %v2956_v63 = vpop.f32.mrb[75].mxu0  ;;  %4338 = vst [vmem:[#allocation10 + $0x7f0] sm:$0xff] %v3304_v40  ;;  %v3308_v62 = vadd.f32 %v3307_v34, %v6078_v6  ;;  %v989_v2 = vpop.permute.xlu1 %988  ;;  %v1667_v12 = vmul.f32 %v5481_v20, %v1515_v43 }
 0x30c   :  { %4337 = vst [vmem:[#allocation10 + $0x7e8] sm:$0xff] %v2953_v53  ;;  %v2957_v37 = vadd.f32 %v2956_v63, %v6082_v32  ;;  %v3309_v29 = vpop.f32.mrb[75].mxu1  ;;  %4339 = vst [vmem:[#allocation10 + $0x7f8] sm:$0xff] %v3306_v39  ;;  %v1139_v19 = vmul.f32 %v5461_v7, %v989_v2  ;;  %v1140_v40 = vmul.f32 %v5471_v11, %v989_v2  ;;  %v455_v63 = vpop.permute.xlu0 %454 }
 0x30d   :  { %4343 = vst [vmem:[#allocation10 + $0x818] sm:$0xff] %v2955_v25  ;;  %4345 = vst [vmem:[#allocation10 + $0x828] sm:$0xff] %v3308_v62  ;;  %v3310_v53 = vadd.f32 %v3309_v29, %v6084_v44  ;;  %v1668_v21 = vmul.f32 %v5489_v17, %v1515_v43  ;;  %v1795_v47 = vadd.f32 %v1667_v12, %v1265_v61 }
 0x30e   :  { %4344 = vst [vmem:[#allocation10 + $0x820] sm:$0xff] %v2957_v37  ;;  %v1267_v18 = vadd.f32 %v1139_v19, %v737_v33  ;;  %v1268_v50 = vadd.f32 %v1140_v40, %v738_v16 }
 0x30f   :  { %4346 = vst [vmem:[#allocation10 + $0x830] sm:$0xff] %v3310_v53  ;;  %v1796_v10 = vadd.f32 %v1668_v21, %v1266_v35  ;;  %v1923_v62 = vmax.f32 %v1795_v47, 0.0 }
 0x310   :  { %v1519_v49 = vpop.permute.xlu1 %1518  ;;  %v1523_v33 = vpop.permute.xlu0 %1522 }
 0x311   :  { %v1669_v38 = vmul.f32 %v5481_v20, %v1519_v49  ;;  %v1670_v39 = vmul.f32 %v5489_v17, %v1519_v49  ;;  %v1924_v2 = vmax.f32 %v1796_v10, 0.0 }
 0x313   :  { %v1797_v25 = vadd.f32 %v1669_v38, %v1267_v18  ;;  %v1798_v34 = vadd.f32 %v1670_v39, %v1268_v50 }
 0x315   :  { %v1925_v37 = vmax.f32 %v1797_v25, 0.0  ;;  %v1926_v29 = vmax.f32 %v1798_v34, 0.0  ;;  %v450_v57 = vpop.permute.xlu1 %449 }
 0x316   :  { %v600_v61 = vmul.f32 %v5466_v9, %v450_v57  ;;  %v601_v35 = vmul.f32 %v5457_v4, %v450_v57 }
 0x317   :  { %v6857_v54 = vpack.c.bf16 %v1925_v37, %v1923_v62  ;;  %v6859_v43 = vpack.c.bf16 %v1926_v29, %v1924_v2  ;;  %v602_v2 = vmul.f32 %v5466_v9, %v455_v63  ;;  %v603_v37 = vmul.f32 %v5457_v4, %v455_v63 }
 0x318   :  { %v739_v50 = vadd.f32 %v5484_v23, %v600_v61  ;;  %v740_v38 = vadd.f32 %v5475_v14, %v601_v35 }
 0x319   :  { %3068 = vmatprep.mubr.bf16.mxu0 %v6859_v43  ;;  %3421 = vmatprep.mubr.bf16.mxu1 %v6859_v43 }
 0x31a   :  { %3069 = vmatmul.mubr.bf16.gmra.mrb[120].mxu0 %v6857_v54  ;;  %3422 = vmatmul.mubr.bf16.gmra.mrb[120].mxu1 %v6857_v54  ;;  %v993_v16 = vpop.permute.xlu1 %992 }
 0x31b   :  { %v2960_v19 = vpop.f32.mrb[76].mxu0  ;;  %v1141_v40 = vmul.f32 %v5461_v7, %v993_v16  ;;  %v1142_v53 = vmul.f32 %v5471_v11, %v993_v16  ;;  %v3313_v21 = vpop.f32.mrb[76].mxu1 }
 0x31c   :  { %v2961_v12 = vadd.f32 %v2960_v19, %v6075_v46  ;;  %v2962_v47 = vpop.f32.mrb[77].mxu0  ;;  %v3314_v57 = vadd.f32 %v3313_v21, %v6078_v6  ;;  %v3315_v49 = vpop.f32.mrb[77].mxu1  ;;  %v1671_v21 = vmul.f32 %v5481_v20, %v1523_v33 }
 0x31d   :  { %v2963_v10 = vadd.f32 %v2962_v47, %v6082_v32  ;;  %v2964_v18 = vpop.f32.mrb[78].mxu0  ;;  %v3316_v39 = vadd.f32 %v3315_v49, %v6084_v44  ;;  %v3317_v34 = vpop.f32.mrb[78].mxu1  ;;  %v1269_v35 = vadd.f32 %v1141_v40, %v739_v50  ;;  %v1672_v47 = vmul.f32 %v5489_v17, %v1523_v33 }
 0x31e   :  { %4350 = vst [vmem:[#allocation10 + $0x850] sm:$0xff] %v2961_v12  ;;  %v2965_v25 = vadd.f32 %v2964_v18, %v6075_v46  ;;  %v2966_v62 = vpop.f32.mrb[79].mxu0  ;;  %4352 = vst [vmem:[#allocation10 + $0x860] sm:$0xff] %v3314_v57  ;;  %v3318_v29 = vadd.f32 %v3317_v34, %v6078_v6  ;;  %v997_v16 = vpop.permute.xlu1 %996  ;;  %v1270_v12 = vadd.f32 %v1142_v53, %v740_v38 }
 0x31f   :  { %4351 = vst [vmem:[#allocation10 + $0x858] sm:$0xff] %v2963_v10  ;;  %v2967_v61 = vadd.f32 %v2966_v62, %v6082_v32  ;;  %v3319_v19 = vpop.f32.mrb[79].mxu1  ;;  %4353 = vst [vmem:[#allocation10 + $0x868] sm:$0xff] %v3316_v39  ;;  %v1143_v9 = vmul.f32 %v5461_v7, %v997_v16  ;;  %v1144_v4 = vmul.f32 %v5471_v11, %v997_v16 }
 0x320   :  { %4357 = vst [vmem:[#allocation10 + $0x888] sm:$0xff] %v2965_v25  ;;  %4359 = vst [vmem:[#allocation10 + $0x898] sm:$0xff] %v3318_v29  ;;  %v3320_v63 = vadd.f32 %v3319_v19, %v6084_v44  ;;  %v741_v57 = vadd.f32 %v5484_v23, %v602_v2  ;;  %v742_v10 = vadd.f32 %v5475_v14, %v603_v37 }
 0x321   :  { %4358 = vst [vmem:[#allocation10 + $0x890] sm:$0xff] %v2967_v61  ;;  %v1799_v40 = vadd.f32 %v1671_v21, %v1269_v35  ;;  %v1800_v53 = vadd.f32 %v1672_v47, %v1270_v12 }
 0x322   :  { %4360 = vst [vmem:[#allocation10 + $0x8a0] sm:$0xff] %v3320_v63  ;;  %v1271_v18 = vadd.f32 %v1143_v9, %v741_v57  ;;  %v1272_v33 = vadd.f32 %v1144_v4, %v742_v10 }
 0x323   :  { %v1527_v49 = vpop.permute.xlu1 %1526  ;;  %v1927_v11 = vmax.f32 %v1799_v40, 0.0  ;;  %v1928_v25 = vmax.f32 %v1800_v53, 0.0 }
 0x324   :  { %v1673_v50 = vmul.f32 %v5481_v20, %v1527_v49  ;;  %v1674_v38 = vmul.f32 %v5489_v17, %v1527_v49 }
 0x326   :  { %v1801_v7 = vadd.f32 %v1673_v50, %v1271_v18  ;;  %v1802_v39 = vadd.f32 %v1674_v38, %v1272_v33 }
 0x328   :  { %v1929_v34 = vmax.f32 %v1801_v7, 0.0  ;;  %v1930_v62 = vmax.f32 %v1802_v39, 0.0 }
 0x32a   :  { %v6889_v29 = vpack.c.bf16 %v1929_v34, %v1927_v11  ;;  %v6891_v23 = vpack.c.bf16 %v1930_v62, %v1928_v25 }
 0x32c   :  { %3078 = vmatprep.mubr.bf16.mxu0 %v6891_v23  ;;  %3431 = vmatprep.mubr.bf16.mxu1 %v6891_v23 }
 0x32d   :  { %3079 = vmatmul.mubr.bf16.gmra.mrb[124].mxu0 %v6889_v29  ;;  %3432 = vmatmul.mubr.bf16.gmra.mrb[124].mxu1 %v6889_v29 }
 0x32e   :  { %v2970_v14 = vpop.f32.mrb[80].mxu0  ;;  %v3323_v20 = vpop.f32.mrb[80].mxu1  ;;  %3474 = vmatprep.mubr.bf16.mxu0 %v5560_v58  ;;  %3827 = vmatprep.mubr.bf16.mxu1 %v5560_v58 }
 0x32f   :  { %v2971_v17 = vadd.f32 %v2970_v14, %v6075_v46  ;;  %v3324_v2 = vadd.f32 %v3323_v20, %v6078_v6  ;;  %v2972_v37 = vpop.f32.mrb[81].mxu0  ;;  %v3325_v16 = vpop.f32.mrb[81].mxu1 }
 0x330   :  { %v2973_v61 = vadd.f32 %v2972_v37, %v6082_v32  ;;  %v3326_v19 = vadd.f32 %v3325_v16, %v6084_v44  ;;  %v2974_v35 = vpop.f32.mrb[82].mxu0  ;;  %v3327_v12 = vpop.f32.mrb[82].mxu1 }
 0x331   :  { %4364 = vst [vmem:[#allocation10 + $0x8c0] sm:$0xff] %v2971_v17  ;;  %4366 = vst [vmem:[#allocation10 + $0x8d0] sm:$0xff] %v3324_v2  ;;  %v2975_v21 = vadd.f32 %v2974_v35, %v6075_v46  ;;  %v3328_v47 = vadd.f32 %v3327_v12, %v6078_v6  ;;  %v2976_v9 = vpop.f32.mrb[83].mxu0  ;;  %v3329_v58 = vpop.f32.mrb[83].mxu1 }
 0x332   :  { %4365 = vst [vmem:[#allocation10 + $0x8c8] sm:$0xff] %v2973_v61  ;;  %4367 = vst [vmem:[#allocation10 + $0x8d8] sm:$0xff] %v3326_v19  ;;  %v2977_v4 = vadd.f32 %v2976_v9, %v6082_v32  ;;  %v3330_v63 = vadd.f32 %v3329_v58, %v6084_v44 }
 0x333   :  { %4371 = vst [vmem:[#allocation10 + $0x8f8] sm:$0xff] %v2975_v21  ;;  %4373 = vst [vmem:[#allocation10 + $0x908] sm:$0xff] %v3328_v47 }
 0x334   :  { %4372 = vst [vmem:[#allocation10 + $0x900] sm:$0xff] %v2977_v4  ;;  %4374 = vst [vmem:[#allocation10 + $0x910] sm:$0xff] %v3330_v63 }
 0x335   :  { %3475 = vmatmul.mubr.bf16.vlgmr.msra.gmra.mrb[128].mxu0 %v5562_v3  ;;  %3828 = vmatmul.mubr.bf16.vlgmr.msra.gmra.mrb[128].mxu1 %v5562_v3 }
 0x336   :  { %3484 = vmatprep.mubr.bf16.mxu0 %v5566_v24  ;;  %3835 = vmatprep.mubr.bf16.mxu1 %v5566_v24 }
 0x33d   :  { %3485 = vmatmul.mubr.bf16.gmra.mrb[132].mxu0 %v5593_v8  ;;  %3836 = vmatmul.mubr.bf16.gmra.mrb[132].mxu1 %v5593_v8 }
 0x33e   :  { %3494 = vmatprep.mubr.bf16.mxu0 %v5589_v60  ;;  %3843 = vmatprep.mubr.bf16.mxu1 %v5589_v60 }
 0x341   :  { %v2980_v57 = vpop.f32.mrb[84].mxu0  ;;  %v3333_v10 = vpop.f32.mrb[84].mxu1 }
 0x342   :  { %v2981_v40 = vadd.f32 %v2980_v57, %v6075_v46  ;;  %v3334_v53 = vadd.f32 %v3333_v10, %v6078_v6  ;;  %v2982_v49 = vpop.f32.mrb[85].mxu0  ;;  %v3335_v3 = vpop.f32.mrb[85].mxu1 }
 0x343   :  { %v2983_v18 = vadd.f32 %v2982_v49, %v6082_v32  ;;  %v3336_v24 = vadd.f32 %v3335_v3, %v6084_v44  ;;  %v2984_v33 = vpop.f32.mrb[86].mxu0  ;;  %v3337_v50 = vpop.f32.mrb[86].mxu1  ;;  %v7467_v49 = vld [vmem:[#allocation19_spill] sm:$0xff] }
 0x344   :  { %4378 = vst [vmem:[#allocation10 + $0x930] sm:$0xff] %v2981_v40  ;;  %4380 = vst [vmem:[#allocation10 + $0x940] sm:$0xff] %v3334_v53  ;;  %v2985_v8 = vadd.f32 %v2984_v33, %v6075_v46  ;;  %v3338_v60 = vadd.f32 %v3337_v50, %v6078_v6  ;;  %v2986_v38 = vpop.f32.mrb[87].mxu0  ;;  %v3339_v7 = vpop.f32.mrb[87].mxu1  ;;  %v7466_v53 = vld [vmem:[#allocation18_spill] sm:$0xff] }
 0x345   :  { %4379 = vst [vmem:[#allocation10 + $0x938] sm:$0xff] %v2983_v18  ;;  %4381 = vst [vmem:[#allocation10 + $0x948] sm:$0xff] %v3336_v24  ;;  %v2987_v39 = vadd.f32 %v2986_v38, %v6082_v32  ;;  %v3340_v11 = vadd.f32 %v3339_v7, %v6084_v44  ;;  %3495 = vmatmul.mubr.bf16.gmra.mrb[136].mxu0 %v5616_v30  ;;  %3844 = vmatmul.mubr.bf16.gmra.mrb[136].mxu1 %v5616_v30  ;;  %v7468_v7 = vld [vmem:[#allocation20_spill] sm:$0xff] }
 0x346   :  { %4385 = vst [vmem:[#allocation10 + $0x968] sm:$0xff] %v2985_v8  ;;  %4387 = vst [vmem:[#allocation10 + $0x978] sm:$0xff] %v3338_v60  ;;  %3504 = vmatprep.mubr.bf16.mxu0 %v5631_v31  ;;  %3851 = vmatprep.mubr.bf16.mxu1 %v5631_v31 }
 0x347   :  { %4386 = vst [vmem:[#allocation10 + $0x970] sm:$0xff] %v2987_v39  ;;  %4388 = vst [vmem:[#allocation10 + $0x980] sm:$0xff] %v3340_v11 }
 0x34d   :  { %3505 = vmatmul.mubr.bf16.gmra.mrb[140].mxu0 %v5633_v48  ;;  %3852 = vmatmul.mubr.bf16.gmra.mrb[140].mxu1 %v5633_v48 }
 0x34e   :  { %3514 = vmatprep.mubr.bf16.mxu0 %v5678_v15  ;;  %3859 = vmatprep.mubr.bf16.mxu1 %v5678_v15 }
 0x355   :  { %v2990_v25 = vpop.f32.mrb[88].mxu0  ;;  %3515 = vmatmul.mubr.bf16.gmra.mrb[144].mxu0 %v5680_v5  ;;  %3860 = vmatmul.mubr.bf16.gmra.mrb[144].mxu1 %v5680_v5 }
 0x356   :  { %v2991_v30 = vadd.f32 %v2990_v25, %v6075_v46  ;;  %v3343_v34 = vpop.f32.mrb[88].mxu1  ;;  %v2992_v62 = vpop.f32.mrb[89].mxu0  ;;  %3524 = vmatprep.mubr.bf16.mxu0 %v5732_v42  ;;  %3867 = vmatprep.mubr.bf16.mxu1 %v5732_v42 }
 0x357   :  { %v3344_v31 = vadd.f32 %v3343_v34, %v6078_v6  ;;  %v2993_v48 = vadd.f32 %v2992_v62, %v6082_v32  ;;  %v3345_v14 = vpop.f32.mrb[89].mxu1  ;;  %v2994_v20 = vpop.f32.mrb[90].mxu0  ;;  %v7469_v34 = vld [vmem:[#allocation21_spill] sm:$0xff] }
 0x358   :  { %4392 = vst [vmem:[#allocation10 + $0x9a0] sm:$0xff] %v2991_v30  ;;  %v3346_v15 = vadd.f32 %v3345_v14, %v6084_v44  ;;  %v2995_v17 = vadd.f32 %v2994_v20, %v6075_v46  ;;  %v3347_v5 = vpop.f32.mrb[90].mxu1  ;;  %v2996_v2 = vpop.f32.mrb[91].mxu0  ;;  %v7471_v14 = vld [vmem:[#allocation23_spill] sm:$0xff]  ;;  %v7472_v20 = vld [vmem:[#allocation24_spill] sm:$0xff] }
 0x359   :  { %4394 = vst [vmem:[#allocation10 + $0x9b0] sm:$0xff] %v3344_v31  ;;  %4393 = vst [vmem:[#allocation10 + $0x9a8] sm:$0xff] %v2993_v48  ;;  %v3348_v37 = vadd.f32 %v3347_v5, %v6078_v6  ;;  %v2997_v16 = vadd.f32 %v2996_v2, %v6082_v32  ;;  %v3349_v42 = vpop.f32.mrb[91].mxu1  ;;  %v7470_v48 = vld [vmem:[#allocation22_spill] sm:$0xff]  ;;  %v7473_v5 = vld [vmem:[#allocation25_spill] sm:$0xff] }
 0x35a   :  { %4395 = vst [vmem:[#allocation10 + $0x9b8] sm:$0xff] %v3346_v15  ;;  %4399 = vst [vmem:[#allocation10 + $0x9d8] sm:$0xff] %v2995_v17  ;;  %v3350_v61 = vadd.f32 %v3349_v42, %v6084_v44 }
 0x35b   :  { %4401 = vst [vmem:[#allocation10 + $0x9e8] sm:$0xff] %v3348_v37  ;;  %4400 = vst [vmem:[#allocation10 + $0x9e0] sm:$0xff] %v2997_v16 }
 0x35c   :  { %4402 = vst [vmem:[#allocation10 + $0x9f0] sm:$0xff] %v3350_v61 }
 0x35d   :  { %3525 = vmatmul.mubr.bf16.gmra.mrb[148].mxu0 %v5734_v45  ;;  %3868 = vmatmul.mubr.bf16.gmra.mrb[148].mxu1 %v5734_v45 }
 0x35e   :  { %3534 = vmatprep.mubr.bf16.mxu0 %v5788_v41  ;;  %3875 = vmatprep.mubr.bf16.mxu1 %v5788_v41 }
 0x365   :  { %3535 = vmatmul.mubr.bf16.gmra.mrb[152].mxu0 %v5790_v13  ;;  %3876 = vmatmul.mubr.bf16.gmra.mrb[152].mxu1 %v5790_v13 }
 0x366   :  { %3544 = vmatprep.mubr.bf16.mxu0 %v5827_v0  ;;  %3883 = vmatprep.mubr.bf16.mxu1 %v5827_v0 }
 0x368   :  { %v3000_v19 = vpop.f32.mrb[92].mxu0 }
 0x369   :  { %v3001_v35 = vadd.f32 %v3000_v19, %v6075_v46  ;;  %v3353_v12 = vpop.f32.mrb[92].mxu1  ;;  %v3002_v21 = vpop.f32.mrb[93].mxu0 }
 0x36a   :  { %v3354_v47 = vadd.f32 %v3353_v12, %v6078_v6  ;;  %v3003_v45 = vadd.f32 %v3002_v21, %v6082_v32  ;;  %v3355_v9 = vpop.f32.mrb[93].mxu1  ;;  %v3004_v58 = vpop.f32.mrb[94].mxu0 }
 0x36b   :  { %4406 = vst [vmem:[#allocation10 + $0xa10] sm:$0xff] %v3001_v35  ;;  %v3356_v41 = vadd.f32 %v3355_v9, %v6084_v44  ;;  %v3005_v13 = vadd.f32 %v3004_v58, %v6075_v46  ;;  %v3357_v4 = vpop.f32.mrb[94].mxu1  ;;  %v3006_v63 = vpop.f32.mrb[95].mxu0 }
 0x36c   :  { %4408 = vst [vmem:[#allocation10 + $0xa20] sm:$0xff] %v3354_v47  ;;  %4407 = vst [vmem:[#allocation10 + $0xa18] sm:$0xff] %v3003_v45  ;;  %v3358_v0 = vadd.f32 %v3357_v4, %v6078_v6  ;;  %v3007_v57 = vadd.f32 %v3006_v63, %v6082_v32  ;;  %v3359_v10 = vpop.f32.mrb[95].mxu1  ;;  %v7475_v4 = vld [vmem:[#allocation17_spill] sm:$0xff]  ;;  %v7476_v63 = vld [vmem:[#allocation16_spill] sm:$0xff] }
 0x36d   :  { %4409 = vst [vmem:[#allocation10 + $0xa28] sm:$0xff] %v3356_v41  ;;  %4413 = vst [vmem:[#allocation10 + $0xa48] sm:$0xff] %v3005_v13  ;;  %v3360_v40 = vadd.f32 %v3359_v10, %v6084_v44  ;;  %3545 = vmatmul.mubr.bf16.gmra.mrb[156].mxu0 %v5829_v26  ;;  %3884 = vmatmul.mubr.bf16.gmra.mrb[156].mxu1 %v5829_v26  ;;  %v7474_v13 = vld [vmem:[#allocation26_spill] sm:$0xff] }
 0x36e   :  { %4415 = vst [vmem:[#allocation10 + $0xa58] sm:$0xff] %v3358_v0  ;;  %4414 = vst [vmem:[#allocation10 + $0xa50] sm:$0xff] %v3007_v57  ;;  %3554 = vmatprep.mubr.bf16.mxu0 %v5866_v55  ;;  %3891 = vmatprep.mubr.bf16.mxu1 %v5866_v55 }
 0x36f   :  { %4416 = vst [vmem:[#allocation10 + $0xa60] sm:$0xff] %v3360_v40 }
 0x375   :  { %3555 = vmatmul.mubr.bf16.gmra.mrb[160].mxu0 %v7466_v53  ;;  %3892 = vmatmul.mubr.bf16.gmra.mrb[160].mxu1 %v7466_v53 }
 0x376   :  { %3564 = vmatprep.mubr.bf16.mxu0 %v7467_v49  ;;  %3899 = vmatprep.mubr.bf16.mxu1 %v7467_v49 }
 0x37b   :  { %v3010_v3 = vpop.f32.mrb[96].mxu0  ;;  %v3363_v18 = vpop.f32.mrb[96].mxu1 }
 0x37c   :  { %v3011_v24 = vadd.f32 %v3010_v3, %v6075_v46  ;;  %v3364_v26 = vadd.f32 %v3363_v18, %v6078_v6  ;;  %v3012_v33 = vpop.f32.mrb[97].mxu0  ;;  %v3365_v50 = vpop.f32.mrb[97].mxu1 }
 0x37d   :  { %v3013_v8 = vadd.f32 %v3012_v33, %v6082_v32  ;;  %v3366_v55 = vadd.f32 %v3365_v50, %v6084_v44  ;;  %v3014_v60 = vpop.f32.mrb[98].mxu0  ;;  %v3367_v38 = vpop.f32.mrb[98].mxu1  ;;  %3565 = vmatmul.mubr.bf16.gmra.mrb[164].mxu0 %v7468_v7  ;;  %3900 = vmatmul.mubr.bf16.gmra.mrb[164].mxu1 %v7468_v7  ;;  %v7478_v7 = vld [vmem:[#allocation28_spill] sm:$0xff] }
 0x37e   :  { %4420 = vst [vmem:[#allocation10 + $0xa80] sm:$0xff] %v3011_v24  ;;  %4422 = vst [vmem:[#allocation10 + $0xa90] sm:$0xff] %v3364_v26  ;;  %v3015_v39 = vadd.f32 %v3014_v60, %v6075_v46  ;;  %v3368_v11 = vadd.f32 %v3367_v38, %v6078_v6  ;;  %v3016_v25 = vpop.f32.mrb[99].mxu0  ;;  %v3369_v30 = vpop.f32.mrb[99].mxu1  ;;  %3574 = vmatprep.mubr.bf16.mxu0 %v7469_v34  ;;  %3907 = vmatprep.mubr.bf16.mxu1 %v7469_v34  ;;  %v7477_v38 = vld [vmem:[#allocation27_spill] sm:$0xff] }
 0x37f   :  { %4421 = vst [vmem:[#allocation10 + $0xa88] sm:$0xff] %v3013_v8  ;;  %4423 = vst [vmem:[#allocation10 + $0xa98] sm:$0xff] %v3366_v55  ;;  %v3017_v62 = vadd.f32 %v3016_v25, %v6082_v32  ;;  %v3370_v31 = vadd.f32 %v3369_v30, %v6084_v44 }
 0x380   :  { %4427 = vst [vmem:[#allocation10 + $0xab8] sm:$0xff] %v3015_v39  ;;  %4429 = vst [vmem:[#allocation10 + $0xac8] sm:$0xff] %v3368_v11  ;;  %v7479_v39 = vld [vmem:[#allocation29_spill] sm:$0xff]  ;;  %v7480_v11 = vld [vmem:[#allocation30_spill] sm:$0xff] }
 0x381   :  { %4428 = vst [vmem:[#allocation10 + $0xac0] sm:$0xff] %v3017_v62  ;;  %4430 = vst [vmem:[#allocation10 + $0xad0] sm:$0xff] %v3370_v31 }
 0x385   :  { %3575 = vmatmul.mubr.bf16.gmra.mrb[168].mxu0 %v7470_v48  ;;  %3908 = vmatmul.mubr.bf16.gmra.mrb[168].mxu1 %v7470_v48 }
 0x386   :  { %3584 = vmatprep.mubr.bf16.mxu0 %v7471_v14  ;;  %3915 = vmatprep.mubr.bf16.mxu1 %v7471_v14  ;;  %v7481_v14 = vld [vmem:[#allocation31_spill] sm:$0xff] }
 0x38d   :  { %3585 = vmatmul.mubr.bf16.gmra.mrb[172].mxu0 %v7472_v20  ;;  %3916 = vmatmul.mubr.bf16.gmra.mrb[172].mxu1 %v7472_v20 }
 0x38e   :  { %v3020_v15 = vpop.f32.mrb[100].mxu0  ;;  %v3373_v17 = vpop.f32.mrb[100].mxu1  ;;  %3594 = vmatprep.mubr.bf16.mxu0 %v7473_v5  ;;  %3923 = vmatprep.mubr.bf16.mxu1 %v7473_v5 }
 0x38f   :  { %v3021_v2 = vadd.f32 %v3020_v15, %v6075_v46  ;;  %v3374_v37 = vadd.f32 %v3373_v17, %v6078_v6  ;;  %v3022_v16 = vpop.f32.mrb[101].mxu0  ;;  %v3375_v42 = vpop.f32.mrb[101].mxu1 }
 0x390   :  { %v3023_v61 = vadd.f32 %v3022_v16, %v6082_v32  ;;  %v3376_v19 = vadd.f32 %v3375_v42, %v6084_v44  ;;  %v3024_v35 = vpop.f32.mrb[102].mxu0  ;;  %v3377_v12 = vpop.f32.mrb[102].mxu1 }
 0x391   :  { %4434 = vst [vmem:[#allocation10 + $0xaf0] sm:$0xff] %v3021_v2  ;;  %4436 = vst [vmem:[#allocation10 + $0xb00] sm:$0xff] %v3374_v37  ;;  %v3025_v21 = vadd.f32 %v3024_v35, %v6075_v46  ;;  %v3378_v47 = vadd.f32 %v3377_v12, %v6078_v6  ;;  %v3026_v45 = vpop.f32.mrb[103].mxu0  ;;  %v3379_v9 = vpop.f32.mrb[103].mxu1  ;;  %v7482_v2 = vld [vmem:[#allocation32_spill] sm:$0xff]  ;;  %v7483_v12 = vld [vmem:[#allocation33_spill] sm:$0xff] }
 0x392   :  { %4435 = vst [vmem:[#allocation10 + $0xaf8] sm:$0xff] %v3023_v61  ;;  %4437 = vst [vmem:[#allocation10 + $0xb08] sm:$0xff] %v3376_v19  ;;  %v3027_v58 = vadd.f32 %v3026_v45, %v6082_v32  ;;  %v3380_v41 = vadd.f32 %v3379_v9, %v6084_v44 }
 0x393   :  { %4441 = vst [vmem:[#allocation10 + $0xb28] sm:$0xff] %v3025_v21  ;;  %4443 = vst [vmem:[#allocation10 + $0xb38] sm:$0xff] %v3378_v47  ;;  %v7484_v21 = vld [vmem:[#allocation34_spill] sm:$0xff]  ;;  %v7485_v47 = vld [vmem:[#allocation35_spill] sm:$0xff] }
 0x394   :  { %4442 = vst [vmem:[#allocation10 + $0xb30] sm:$0xff] %v3027_v58  ;;  %4444 = vst [vmem:[#allocation10 + $0xb40] sm:$0xff] %v3380_v41 }
 0x395   :  { %3595 = vmatmul.mubr.bf16.gmra.mrb[176].mxu0 %v7474_v13  ;;  %3924 = vmatmul.mubr.bf16.gmra.mrb[176].mxu1 %v7474_v13 }
 0x396   :  { %3604 = vmatprep.mubr.bf16.mxu0 %v7475_v4  ;;  %3931 = vmatprep.mubr.bf16.mxu1 %v7475_v4 }
 0x39d   :  { %3605 = vmatmul.mubr.bf16.gmra.mrb[180].mxu0 %v7476_v63  ;;  %3932 = vmatmul.mubr.bf16.gmra.mrb[180].mxu1 %v7476_v63 }
 0x39e   :  { %3614 = vmatprep.mubr.bf16.mxu0 %v6164_v52  ;;  %3939 = vmatprep.mubr.bf16.mxu1 %v6164_v52 }
 0x3a1   :  { %v3030_v0 = vpop.f32.mrb[104].mxu0  ;;  %v3383_v57 = vpop.f32.mrb[104].mxu1 }
 0x3a2   :  { %v3031_v10 = vadd.f32 %v3030_v0, %v6075_v46  ;;  %v3384_v40 = vadd.f32 %v3383_v57, %v6078_v6  ;;  %v3032_v53 = vpop.f32.mrb[105].mxu0  ;;  %v3385_v49 = vpop.f32.mrb[105].mxu1 }
 0x3a3   :  { %v3033_v3 = vadd.f32 %v3032_v53, %v6082_v32  ;;  %v3386_v18 = vadd.f32 %v3385_v49, %v6084_v44  ;;  %v3034_v24 = vpop.f32.mrb[106].mxu0  ;;  %v3387_v26 = vpop.f32.mrb[106].mxu1 }
 0x3a4   :  { %4448 = vst [vmem:[#allocation10 + $0xb60] sm:$0xff] %v3031_v10  ;;  %4450 = vst [vmem:[#allocation10 + $0xb70] sm:$0xff] %v3384_v40  ;;  %v3035_v33 = vadd.f32 %v3034_v24, %v6075_v46  ;;  %v3388_v52 = vadd.f32 %v3387_v26, %v6078_v6  ;;  %v3036_v50 = vpop.f32.mrb[107].mxu0  ;;  %v3389_v8 = vpop.f32.mrb[107].mxu1  ;;  %v7486_v24 = vld [vmem:[#allocation36_spill] sm:$0xff]  ;;  %v7487_v26 = vld [vmem:[#allocation38_spill] sm:$0xff] }
 0x3a5   :  { %4449 = vst [vmem:[#allocation10 + $0xb68] sm:$0xff] %v3033_v3  ;;  %4451 = vst [vmem:[#allocation10 + $0xb78] sm:$0xff] %v3386_v18  ;;  %v3037_v55 = vadd.f32 %v3036_v50, %v6082_v32  ;;  %v3390_v60 = vadd.f32 %v3389_v8, %v6084_v44  ;;  %3615 = vmatmul.mubr.bf16.gmra.mrb[184].mxu0 %v7477_v38  ;;  %3940 = vmatmul.mubr.bf16.gmra.mrb[184].mxu1 %v7477_v38 }
 0x3a6   :  { %4455 = vst [vmem:[#allocation10 + $0xb98] sm:$0xff] %v3035_v33  ;;  %4457 = vst [vmem:[#allocation10 + $0xba8] sm:$0xff] %v3388_v52  ;;  %3624 = vmatprep.mubr.bf16.mxu0 %v7478_v7  ;;  %3947 = vmatprep.mubr.bf16.mxu1 %v7478_v7  ;;  %v7488_v33 = vld [vmem:[#allocation37_spill] sm:$0xff]  ;;  %v7489_v52 = vld [vmem:[#allocation40_spill] sm:$0xff] }
 0x3a7   :  { %4456 = vst [vmem:[#allocation10 + $0xba0] sm:$0xff] %v3037_v55  ;;  %4458 = vst [vmem:[#allocation10 + $0xbb0] sm:$0xff] %v3390_v60 }
 0x3ad   :  { %3625 = vmatmul.mubr.bf16.gmra.mrb[188].mxu0 %v7479_v39  ;;  %3948 = vmatmul.mubr.bf16.gmra.mrb[188].mxu1 %v7479_v39 }
 0x3ae   :  { %3634 = vmatprep.mubr.bf16.mxu0 %v7480_v11  ;;  %3955 = vmatprep.mubr.bf16.mxu1 %v7480_v11 }
 0x3b4   :  { %v3040_v25 = vpop.f32.mrb[108].mxu0  ;;  %v3393_v30 = vpop.f32.mrb[108].mxu1 }
 0x3b5   :  { %v3041_v34 = vadd.f32 %v3040_v25, %v6075_v46  ;;  %v3394_v62 = vadd.f32 %v3393_v30, %v6078_v6  ;;  %v3042_v31 = vpop.f32.mrb[109].mxu0  ;;  %v3395_v48 = vpop.f32.mrb[109].mxu1  ;;  %3635 = vmatmul.mubr.bf16.gmra.mrb[192].mxu0 %v7481_v14  ;;  %3956 = vmatmul.mubr.bf16.gmra.mrb[192].mxu1 %v7481_v14  ;;  %v7490_v14 = vld [vmem:[#allocation39_spill] sm:$0xff] }
 0x3b6   :  { %v3043_v20 = vadd.f32 %v3042_v31, %v6082_v32  ;;  %v3396_v15 = vadd.f32 %v3395_v48, %v6084_v44  ;;  %v3044_v17 = vpop.f32.mrb[110].mxu0  ;;  %v3397_v5 = vpop.f32.mrb[110].mxu1  ;;  %3644 = vmatprep.mubr.bf16.mxu0 %v7482_v2  ;;  %3963 = vmatprep.mubr.bf16.mxu1 %v7482_v2 }
 0x3b7   :  { %4462 = vst [vmem:[#allocation10 + $0xbd0] sm:$0xff] %v3041_v34  ;;  %4464 = vst [vmem:[#allocation10 + $0xbe0] sm:$0xff] %v3394_v62  ;;  %v3045_v37 = vadd.f32 %v3044_v17, %v6075_v46  ;;  %v3398_v16 = vadd.f32 %v3397_v5, %v6078_v6  ;;  %v3046_v42 = vpop.f32.mrb[111].mxu0  ;;  %v3399_v61 = vpop.f32.mrb[111].mxu1  ;;  %v7491_v17 = vld [vmem:[#allocation42_spill] sm:$0xff]  ;;  %v7492_v5 = vld [vmem:[#allocation41_spill] sm:$0xff] }
 0x3b8   :  { %4463 = vst [vmem:[#allocation10 + $0xbd8] sm:$0xff] %v3043_v20  ;;  %4465 = vst [vmem:[#allocation10 + $0xbe8] sm:$0xff] %v3396_v15  ;;  %v3047_v19 = vadd.f32 %v3046_v42, %v6082_v32  ;;  %v3400_v35 = vadd.f32 %v3399_v61, %v6084_v44 }
 0x3b9   :  { %4469 = vst [vmem:[#allocation10 + $0xc08] sm:$0xff] %v3045_v37  ;;  %4471 = vst [vmem:[#allocation10 + $0xc18] sm:$0xff] %v3398_v16 }
 0x3ba   :  { %4470 = vst [vmem:[#allocation10 + $0xc10] sm:$0xff] %v3047_v19  ;;  %4472 = vst [vmem:[#allocation10 + $0xc20] sm:$0xff] %v3400_v35 }
 0x3bd   :  { %3645 = vmatmul.mubr.bf16.gmra.mrb[196].mxu0 %v7483_v12  ;;  %3964 = vmatmul.mubr.bf16.gmra.mrb[196].mxu1 %v7483_v12 }
 0x3be   :  { %3654 = vmatprep.mubr.bf16.mxu0 %v7484_v21  ;;  %3971 = vmatprep.mubr.bf16.mxu1 %v7484_v21 }
 0x3c5   :  { %3655 = vmatmul.mubr.bf16.gmra.mrb[200].mxu0 %v7485_v47  ;;  %3972 = vmatmul.mubr.bf16.gmra.mrb[200].mxu1 %v7485_v47 }
 0x3c6   :  { %3664 = vmatprep.mubr.bf16.mxu0 %v6418_v59  ;;  %3979 = vmatprep.mubr.bf16.mxu1 %v6418_v59 }
 0x3c7   :  { %v3050_v45 = vpop.f32.mrb[112].mxu0  ;;  %v3403_v9 = vpop.f32.mrb[112].mxu1 }
 0x3c8   :  { %v3051_v58 = vadd.f32 %v3050_v45, %v6075_v46  ;;  %v3404_v41 = vadd.f32 %v3403_v9, %v6078_v6  ;;  %v3052_v13 = vpop.f32.mrb[113].mxu0  ;;  %v3405_v4 = vpop.f32.mrb[113].mxu1 }
 0x3c9   :  { %v3053_v63 = vadd.f32 %v3052_v13, %v6082_v32  ;;  %v3406_v0 = vadd.f32 %v3405_v4, %v6084_v44  ;;  %v3054_v57 = vpop.f32.mrb[114].mxu0  ;;  %v3407_v10 = vpop.f32.mrb[114].mxu1 }
 0x3ca   :  { %4476 = vst [vmem:[#allocation10 + $0xc40] sm:$0xff] %v3051_v58  ;;  %4478 = vst [vmem:[#allocation10 + $0xc50] sm:$0xff] %v3404_v41  ;;  %v3055_v40 = vadd.f32 %v3054_v57, %v6075_v46  ;;  %v3408_v59 = vadd.f32 %v3407_v10, %v6078_v6  ;;  %v3056_v53 = vpop.f32.mrb[115].mxu0  ;;  %v3409_v49 = vpop.f32.mrb[115].mxu1  ;;  %v7493_v41 = vld [vmem:[#allocation44_spill] sm:$0xff] }
 0x3cb   :  { %4477 = vst [vmem:[#allocation10 + $0xc48] sm:$0xff] %v3053_v63  ;;  %4479 = vst [vmem:[#allocation10 + $0xc58] sm:$0xff] %v3406_v0  ;;  %v3057_v3 = vadd.f32 %v3056_v53, %v6082_v32  ;;  %v3410_v18 = vadd.f32 %v3409_v49, %v6084_v44 }
 0x3cc   :  { %4483 = vst [vmem:[#allocation10 + $0xc78] sm:$0xff] %v3055_v40  ;;  %4485 = vst [vmem:[#allocation10 + $0xc88] sm:$0xff] %v3408_v59 }
 0x3cd   :  { %4484 = vst [vmem:[#allocation10 + $0xc80] sm:$0xff] %v3057_v3  ;;  %4486 = vst [vmem:[#allocation10 + $0xc90] sm:$0xff] %v3410_v18  ;;  %3665 = vmatmul.mubr.bf16.gmra.mrb[204].mxu0 %v7486_v24  ;;  %3980 = vmatmul.mubr.bf16.gmra.mrb[204].mxu1 %v7486_v24 }
 0x3ce   :  { %3674 = vmatprep.mubr.bf16.mxu0 %v7487_v26  ;;  %3987 = vmatprep.mubr.bf16.mxu1 %v7487_v26  ;;  %v7494_v26 = vld [vmem:[#allocation43_spill] sm:$0xff] }
 0x3d5   :  { %3675 = vmatmul.mubr.bf16.gmra.mrb[208].mxu0 %v7488_v33  ;;  %3988 = vmatmul.mubr.bf16.gmra.mrb[208].mxu1 %v7488_v33  ;;  %v4961_v33 = vld [vmem:[#allocation8] sm:$0xff] }
 0x3d6   :  { %3684 = vmatprep.mubr.bf16.mxu0 %v7489_v52  ;;  %3995 = vmatprep.mubr.bf16.mxu1 %v7489_v52  ;;  %v7495_v52 = vld [vmem:[#allocation15_spill] sm:$0xff] }
 0x3da   :  { %v3060_v50 = vpop.f32.mrb[116].mxu0  ;;  %v3413_v8 = vpop.f32.mrb[116].mxu1 }
 0x3db   :  { %v3061_v55 = vadd.f32 %v3060_v50, %v6075_v46  ;;  %v3414_v60 = vadd.f32 %v3413_v8, %v6078_v6  ;;  %v3062_v38 = vpop.f32.mrb[117].mxu0  ;;  %v3415_v7 = vpop.f32.mrb[117].mxu1  ;;  %v7496_v50 = vsub.s32 4, %v7495_v52 }
 0x3dc   :  { %v3063_v39 = vadd.f32 %v3062_v38, %v6082_v32  ;;  %v3416_v11 = vadd.f32 %v3415_v7, %v6084_v44  ;;  %v3064_v25 = vpop.f32.mrb[118].mxu0  ;;  %v3417_v30 = vpop.f32.mrb[118].mxu1 }
 0x3dd   :  { %4490 = vst [vmem:[#allocation10 + $0xcb0] sm:$0xff] %v3061_v55  ;;  %4492 = vst [vmem:[#allocation10 + $0xcc0] sm:$0xff] %v3414_v60  ;;  %v3065_v34 = vadd.f32 %v3064_v25, %v6075_v46  ;;  %v3418_v62 = vadd.f32 %v3417_v30, %v6078_v6  ;;  %v3066_v31 = vpop.f32.mrb[119].mxu0  ;;  %v3419_v48 = vpop.f32.mrb[119].mxu1  ;;  %3685 = vmatmul.mubr.bf16.gmra.mrb[212].mxu0 %v7490_v14  ;;  %3996 = vmatmul.mubr.bf16.gmra.mrb[212].mxu1 %v7490_v14 }
 0x3de   :  { %4491 = vst [vmem:[#allocation10 + $0xcb8] sm:$0xff] %v3063_v39  ;;  %4493 = vst [vmem:[#allocation10 + $0xcc8] sm:$0xff] %v3416_v11  ;;  %v3067_v20 = vadd.f32 %v3066_v31, %v6082_v32  ;;  %v3420_v15 = vadd.f32 %v3419_v48, %v6084_v44  ;;  %3694 = vmatprep.mubr.bf16.mxu0 %v7491_v17  ;;  %4003 = vmatprep.mubr.bf16.mxu1 %v7491_v17 }
 0x3df   :  { %4497 = vst [vmem:[#allocation10 + $0xce8] sm:$0xff] %v3065_v34  ;;  %4499 = vst [vmem:[#allocation10 + $0xcf8] sm:$0xff] %v3418_v62 }
 0x3e0   :  { %4498 = vst [vmem:[#allocation10 + $0xcf0] sm:$0xff] %v3067_v20  ;;  %4500 = vst [vmem:[#allocation10 + $0xd00] sm:$0xff] %v3420_v15  ;;  %v7499_v20 = vld [vmem:[#allocation45_spill] sm:$0xff]  ;;  %v7500_v15 = vld [vmem:[#allocation47_spill] sm:$0xff] }
 0x3e5   :  { %3695 = vmatmul.mubr.bf16.gmra.mrb[216].mxu0 %v7492_v5  ;;  %4004 = vmatmul.mubr.bf16.gmra.mrb[216].mxu1 %v7492_v5 }
 0x3e6   :  { %3704 = vmatprep.mubr.bf16.mxu0 %v6606_v28  ;;  %4011 = vmatprep.mubr.bf16.mxu1 %v6606_v28 }
 0x3ed   :  { %v3070_v2 = vpop.f32.mrb[120].mxu0  ;;  %v3423_v37 = vpop.f32.mrb[120].mxu1  ;;  %3705 = vmatmul.mubr.bf16.gmra.mrb[220].mxu0 %v6604_v36  ;;  %4012 = vmatmul.mubr.bf16.gmra.mrb[220].mxu1 %v6604_v36 }
 0x3ee   :  { %v3071_v16 = vadd.f32 %v3070_v2, %v6075_v46  ;;  %v3424_v42 = vadd.f32 %v3423_v37, %v6078_v6  ;;  %v3072_v61 = vpop.f32.mrb[121].mxu0  ;;  %v3425_v19 = vpop.f32.mrb[121].mxu1  ;;  %3714 = vmatprep.mubr.bf16.mxu0 %v6651_v27  ;;  %4019 = vmatprep.mubr.bf16.mxu1 %v6651_v27 }
 0x3ef   :  { %v3073_v35 = vadd.f32 %v3072_v61, %v6082_v32  ;;  %v3426_v28 = vadd.f32 %v3425_v19, %v6084_v44  ;;  %v3074_v12 = vpop.f32.mrb[122].mxu0  ;;  %v3427_v21 = vpop.f32.mrb[122].mxu1 }
 0x3f0   :  { %4504 = vst [vmem:[#allocation10 + $0xd20] sm:$0xff] %v3071_v16  ;;  %4506 = vst [vmem:[#allocation10 + $0xd30] sm:$0xff] %v3424_v42  ;;  %v3075_v36 = vadd.f32 %v3074_v12, %v6075_v46  ;;  %v3428_v47 = vadd.f32 %v3427_v21, %v6078_v6  ;;  %v3076_v45 = vpop.f32.mrb[123].mxu0  ;;  %v3429_v9 = vpop.f32.mrb[123].mxu1 }
 0x3f1   :  { %4505 = vst [vmem:[#allocation10 + $0xd28] sm:$0xff] %v3073_v35  ;;  %4507 = vst [vmem:[#allocation10 + $0xd38] sm:$0xff] %v3426_v28  ;;  %v3077_v58 = vadd.f32 %v3076_v45, %v6082_v32  ;;  %v3430_v27 = vadd.f32 %v3429_v9, %v6084_v44  ;;  %v7501_v45 = vld [vmem:[#allocation46_spill] sm:$0xff]  ;;  %v7502_v9 = vld [vmem:[#allocation49_spill] sm:$0xff] }
 0x3f2   :  { %4511 = vst [vmem:[#allocation10 + $0xd58] sm:$0xff] %v3075_v36  ;;  %4513 = vst [vmem:[#allocation10 + $0xd68] sm:$0xff] %v3428_v47 }
 0x3f3   :  { %4512 = vst [vmem:[#allocation10 + $0xd60] sm:$0xff] %v3077_v58  ;;  %4514 = vst [vmem:[#allocation10 + $0xd70] sm:$0xff] %v3430_v27 }
 0x3f5   :  { %3715 = vmatmul.mubr.bf16.gmra.mrb[224].mxu0 %v6649_v51  ;;  %4020 = vmatmul.mubr.bf16.gmra.mrb[224].mxu1 %v6649_v51 }
 0x3f6   :  { %3724 = vmatprep.mubr.bf16.mxu0 %v6685_v22  ;;  %4027 = vmatprep.mubr.bf16.mxu1 %v6685_v22 }
 0x3fd   :  { %3725 = vmatmul.mubr.bf16.gmra.mrb[228].mxu0 %v6683_v56  ;;  %4028 = vmatmul.mubr.bf16.gmra.mrb[228].mxu1 %v6683_v56 }
 0x3fe   :  { %3734 = vmatprep.mubr.bf16.mxu0 %v7493_v41  ;;  %4035 = vmatprep.mubr.bf16.mxu1 %v7493_v41 }
 0x400   :  { %v3080_v13 = vpop.f32.mrb[124].mxu0  ;;  %v3433_v4 = vpop.f32.mrb[124].mxu1 }
 0x401   :  { %v3081_v63 = vadd.f32 %v3080_v13, %v6075_v46  ;;  %v3434_v0 = vadd.f32 %v3433_v4, %v6078_v6  ;;  %v3082_v57 = vpop.f32.mrb[125].mxu0  ;;  %v3435_v51 = vpop.f32.mrb[125].mxu1 }
 0x402   :  { %v3083_v10 = vadd.f32 %v3082_v57, %v6082_v32  ;;  %v3436_v22 = vadd.f32 %v3435_v51, %v6084_v44  ;;  %v3084_v40 = vpop.f32.mrb[126].mxu0  ;;  %v3437_v59 = vpop.f32.mrb[126].mxu1 }
 0x403   :  { %4518 = vst [vmem:[#allocation10 + $0xd90] sm:$0xff] %v3081_v63  ;;  %4520 = vst [vmem:[#allocation10 + $0xda0] sm:$0xff] %v3434_v0  ;;  %v3085_v56 = vadd.f32 %v3084_v40, %v6075_v46  ;;  %v3438_v53 = vadd.f32 %v3437_v59, %v6078_v6  ;;  %v3086_v49 = vpop.f32.mrb[127].mxu0  ;;  %v3439_v3 = vpop.f32.mrb[127].mxu1  ;;  %v7103_v46 = vrot.slane %v4961_v33, %v7496_v50  ;;  %v7497_v6 = vsub.s32 6, %v7495_v52 }
 0x404   :  { %4519 = vst [vmem:[#allocation10 + $0xd98] sm:$0xff] %v3083_v10  ;;  %4521 = vst [vmem:[#allocation10 + $0xda8] sm:$0xff] %v3436_v22  ;;  %v3087_v18 = vadd.f32 %v3086_v49, %v6082_v32  ;;  %v3440_v24 = vadd.f32 %v3439_v3, %v6084_v44  ;;  %v7498_v32 = vsub.s32 5, %v7495_v52 }
 0x405   :  { %4525 = vst [vmem:[#allocation10 + $0xdc8] sm:$0xff] %v3085_v56  ;;  %4527 = vst [vmem:[#allocation10 + $0xdd8] sm:$0xff] %v3438_v53  ;;  %3735 = vmatmul.mubr.bf16.gmra.mrb[232].mxu0 %v7494_v26  ;;  %4036 = vmatmul.mubr.bf16.gmra.mrb[232].mxu1 %v7494_v26  ;;  %v7107_v8 = vrot.slane %v4961_v33, %v7497_v6  ;;  %v7503_v53 = vld [vmem:[#allocation48_spill] sm:$0xff] }
 0x406   :  { %4526 = vst [vmem:[#allocation10 + $0xdd0] sm:$0xff] %v3087_v18  ;;  %4528 = vst [vmem:[#allocation10 + $0xde0] sm:$0xff] %v3440_v24  ;;  %3744 = vmatprep.mubr.bf16.mxu0 %v6759_v1  ;;  %4043 = vmatprep.mubr.bf16.mxu1 %v6759_v1  ;;  %v7113_v44 = vrot.slane %v4961_v33, %v7498_v32 }
 0x408   :  { %v3476_v55 = vpop.f32.mrb[128].mxu0  ;;  %v3829_v60 = vpop.f32.mrb[128].mxu1 }
 0x409   :  { %v3477_v38 = vadd.f32 %v3476_v55, %v7103_v46  ;;  %v3830_v7 = vadd.f32 %v3829_v60, %v7107_v8  ;;  %v3478_v39 = vpop.f32.mrb[129].mxu0  ;;  %v3831_v11 = vpop.f32.mrb[129].mxu1 }
 0x40a   :  { %v3479_v25 = vadd.f32 %v3478_v39, %v7113_v44  ;;  %v3480_v30 = vpop.f32.mrb[130].mxu0  ;;  %v3832_v34 = vpop.f32.mrb[130].mxu1 }
 0x40b   :  { %4088 = vst [vmem:[#allocation10 + $0x20] sm:$0xff] %v3477_v38  ;;  %4090 = vst [vmem:[#allocation10 + $0x30] sm:$0xff] %v3830_v7  ;;  %v3481_v1 = vadd.f32 %v3480_v30, %v7103_v46  ;;  %v3833_v62 = vadd.f32 %v3832_v34, %v7107_v8  ;;  %v3482_v31 = vpop.f32.mrb[131].mxu0  ;;  %v3834_v48 = vpop.f32.mrb[131].mxu1 }
 0x40c   :  { %4089 = vst [vmem:[#allocation10 + $0x28] sm:$0xff] %v3479_v25  ;;  %v3483_v14 = vadd.f32 %v3482_v31, %v7113_v44 }
 0x40d   :  { %4095 = vst [vmem:[#allocation10 + $0x58] sm:$0xff] %v3481_v1  ;;  %4097 = vst [vmem:[#allocation10 + $0x68] sm:$0xff] %v3833_v62  ;;  %3745 = vmatmul.mubr.bf16.gmra.mrb[236].mxu0 %v7499_v20  ;;  %4044 = vmatmul.mubr.bf16.gmra.mrb[236].mxu1 %v7499_v20 }
 0x40e   :  { %4096 = vst [vmem:[#allocation10 + $0x60] sm:$0xff] %v3483_v14  ;;  %3754 = vmatprep.mubr.bf16.mxu0 %v7500_v15  ;;  %4051 = vmatprep.mubr.bf16.mxu1 %v7500_v15 }
 0x410   :  { %v3486_v17 = vpop.f32.mrb[132].mxu0  ;;  %v3837_v5 = vpop.f32.mrb[132].mxu1 }
 0x411   :  { %v3487_v2 = vadd.f32 %v3486_v17, %v7103_v46  ;;  %v3838_v37 = vadd.f32 %v3837_v5, %v7107_v8  ;;  %v3488_v16 = vpop.f32.mrb[133].mxu0  ;;  %v3839_v42 = vpop.f32.mrb[133].mxu1 }
 0x412   :  { %v3489_v61 = vadd.f32 %v3488_v16, %v7113_v44  ;;  %v3490_v19 = vpop.f32.mrb[134].mxu0  ;;  %v3840_v35 = vpop.f32.mrb[134].mxu1 }
 0x413   :  { %4102 = vst [vmem:[#allocation10 + $0x90] sm:$0xff] %v3487_v2  ;;  %4104 = vst [vmem:[#allocation10 + $0xa0] sm:$0xff] %v3838_v37  ;;  %v3491_v28 = vadd.f32 %v3490_v19, %v7103_v46  ;;  %v3841_v12 = vadd.f32 %v3840_v35, %v7107_v8  ;;  %v3492_v21 = vpop.f32.mrb[135].mxu0  ;;  %v3842_v36 = vpop.f32.mrb[135].mxu1 }
 0x414   :  { %4103 = vst [vmem:[#allocation10 + $0x98] sm:$0xff] %v3489_v61  ;;  %v3493_v47 = vadd.f32 %v3492_v21, %v7113_v44 }
 0x415   :  { %4109 = vst [vmem:[#allocation10 + $0xc8] sm:$0xff] %v3491_v28  ;;  %4111 = vst [vmem:[#allocation10 + $0xd8] sm:$0xff] %v3841_v12  ;;  %3755 = vmatmul.mubr.bf16.gmra.mrb[240].mxu0 %v7501_v45  ;;  %4052 = vmatmul.mubr.bf16.gmra.mrb[240].mxu1 %v7501_v45 }
 0x416   :  { %4110 = vst [vmem:[#allocation10 + $0xd0] sm:$0xff] %v3493_v47  ;;  %3764 = vmatprep.mubr.bf16.mxu0 %v7502_v9  ;;  %4059 = vmatprep.mubr.bf16.mxu1 %v7502_v9 }
 0x418   :  { %v3496_v58 = vpop.f32.mrb[136].mxu0  ;;  %v3845_v27 = vpop.f32.mrb[136].mxu1 }
 0x419   :  { %v3497_v41 = vadd.f32 %v3496_v58, %v7103_v46  ;;  %v3846_v13 = vadd.f32 %v3845_v27, %v7107_v8  ;;  %v3498_v4 = vpop.f32.mrb[137].mxu0  ;;  %v3847_v63 = vpop.f32.mrb[137].mxu1 }
 0x41a   :  { %v3499_v0 = vadd.f32 %v3498_v4, %v7113_v44  ;;  %v3500_v57 = vpop.f32.mrb[138].mxu0  ;;  %v3848_v51 = vpop.f32.mrb[138].mxu1 }
 0x41b   :  { %4116 = vst [vmem:[#allocation10 + $0x100] sm:$0xff] %v3497_v41  ;;  %4118 = vst [vmem:[#allocation10 + $0x110] sm:$0xff] %v3846_v13  ;;  %v3501_v10 = vadd.f32 %v3500_v57, %v7103_v46  ;;  %v3849_v22 = vadd.f32 %v3848_v51, %v7107_v8  ;;  %v3502_v40 = vpop.f32.mrb[139].mxu0  ;;  %v3850_v59 = vpop.f32.mrb[139].mxu1 }
 0x41c   :  { %4117 = vst [vmem:[#allocation10 + $0x108] sm:$0xff] %v3499_v0  ;;  %v3503_v56 = vadd.f32 %v3502_v40, %v7113_v44 }
 0x41d   :  { %4123 = vst [vmem:[#allocation10 + $0x138] sm:$0xff] %v3501_v10  ;;  %4125 = vst [vmem:[#allocation10 + $0x148] sm:$0xff] %v3849_v22  ;;  %3765 = vmatmul.mubr.bf16.gmra.mrb[244].mxu0 %v7503_v53  ;;  %4060 = vmatmul.mubr.bf16.gmra.mrb[244].mxu1 %v7503_v53 }
 0x41e   :  { %4124 = vst [vmem:[#allocation10 + $0x140] sm:$0xff] %v3503_v56  ;;  %3774 = vmatprep.mubr.bf16.mxu0 %v6859_v43  ;;  %4067 = vmatprep.mubr.bf16.mxu1 %v6859_v43 }
 0x420   :  { %v3506_v49 = vpop.f32.mrb[140].mxu0  ;;  %v3853_v3 = vpop.f32.mrb[140].mxu1 }
 0x421   :  { %v3507_v18 = vadd.f32 %v3506_v49, %v7103_v46  ;;  %v3854_v24 = vadd.f32 %v3853_v3, %v7107_v8  ;;  %v3508_v26 = vpop.f32.mrb[141].mxu0  ;;  %v3855_v33 = vpop.f32.mrb[141].mxu1 }
 0x422   :  { %v3509_v52 = vadd.f32 %v3508_v26, %v7113_v44  ;;  %v3510_v50 = vpop.f32.mrb[142].mxu0  ;;  %v3856_v6 = vpop.f32.mrb[142].mxu1 }
 0x423   :  { %4130 = vst [vmem:[#allocation10 + $0x170] sm:$0xff] %v3507_v18  ;;  %4132 = vst [vmem:[#allocation10 + $0x180] sm:$0xff] %v3854_v24  ;;  %v3511_v32 = vadd.f32 %v3510_v50, %v7103_v46  ;;  %v3857_v55 = vadd.f32 %v3856_v6, %v7107_v8  ;;  %v3512_v60 = vpop.f32.mrb[143].mxu0  ;;  %v3858_v43 = vpop.f32.mrb[143].mxu1 }
 0x424   :  { %4131 = vst [vmem:[#allocation10 + $0x178] sm:$0xff] %v3509_v52  ;;  %v3513_v38 = vadd.f32 %v3512_v60, %v7113_v44 }
 0x425   :  { %4137 = vst [vmem:[#allocation10 + $0x1a8] sm:$0xff] %v3511_v32  ;;  %4139 = vst [vmem:[#allocation10 + $0x1b8] sm:$0xff] %v3857_v55  ;;  %3775 = vmatmul.mubr.bf16.gmra.mrb[248].mxu0 %v6857_v54  ;;  %4068 = vmatmul.mubr.bf16.gmra.mrb[248].mxu1 %v6857_v54 }
 0x426   :  { %4138 = vst [vmem:[#allocation10 + $0x1b0] sm:$0xff] %v3513_v38  ;;  %3784 = vmatprep.mubr.bf16.mxu0 %v6891_v23  ;;  %4075 = vmatprep.mubr.bf16.mxu1 %v6891_v23 }
 0x428   :  { %v3516_v7 = vpop.f32.mrb[144].mxu0  ;;  %v3861_v39 = vpop.f32.mrb[144].mxu1 }
 0x429   :  { %v3517_v11 = vadd.f32 %v3516_v7, %v7103_v46  ;;  %v3862_v25 = vadd.f32 %v3861_v39, %v7107_v8  ;;  %v3518_v30 = vpop.f32.mrb[145].mxu0  ;;  %v3863_v34 = vpop.f32.mrb[145].mxu1 }
 0x42a   :  { %v3519_v1 = vadd.f32 %v3518_v30, %v7113_v44  ;;  %v3520_v62 = vpop.f32.mrb[146].mxu0  ;;  %v3864_v31 = vpop.f32.mrb[146].mxu1 }
 0x42b   :  { %4144 = vst [vmem:[#allocation10 + $0x1e0] sm:$0xff] %v3517_v11  ;;  %4146 = vst [vmem:[#allocation10 + $0x1f0] sm:$0xff] %v3862_v25  ;;  %v3521_v54 = vadd.f32 %v3520_v62, %v7103_v46  ;;  %v3865_v48 = vadd.f32 %v3864_v31, %v7107_v8  ;;  %v3522_v14 = vpop.f32.mrb[147].mxu0  ;;  %v3866_v23 = vpop.f32.mrb[147].mxu1 }
 0x42c   :  { %4145 = vst [vmem:[#allocation10 + $0x1e8] sm:$0xff] %v3519_v1  ;;  %v3523_v20 = vadd.f32 %v3522_v14, %v7113_v44 }
 0x42d   :  { %4151 = vst [vmem:[#allocation10 + $0x218] sm:$0xff] %v3521_v54  ;;  %4153 = vst [vmem:[#allocation10 + $0x228] sm:$0xff] %v3865_v48  ;;  %3785 = vmatmul.mubr.bf16.gmra.mrb[252].mxu0 %v6889_v29  ;;  %4076 = vmatmul.mubr.bf16.gmra.mrb[252].mxu1 %v6889_v29 }
 0x42e   :  { %4152 = vst [vmem:[#allocation10 + $0x220] sm:$0xff] %v3523_v20 }
 0x430   :  { %v3526_v15 = vpop.f32.mrb[148].mxu0  ;;  %v3869_v17 = vpop.f32.mrb[148].mxu1 }
 0x431   :  { %v3527_v5 = vadd.f32 %v3526_v15, %v7103_v46  ;;  %v3870_v2 = vadd.f32 %v3869_v17, %v7107_v8  ;;  %v3528_v37 = vpop.f32.mrb[149].mxu0  ;;  %v3871_v16 = vpop.f32.mrb[149].mxu1 }
 0x432   :  { %v3529_v42 = vadd.f32 %v3528_v37, %v7113_v44  ;;  %v3530_v61 = vpop.f32.mrb[150].mxu0  ;;  %v3872_v19 = vpop.f32.mrb[150].mxu1 }
 0x433   :  { %4158 = vst [vmem:[#allocation10 + $0x250] sm:$0xff] %v3527_v5  ;;  %4160 = vst [vmem:[#allocation10 + $0x260] sm:$0xff] %v3870_v2  ;;  %v3531_v35 = vadd.f32 %v3530_v61, %v7103_v46  ;;  %v3873_v28 = vadd.f32 %v3872_v19, %v7107_v8  ;;  %v3532_v29 = vpop.f32.mrb[151].mxu0  ;;  %v3874_v12 = vpop.f32.mrb[151].mxu1 }
 0x434   :  { %4159 = vst [vmem:[#allocation10 + $0x258] sm:$0xff] %v3529_v42  ;;  %v3533_v21 = vadd.f32 %v3532_v29, %v7113_v44 }
 0x435   :  { %4165 = vst [vmem:[#allocation10 + $0x288] sm:$0xff] %v3531_v35  ;;  %4167 = vst [vmem:[#allocation10 + $0x298] sm:$0xff] %v3873_v28 }
 0x436   :  { %4166 = vst [vmem:[#allocation10 + $0x290] sm:$0xff] %v3533_v21 }
 0x438   :  { %v3536_v36 = vpop.f32.mrb[152].mxu0  ;;  %v3877_v47 = vpop.f32.mrb[152].mxu1 }
 0x439   :  { %v3537_v45 = vadd.f32 %v3536_v36, %v7103_v46  ;;  %v3878_v9 = vadd.f32 %v3877_v47, %v7107_v8  ;;  %v3538_v58 = vpop.f32.mrb[153].mxu0  ;;  %v3879_v27 = vpop.f32.mrb[153].mxu1 }
 0x43a   :  { %v3539_v41 = vadd.f32 %v3538_v58, %v7113_v44  ;;  %v3540_v13 = vpop.f32.mrb[154].mxu0  ;;  %v3880_v4 = vpop.f32.mrb[154].mxu1 }
 0x43b   :  { %4172 = vst [vmem:[#allocation10 + $0x2c0] sm:$0xff] %v3537_v45  ;;  %4174 = vst [vmem:[#allocation10 + $0x2d0] sm:$0xff] %v3878_v9  ;;  %v3541_v63 = vadd.f32 %v3540_v13, %v7103_v46  ;;  %v3881_v0 = vadd.f32 %v3880_v4, %v7107_v8  ;;  %v3542_v57 = vpop.f32.mrb[155].mxu0  ;;  %v3882_v51 = vpop.f32.mrb[155].mxu1 }
 0x43c   :  { %4173 = vst [vmem:[#allocation10 + $0x2c8] sm:$0xff] %v3539_v41  ;;  %v3543_v10 = vadd.f32 %v3542_v57, %v7113_v44 }
 0x43d   :  { %4179 = vst [vmem:[#allocation10 + $0x2f8] sm:$0xff] %v3541_v63  ;;  %4181 = vst [vmem:[#allocation10 + $0x308] sm:$0xff] %v3881_v0 }
 0x43e   :  { %4180 = vst [vmem:[#allocation10 + $0x300] sm:$0xff] %v3543_v10 }
 0x440   :  { %v3546_v22 = vpop.f32.mrb[156].mxu0  ;;  %v3885_v40 = vpop.f32.mrb[156].mxu1 }
 0x441   :  { %v3547_v59 = vadd.f32 %v3546_v22, %v7103_v46  ;;  %v3886_v56 = vadd.f32 %v3885_v40, %v7107_v8  ;;  %v3548_v53 = vpop.f32.mrb[157].mxu0  ;;  %v3887_v49 = vpop.f32.mrb[157].mxu1 }
 0x442   :  { %v3549_v3 = vadd.f32 %v3548_v53, %v7113_v44  ;;  %v3550_v18 = vpop.f32.mrb[158].mxu0  ;;  %v3888_v24 = vpop.f32.mrb[158].mxu1 }
 0x443   :  { %4186 = vst [vmem:[#allocation10 + $0x330] sm:$0xff] %v3547_v59  ;;  %4188 = vst [vmem:[#allocation10 + $0x340] sm:$0xff] %v3886_v56  ;;  %v3551_v26 = vadd.f32 %v3550_v18, %v7103_v46  ;;  %v3889_v33 = vadd.f32 %v3888_v24, %v7107_v8  ;;  %v3552_v52 = vpop.f32.mrb[159].mxu0  ;;  %v3890_v50 = vpop.f32.mrb[159].mxu1 }
 0x444   :  { %4187 = vst [vmem:[#allocation10 + $0x338] sm:$0xff] %v3549_v3  ;;  %v3553_v6 = vadd.f32 %v3552_v52, %v7113_v44 }
 0x445   :  { %4193 = vst [vmem:[#allocation10 + $0x368] sm:$0xff] %v3551_v26  ;;  %4195 = vst [vmem:[#allocation10 + $0x378] sm:$0xff] %v3889_v33 }
 0x446   :  { %4194 = vst [vmem:[#allocation10 + $0x370] sm:$0xff] %v3553_v6 }
 0x448   :  { %v3556_v32 = vpop.f32.mrb[160].mxu0  ;;  %v3893_v55 = vpop.f32.mrb[160].mxu1 }
 0x449   :  { %v3557_v60 = vadd.f32 %v3556_v32, %v7103_v46  ;;  %v3894_v43 = vadd.f32 %v3893_v55, %v7107_v8  ;;  %v3558_v38 = vpop.f32.mrb[161].mxu0  ;;  %v3895_v7 = vpop.f32.mrb[161].mxu1 }
 0x44a   :  { %v3559_v39 = vadd.f32 %v3558_v38, %v7113_v44  ;;  %v3560_v11 = vpop.f32.mrb[162].mxu0  ;;  %v3896_v25 = vpop.f32.mrb[162].mxu1 }
 0x44b   :  { %4200 = vst [vmem:[#allocation10 + $0x3a0] sm:$0xff] %v3557_v60  ;;  %4202 = vst [vmem:[#allocation10 + $0x3b0] sm:$0xff] %v3894_v43  ;;  %v3561_v30 = vadd.f32 %v3560_v11, %v7103_v46  ;;  %v3897_v34 = vadd.f32 %v3896_v25, %v7107_v8  ;;  %v3562_v1 = vpop.f32.mrb[163].mxu0  ;;  %v3898_v62 = vpop.f32.mrb[163].mxu1 }
 0x44c   :  { %4201 = vst [vmem:[#allocation10 + $0x3a8] sm:$0xff] %v3559_v39  ;;  %v3563_v31 = vadd.f32 %v3562_v1, %v7113_v44 }
 0x44d   :  { %4207 = vst [vmem:[#allocation10 + $0x3d8] sm:$0xff] %v3561_v30  ;;  %4209 = vst [vmem:[#allocation10 + $0x3e8] sm:$0xff] %v3897_v34 }
 0x44e   :  { %4208 = vst [vmem:[#allocation10 + $0x3e0] sm:$0xff] %v3563_v31 }
 0x450   :  { %v3566_v54 = vpop.f32.mrb[164].mxu0  ;;  %v3901_v48 = vpop.f32.mrb[164].mxu1 }
 0x451   :  { %v3567_v14 = vadd.f32 %v3566_v54, %v7103_v46  ;;  %v3902_v23 = vadd.f32 %v3901_v48, %v7107_v8  ;;  %v3568_v20 = vpop.f32.mrb[165].mxu0  ;;  %v3903_v15 = vpop.f32.mrb[165].mxu1 }
 0x452   :  { %v3569_v17 = vadd.f32 %v3568_v20, %v7113_v44  ;;  %v3570_v5 = vpop.f32.mrb[166].mxu0  ;;  %v3904_v2 = vpop.f32.mrb[166].mxu1 }
 0x453   :  { %4214 = vst [vmem:[#allocation10 + $0x410] sm:$0xff] %v3567_v14  ;;  %4216 = vst [vmem:[#allocation10 + $0x420] sm:$0xff] %v3902_v23  ;;  %v3571_v37 = vadd.f32 %v3570_v5, %v7103_v46  ;;  %v3905_v16 = vadd.f32 %v3904_v2, %v7107_v8  ;;  %v3572_v42 = vpop.f32.mrb[167].mxu0  ;;  %v3906_v61 = vpop.f32.mrb[167].mxu1 }
 0x454   :  { %4215 = vst [vmem:[#allocation10 + $0x418] sm:$0xff] %v3569_v17  ;;  %v3573_v19 = vadd.f32 %v3572_v42, %v7113_v44 }
 0x455   :  { %4221 = vst [vmem:[#allocation10 + $0x448] sm:$0xff] %v3571_v37  ;;  %4223 = vst [vmem:[#allocation10 + $0x458] sm:$0xff] %v3905_v16 }
 0x456   :  { %4222 = vst [vmem:[#allocation10 + $0x450] sm:$0xff] %v3573_v19 }
 0x458   :  { %v3576_v35 = vpop.f32.mrb[168].mxu0  ;;  %v3909_v28 = vpop.f32.mrb[168].mxu1 }
 0x459   :  { %v3577_v29 = vadd.f32 %v3576_v35, %v7103_v46  ;;  %v3910_v12 = vadd.f32 %v3909_v28, %v7107_v8  ;;  %v3578_v21 = vpop.f32.mrb[169].mxu0  ;;  %v3911_v36 = vpop.f32.mrb[169].mxu1 }
 0x45a   :  { %v3579_v47 = vadd.f32 %v3578_v21, %v7113_v44  ;;  %v3580_v45 = vpop.f32.mrb[170].mxu0  ;;  %v3912_v9 = vpop.f32.mrb[170].mxu1 }
 0x45b   :  { %4228 = vst [vmem:[#allocation10 + $0x480] sm:$0xff] %v3577_v29  ;;  %4230 = vst [vmem:[#allocation10 + $0x490] sm:$0xff] %v3910_v12  ;;  %v3581_v58 = vadd.f32 %v3580_v45, %v7103_v46  ;;  %v3913_v27 = vadd.f32 %v3912_v9, %v7107_v8  ;;  %v3582_v41 = vpop.f32.mrb[171].mxu0  ;;  %v3914_v13 = vpop.f32.mrb[171].mxu1 }
 0x45c   :  { %4229 = vst [vmem:[#allocation10 + $0x488] sm:$0xff] %v3579_v47  ;;  %v3583_v4 = vadd.f32 %v3582_v41, %v7113_v44 }
 0x45d   :  { %4235 = vst [vmem:[#allocation10 + $0x4b8] sm:$0xff] %v3581_v58  ;;  %4237 = vst [vmem:[#allocation10 + $0x4c8] sm:$0xff] %v3913_v27 }
 0x45e   :  { %4236 = vst [vmem:[#allocation10 + $0x4c0] sm:$0xff] %v3583_v4 }
 0x460   :  { %v3586_v63 = vpop.f32.mrb[172].mxu0  ;;  %v3917_v0 = vpop.f32.mrb[172].mxu1 }
 0x461   :  { %v3587_v57 = vadd.f32 %v3586_v63, %v7103_v46  ;;  %v3918_v51 = vadd.f32 %v3917_v0, %v7107_v8  ;;  %v3588_v10 = vpop.f32.mrb[173].mxu0  ;;  %v3919_v22 = vpop.f32.mrb[173].mxu1 }
 0x462   :  { %v3589_v40 = vadd.f32 %v3588_v10, %v7113_v44  ;;  %v3590_v59 = vpop.f32.mrb[174].mxu0  ;;  %v3920_v56 = vpop.f32.mrb[174].mxu1 }
 0x463   :  { %4242 = vst [vmem:[#allocation10 + $0x4f0] sm:$0xff] %v3587_v57  ;;  %4244 = vst [vmem:[#allocation10 + $0x500] sm:$0xff] %v3918_v51  ;;  %v3591_v53 = vadd.f32 %v3590_v59, %v7103_v46  ;;  %v3921_v49 = vadd.f32 %v3920_v56, %v7107_v8  ;;  %v3592_v3 = vpop.f32.mrb[175].mxu0  ;;  %v3922_v18 = vpop.f32.mrb[175].mxu1 }
 0x464   :  { %4243 = vst [vmem:[#allocation10 + $0x4f8] sm:$0xff] %v3589_v40  ;;  %v3593_v24 = vadd.f32 %v3592_v3, %v7113_v44 }
 0x465   :  { %4249 = vst [vmem:[#allocation10 + $0x528] sm:$0xff] %v3591_v53  ;;  %4251 = vst [vmem:[#allocation10 + $0x538] sm:$0xff] %v3921_v49 }
 0x466   :  { %4250 = vst [vmem:[#allocation10 + $0x530] sm:$0xff] %v3593_v24 }
 0x468   :  { %v3596_v26 = vpop.f32.mrb[176].mxu0  ;;  %v3925_v33 = vpop.f32.mrb[176].mxu1 }
 0x469   :  { %v3597_v52 = vadd.f32 %v3596_v26, %v7103_v46  ;;  %v3926_v50 = vadd.f32 %v3925_v33, %v7107_v8  ;;  %v3598_v6 = vpop.f32.mrb[177].mxu0  ;;  %v3927_v32 = vpop.f32.mrb[177].mxu1 }
 0x46a   :  { %v3599_v55 = vadd.f32 %v3598_v6, %v7113_v44  ;;  %v3600_v60 = vpop.f32.mrb[178].mxu0  ;;  %v3928_v43 = vpop.f32.mrb[178].mxu1 }
 0x46b   :  { %4256 = vst [vmem:[#allocation10 + $0x560] sm:$0xff] %v3597_v52  ;;  %4258 = vst [vmem:[#allocation10 + $0x570] sm:$0xff] %v3926_v50  ;;  %v3601_v38 = vadd.f32 %v3600_v60, %v7103_v46  ;;  %v3929_v7 = vadd.f32 %v3928_v43, %v7107_v8  ;;  %v3602_v39 = vpop.f32.mrb[179].mxu0  ;;  %v3930_v11 = vpop.f32.mrb[179].mxu1 }
 0x46c   :  { %4257 = vst [vmem:[#allocation10 + $0x568] sm:$0xff] %v3599_v55  ;;  %v3603_v25 = vadd.f32 %v3602_v39, %v7113_v44 }
 0x46d   :  { %4263 = vst [vmem:[#allocation10 + $0x598] sm:$0xff] %v3601_v38  ;;  %4265 = vst [vmem:[#allocation10 + $0x5a8] sm:$0xff] %v3929_v7 }
 0x46e   :  { %4264 = vst [vmem:[#allocation10 + $0x5a0] sm:$0xff] %v3603_v25 }
 0x470   :  { %v3606_v30 = vpop.f32.mrb[180].mxu0  ;;  %v3933_v34 = vpop.f32.mrb[180].mxu1 }
 0x471   :  { %v3607_v1 = vadd.f32 %v3606_v30, %v7103_v46  ;;  %v3934_v62 = vadd.f32 %v3933_v34, %v7107_v8  ;;  %v3608_v31 = vpop.f32.mrb[181].mxu0  ;;  %v3935_v54 = vpop.f32.mrb[181].mxu1 }
 0x472   :  { %v3609_v48 = vadd.f32 %v3608_v31, %v7113_v44  ;;  %v3610_v14 = vpop.f32.mrb[182].mxu0  ;;  %v3936_v23 = vpop.f32.mrb[182].mxu1 }
 0x473   :  { %4270 = vst [vmem:[#allocation10 + $0x5d0] sm:$0xff] %v3607_v1  ;;  %4272 = vst [vmem:[#allocation10 + $0x5e0] sm:$0xff] %v3934_v62  ;;  %v3611_v20 = vadd.f32 %v3610_v14, %v7103_v46  ;;  %v3937_v15 = vadd.f32 %v3936_v23, %v7107_v8  ;;  %v3612_v17 = vpop.f32.mrb[183].mxu0  ;;  %v3938_v5 = vpop.f32.mrb[183].mxu1 }
 0x474   :  { %4271 = vst [vmem:[#allocation10 + $0x5d8] sm:$0xff] %v3609_v48  ;;  %v3613_v2 = vadd.f32 %v3612_v17, %v7113_v44 }
 0x475   :  { %4277 = vst [vmem:[#allocation10 + $0x608] sm:$0xff] %v3611_v20  ;;  %4279 = vst [vmem:[#allocation10 + $0x618] sm:$0xff] %v3937_v15 }
 0x476   :  { %4278 = vst [vmem:[#allocation10 + $0x610] sm:$0xff] %v3613_v2 }
 0x478   :  { %v3616_v37 = vpop.f32.mrb[184].mxu0  ;;  %v3941_v16 = vpop.f32.mrb[184].mxu1 }
 0x479   :  { %v3617_v42 = vadd.f32 %v3616_v37, %v7103_v46  ;;  %v3942_v61 = vadd.f32 %v3941_v16, %v7107_v8  ;;  %v3618_v19 = vpop.f32.mrb[185].mxu0  ;;  %v3943_v35 = vpop.f32.mrb[185].mxu1 }
 0x47a   :  { %v3619_v28 = vadd.f32 %v3618_v19, %v7113_v44  ;;  %v3620_v29 = vpop.f32.mrb[186].mxu0  ;;  %v3944_v12 = vpop.f32.mrb[186].mxu1 }
 0x47b   :  { %4284 = vst [vmem:[#allocation10 + $0x640] sm:$0xff] %v3617_v42  ;;  %4286 = vst [vmem:[#allocation10 + $0x650] sm:$0xff] %v3942_v61  ;;  %v3621_v21 = vadd.f32 %v3620_v29, %v7103_v46  ;;  %v3945_v36 = vadd.f32 %v3944_v12, %v7107_v8  ;;  %v3622_v47 = vpop.f32.mrb[187].mxu0  ;;  %v3946_v45 = vpop.f32.mrb[187].mxu1 }
 0x47c   :  { %4285 = vst [vmem:[#allocation10 + $0x648] sm:$0xff] %v3619_v28  ;;  %v3623_v9 = vadd.f32 %v3622_v47, %v7113_v44 }
 0x47d   :  { %4291 = vst [vmem:[#allocation10 + $0x678] sm:$0xff] %v3621_v21  ;;  %4293 = vst [vmem:[#allocation10 + $0x688] sm:$0xff] %v3945_v36 }
 0x47e   :  { %4292 = vst [vmem:[#allocation10 + $0x680] sm:$0xff] %v3623_v9 }
 0x480   :  { %v3626_v58 = vpop.f32.mrb[188].mxu0  ;;  %v3949_v27 = vpop.f32.mrb[188].mxu1 }
 0x481   :  { %v3627_v41 = vadd.f32 %v3626_v58, %v7103_v46  ;;  %v3950_v13 = vadd.f32 %v3949_v27, %v7107_v8  ;;  %v3628_v4 = vpop.f32.mrb[189].mxu0  ;;  %v3951_v63 = vpop.f32.mrb[189].mxu1 }
 0x482   :  { %v3629_v0 = vadd.f32 %v3628_v4, %v7113_v44  ;;  %v3630_v57 = vpop.f32.mrb[190].mxu0  ;;  %v3952_v51 = vpop.f32.mrb[190].mxu1 }
 0x483   :  { %4298 = vst [vmem:[#allocation10 + $0x6b0] sm:$0xff] %v3627_v41  ;;  %4300 = vst [vmem:[#allocation10 + $0x6c0] sm:$0xff] %v3950_v13  ;;  %v3631_v10 = vadd.f32 %v3630_v57, %v7103_v46  ;;  %v3953_v22 = vadd.f32 %v3952_v51, %v7107_v8  ;;  %v3632_v40 = vpop.f32.mrb[191].mxu0  ;;  %v3954_v59 = vpop.f32.mrb[191].mxu1 }
 0x484   :  { %4299 = vst [vmem:[#allocation10 + $0x6b8] sm:$0xff] %v3629_v0  ;;  %v3633_v56 = vadd.f32 %v3632_v40, %v7113_v44 }
 0x485   :  { %4305 = vst [vmem:[#allocation10 + $0x6e8] sm:$0xff] %v3631_v10  ;;  %4307 = vst [vmem:[#allocation10 + $0x6f8] sm:$0xff] %v3953_v22 }
 0x486   :  { %4306 = vst [vmem:[#allocation10 + $0x6f0] sm:$0xff] %v3633_v56 }
 0x488   :  { %v3636_v53 = vpop.f32.mrb[192].mxu0  ;;  %v3957_v49 = vpop.f32.mrb[192].mxu1 }
 0x489   :  { %v3637_v3 = vadd.f32 %v3636_v53, %v7103_v46  ;;  %v3958_v18 = vadd.f32 %v3957_v49, %v7107_v8  ;;  %v3638_v24 = vpop.f32.mrb[193].mxu0  ;;  %v3959_v26 = vpop.f32.mrb[193].mxu1 }
 0x48a   :  { %v3639_v33 = vadd.f32 %v3638_v24, %v7113_v44  ;;  %v3640_v52 = vpop.f32.mrb[194].mxu0  ;;  %v3960_v50 = vpop.f32.mrb[194].mxu1 }
 0x48b   :  { %4312 = vst [vmem:[#allocation10 + $0x720] sm:$0xff] %v3637_v3  ;;  %4314 = vst [vmem:[#allocation10 + $0x730] sm:$0xff] %v3958_v18  ;;  %v3641_v6 = vadd.f32 %v3640_v52, %v7103_v46  ;;  %v3961_v32 = vadd.f32 %v3960_v50, %v7107_v8  ;;  %v3642_v55 = vpop.f32.mrb[195].mxu0  ;;  %v3962_v60 = vpop.f32.mrb[195].mxu1 }
 0x48c   :  { %4313 = vst [vmem:[#allocation10 + $0x728] sm:$0xff] %v3639_v33  ;;  %v3643_v43 = vadd.f32 %v3642_v55, %v7113_v44 }
 0x48d   :  { %4319 = vst [vmem:[#allocation10 + $0x758] sm:$0xff] %v3641_v6  ;;  %4321 = vst [vmem:[#allocation10 + $0x768] sm:$0xff] %v3961_v32 }
 0x48e   :  { %4320 = vst [vmem:[#allocation10 + $0x760] sm:$0xff] %v3643_v43 }
 0x490   :  { %v3646_v38 = vpop.f32.mrb[196].mxu0  ;;  %v3965_v7 = vpop.f32.mrb[196].mxu1 }
 0x491   :  { %v3647_v39 = vadd.f32 %v3646_v38, %v7103_v46  ;;  %v3966_v11 = vadd.f32 %v3965_v7, %v7107_v8  ;;  %v3648_v25 = vpop.f32.mrb[197].mxu0  ;;  %v3967_v30 = vpop.f32.mrb[197].mxu1 }
 0x492   :  { %v3649_v34 = vadd.f32 %v3648_v25, %v7113_v44  ;;  %v3650_v1 = vpop.f32.mrb[198].mxu0  ;;  %v3968_v62 = vpop.f32.mrb[198].mxu1 }
 0x493   :  { %4326 = vst [vmem:[#allocation10 + $0x790] sm:$0xff] %v3647_v39  ;;  %4328 = vst [vmem:[#allocation10 + $0x7a0] sm:$0xff] %v3966_v11  ;;  %v3651_v31 = vadd.f32 %v3650_v1, %v7103_v46  ;;  %v3969_v54 = vadd.f32 %v3968_v62, %v7107_v8  ;;  %v3652_v48 = vpop.f32.mrb[199].mxu0  ;;  %v3970_v14 = vpop.f32.mrb[199].mxu1 }
 0x494   :  { %4327 = vst [vmem:[#allocation10 + $0x798] sm:$0xff] %v3649_v34  ;;  %v3653_v23 = vadd.f32 %v3652_v48, %v7113_v44 }
 0x495   :  { %4333 = vst [vmem:[#allocation10 + $0x7c8] sm:$0xff] %v3651_v31  ;;  %4335 = vst [vmem:[#allocation10 + $0x7d8] sm:$0xff] %v3969_v54 }
 0x496   :  { %4334 = vst [vmem:[#allocation10 + $0x7d0] sm:$0xff] %v3653_v23 }
 0x498   :  { %v3656_v20 = vpop.f32.mrb[200].mxu0  ;;  %v3973_v15 = vpop.f32.mrb[200].mxu1 }
 0x499   :  { %v3657_v17 = vadd.f32 %v3656_v20, %v7103_v46  ;;  %v3974_v5 = vadd.f32 %v3973_v15, %v7107_v8  ;;  %v3658_v2 = vpop.f32.mrb[201].mxu0  ;;  %v3975_v37 = vpop.f32.mrb[201].mxu1 }
 0x49a   :  { %v3659_v16 = vadd.f32 %v3658_v2, %v7113_v44  ;;  %v3660_v42 = vpop.f32.mrb[202].mxu0  ;;  %v3976_v61 = vpop.f32.mrb[202].mxu1 }
 0x49b   :  { %4340 = vst [vmem:[#allocation10 + $0x800] sm:$0xff] %v3657_v17  ;;  %4342 = vst [vmem:[#allocation10 + $0x810] sm:$0xff] %v3974_v5  ;;  %v3661_v19 = vadd.f32 %v3660_v42, %v7103_v46  ;;  %v3977_v35 = vadd.f32 %v3976_v61, %v7107_v8  ;;  %v3662_v28 = vpop.f32.mrb[203].mxu0  ;;  %v3978_v29 = vpop.f32.mrb[203].mxu1 }
 0x49c   :  { %4341 = vst [vmem:[#allocation10 + $0x808] sm:$0xff] %v3659_v16  ;;  %v3663_v12 = vadd.f32 %v3662_v28, %v7113_v44 }
 0x49d   :  { %4347 = vst [vmem:[#allocation10 + $0x838] sm:$0xff] %v3661_v19  ;;  %4349 = vst [vmem:[#allocation10 + $0x848] sm:$0xff] %v3977_v35 }
 0x49e   :  { %4348 = vst [vmem:[#allocation10 + $0x840] sm:$0xff] %v3663_v12 }
 0x4a0   :  { %v3666_v21 = vpop.f32.mrb[204].mxu0  ;;  %v3981_v36 = vpop.f32.mrb[204].mxu1 }
 0x4a1   :  { %v3667_v47 = vadd.f32 %v3666_v21, %v7103_v46  ;;  %v3982_v45 = vadd.f32 %v3981_v36, %v7107_v8  ;;  %v3668_v9 = vpop.f32.mrb[205].mxu0  ;;  %v3983_v58 = vpop.f32.mrb[205].mxu1 }
 0x4a2   :  { %v3669_v27 = vadd.f32 %v3668_v9, %v7113_v44  ;;  %v3670_v41 = vpop.f32.mrb[206].mxu0  ;;  %v3984_v13 = vpop.f32.mrb[206].mxu1 }
 0x4a3   :  { %4354 = vst [vmem:[#allocation10 + $0x870] sm:$0xff] %v3667_v47  ;;  %4356 = vst [vmem:[#allocation10 + $0x880] sm:$0xff] %v3982_v45  ;;  %v3671_v4 = vadd.f32 %v3670_v41, %v7103_v46  ;;  %v3985_v63 = vadd.f32 %v3984_v13, %v7107_v8  ;;  %v3672_v0 = vpop.f32.mrb[207].mxu0  ;;  %v3986_v57 = vpop.f32.mrb[207].mxu1 }
 0x4a4   :  { %4355 = vst [vmem:[#allocation10 + $0x878] sm:$0xff] %v3669_v27  ;;  %v3673_v51 = vadd.f32 %v3672_v0, %v7113_v44 }
 0x4a5   :  { %4361 = vst [vmem:[#allocation10 + $0x8a8] sm:$0xff] %v3671_v4  ;;  %4363 = vst [vmem:[#allocation10 + $0x8b8] sm:$0xff] %v3985_v63 }
 0x4a6   :  { %4362 = vst [vmem:[#allocation10 + $0x8b0] sm:$0xff] %v3673_v51 }
 0x4a8   :  { %v3676_v10 = vpop.f32.mrb[208].mxu0  ;;  %v3989_v22 = vpop.f32.mrb[208].mxu1 }
 0x4a9   :  { %v3677_v40 = vadd.f32 %v3676_v10, %v7103_v46  ;;  %v3990_v59 = vadd.f32 %v3989_v22, %v7107_v8  ;;  %v3678_v56 = vpop.f32.mrb[209].mxu0  ;;  %v3991_v53 = vpop.f32.mrb[209].mxu1 }
 0x4aa   :  { %v3679_v49 = vadd.f32 %v3678_v56, %v7113_v44  ;;  %v3680_v3 = vpop.f32.mrb[210].mxu0  ;;  %v3992_v18 = vpop.f32.mrb[210].mxu1 }
 0x4ab   :  { %4368 = vst [vmem:[#allocation10 + $0x8e0] sm:$0xff] %v3677_v40  ;;  %4370 = vst [vmem:[#allocation10 + $0x8f0] sm:$0xff] %v3990_v59  ;;  %v3681_v24 = vadd.f32 %v3680_v3, %v7103_v46  ;;  %v3993_v26 = vadd.f32 %v3992_v18, %v7107_v8  ;;  %v3682_v33 = vpop.f32.mrb[211].mxu0  ;;  %v3994_v52 = vpop.f32.mrb[211].mxu1 }
 0x4ac   :  { %4369 = vst [vmem:[#allocation10 + $0x8e8] sm:$0xff] %v3679_v49  ;;  %v3683_v50 = vadd.f32 %v3682_v33, %v7113_v44 }
 0x4ad   :  { %4375 = vst [vmem:[#allocation10 + $0x918] sm:$0xff] %v3681_v24  ;;  %4377 = vst [vmem:[#allocation10 + $0x928] sm:$0xff] %v3993_v26 }
 0x4ae   :  { %4376 = vst [vmem:[#allocation10 + $0x920] sm:$0xff] %v3683_v50 }
 0x4b0   :  { %v3686_v6 = vpop.f32.mrb[212].mxu0  ;;  %v3997_v32 = vpop.f32.mrb[212].mxu1 }
 0x4b1   :  { %v3687_v55 = vadd.f32 %v3686_v6, %v7103_v46  ;;  %v3998_v60 = vadd.f32 %v3997_v32, %v7107_v8  ;;  %v3688_v43 = vpop.f32.mrb[213].mxu0  ;;  %v3999_v38 = vpop.f32.mrb[213].mxu1 }
 0x4b2   :  { %v3689_v7 = vadd.f32 %v3688_v43, %v7113_v44  ;;  %v3690_v39 = vpop.f32.mrb[214].mxu0  ;;  %v4000_v11 = vpop.f32.mrb[214].mxu1 }
 0x4b3   :  { %4382 = vst [vmem:[#allocation10 + $0x950] sm:$0xff] %v3687_v55  ;;  %4384 = vst [vmem:[#allocation10 + $0x960] sm:$0xff] %v3998_v60  ;;  %v3691_v25 = vadd.f32 %v3690_v39, %v7103_v46  ;;  %v4001_v30 = vadd.f32 %v4000_v11, %v7107_v8  ;;  %v3692_v34 = vpop.f32.mrb[215].mxu0  ;;  %v4002_v1 = vpop.f32.mrb[215].mxu1 }
 0x4b4   :  { %4383 = vst [vmem:[#allocation10 + $0x958] sm:$0xff] %v3689_v7  ;;  %v3693_v62 = vadd.f32 %v3692_v34, %v7113_v44 }
 0x4b5   :  { %4389 = vst [vmem:[#allocation10 + $0x988] sm:$0xff] %v3691_v25  ;;  %4391 = vst [vmem:[#allocation10 + $0x998] sm:$0xff] %v4001_v30 }
 0x4b6   :  { %4390 = vst [vmem:[#allocation10 + $0x990] sm:$0xff] %v3693_v62 }
 0x4b8   :  { %v3696_v31 = vpop.f32.mrb[216].mxu0  ;;  %v4005_v54 = vpop.f32.mrb[216].mxu1 }
 0x4b9   :  { %v3697_v48 = vadd.f32 %v3696_v31, %v7103_v46  ;;  %v4006_v14 = vadd.f32 %v4005_v54, %v7107_v8  ;;  %v3698_v23 = vpop.f32.mrb[217].mxu0  ;;  %v4007_v20 = vpop.f32.mrb[217].mxu1 }
 0x4ba   :  { %v3699_v15 = vadd.f32 %v3698_v23, %v7113_v44  ;;  %v3700_v17 = vpop.f32.mrb[218].mxu0  ;;  %v4008_v5 = vpop.f32.mrb[218].mxu1 }
 0x4bb   :  { %4396 = vst [vmem:[#allocation10 + $0x9c0] sm:$0xff] %v3697_v48  ;;  %4398 = vst [vmem:[#allocation10 + $0x9d0] sm:$0xff] %v4006_v14  ;;  %v3701_v2 = vadd.f32 %v3700_v17, %v7103_v46  ;;  %v4009_v37 = vadd.f32 %v4008_v5, %v7107_v8  ;;  %v3702_v16 = vpop.f32.mrb[219].mxu0  ;;  %v4010_v42 = vpop.f32.mrb[219].mxu1 }
 0x4bc   :  { %4397 = vst [vmem:[#allocation10 + $0x9c8] sm:$0xff] %v3699_v15  ;;  %v3703_v61 = vadd.f32 %v3702_v16, %v7113_v44 }
 0x4bd   :  { %4403 = vst [vmem:[#allocation10 + $0x9f8] sm:$0xff] %v3701_v2  ;;  %4405 = vst [vmem:[#allocation10 + $0xa08] sm:$0xff] %v4009_v37 }
 0x4be   :  { %4404 = vst [vmem:[#allocation10 + $0xa00] sm:$0xff] %v3703_v61 }
 0x4c0   :  { %v3706_v19 = vpop.f32.mrb[220].mxu0  ;;  %v4013_v35 = vpop.f32.mrb[220].mxu1 }
 0x4c1   :  { %v3707_v28 = vadd.f32 %v3706_v19, %v7103_v46  ;;  %v4014_v29 = vadd.f32 %v4013_v35, %v7107_v8  ;;  %v3708_v12 = vpop.f32.mrb[221].mxu0  ;;  %v4015_v21 = vpop.f32.mrb[221].mxu1 }
 0x4c2   :  { %v3709_v36 = vadd.f32 %v3708_v12, %v7113_v44  ;;  %v3710_v47 = vpop.f32.mrb[222].mxu0  ;;  %v4016_v45 = vpop.f32.mrb[222].mxu1 }
 0x4c3   :  { %4410 = vst [vmem:[#allocation10 + $0xa30] sm:$0xff] %v3707_v28  ;;  %4412 = vst [vmem:[#allocation10 + $0xa40] sm:$0xff] %v4014_v29  ;;  %v3711_v9 = vadd.f32 %v3710_v47, %v7103_v46  ;;  %v4017_v58 = vadd.f32 %v4016_v45, %v7107_v8  ;;  %v3712_v27 = vpop.f32.mrb[223].mxu0  ;;  %v4018_v41 = vpop.f32.mrb[223].mxu1 }
 0x4c4   :  { %4411 = vst [vmem:[#allocation10 + $0xa38] sm:$0xff] %v3709_v36  ;;  %v3713_v13 = vadd.f32 %v3712_v27, %v7113_v44 }
 0x4c5   :  { %4417 = vst [vmem:[#allocation10 + $0xa68] sm:$0xff] %v3711_v9  ;;  %4419 = vst [vmem:[#allocation10 + $0xa78] sm:$0xff] %v4017_v58 }
 0x4c6   :  { %4418 = vst [vmem:[#allocation10 + $0xa70] sm:$0xff] %v3713_v13 }
 0x4c8   :  { %v3716_v4 = vpop.f32.mrb[224].mxu0  ;;  %v4021_v63 = vpop.f32.mrb[224].mxu1 }
 0x4c9   :  { %v3717_v0 = vadd.f32 %v3716_v4, %v7103_v46  ;;  %v4022_v57 = vadd.f32 %v4021_v63, %v7107_v8  ;;  %v3718_v51 = vpop.f32.mrb[225].mxu0  ;;  %v4023_v10 = vpop.f32.mrb[225].mxu1 }
 0x4ca   :  { %v3719_v22 = vadd.f32 %v3718_v51, %v7113_v44  ;;  %v3720_v40 = vpop.f32.mrb[226].mxu0  ;;  %v4024_v59 = vpop.f32.mrb[226].mxu1 }
 0x4cb   :  { %4424 = vst [vmem:[#allocation10 + $0xaa0] sm:$0xff] %v3717_v0  ;;  %4426 = vst [vmem:[#allocation10 + $0xab0] sm:$0xff] %v4022_v57  ;;  %v3721_v56 = vadd.f32 %v3720_v40, %v7103_v46  ;;  %v4025_v53 = vadd.f32 %v4024_v59, %v7107_v8  ;;  %v3722_v49 = vpop.f32.mrb[227].mxu0  ;;  %v4026_v3 = vpop.f32.mrb[227].mxu1 }
 0x4cc   :  { %4425 = vst [vmem:[#allocation10 + $0xaa8] sm:$0xff] %v3719_v22  ;;  %v3723_v18 = vadd.f32 %v3722_v49, %v7113_v44 }
 0x4cd   :  { %4431 = vst [vmem:[#allocation10 + $0xad8] sm:$0xff] %v3721_v56  ;;  %4433 = vst [vmem:[#allocation10 + $0xae8] sm:$0xff] %v4025_v53 }
 0x4ce   :  { %4432 = vst [vmem:[#allocation10 + $0xae0] sm:$0xff] %v3723_v18 }
 0x4d0   :  { %v3726_v24 = vpop.f32.mrb[228].mxu0  ;;  %v4029_v26 = vpop.f32.mrb[228].mxu1 }
 0x4d1   :  { %v3727_v33 = vadd.f32 %v3726_v24, %v7103_v46  ;;  %v4030_v52 = vadd.f32 %v4029_v26, %v7107_v8  ;;  %v3728_v50 = vpop.f32.mrb[229].mxu0  ;;  %v4031_v6 = vpop.f32.mrb[229].mxu1 }
 0x4d2   :  { %v3729_v32 = vadd.f32 %v3728_v50, %v7113_v44  ;;  %v3730_v55 = vpop.f32.mrb[230].mxu0  ;;  %v4032_v60 = vpop.f32.mrb[230].mxu1 }
 0x4d3   :  { %4438 = vst [vmem:[#allocation10 + $0xb10] sm:$0xff] %v3727_v33  ;;  %4440 = vst [vmem:[#allocation10 + $0xb20] sm:$0xff] %v4030_v52  ;;  %v3731_v43 = vadd.f32 %v3730_v55, %v7103_v46  ;;  %v4033_v38 = vadd.f32 %v4032_v60, %v7107_v8  ;;  %v3732_v7 = vpop.f32.mrb[231].mxu0  ;;  %v4034_v39 = vpop.f32.mrb[231].mxu1 }
 0x4d4   :  { %4439 = vst [vmem:[#allocation10 + $0xb18] sm:$0xff] %v3729_v32  ;;  %v3733_v11 = vadd.f32 %v3732_v7, %v7113_v44 }
 0x4d5   :  { %4445 = vst [vmem:[#allocation10 + $0xb48] sm:$0xff] %v3731_v43  ;;  %4447 = vst [vmem:[#allocation10 + $0xb58] sm:$0xff] %v4033_v38 }
 0x4d6   :  { %4446 = vst [vmem:[#allocation10 + $0xb50] sm:$0xff] %v3733_v11 }
 0x4d8   :  { %v3736_v25 = vpop.f32.mrb[232].mxu0  ;;  %v4037_v30 = vpop.f32.mrb[232].mxu1 }
 0x4d9   :  { %v3737_v34 = vadd.f32 %v3736_v25, %v7103_v46  ;;  %v4038_v1 = vadd.f32 %v4037_v30, %v7107_v8  ;;  %v3738_v62 = vpop.f32.mrb[233].mxu0  ;;  %v4039_v31 = vpop.f32.mrb[233].mxu1 }
 0x4da   :  { %v3739_v54 = vadd.f32 %v3738_v62, %v7113_v44  ;;  %v3740_v48 = vpop.f32.mrb[234].mxu0  ;;  %v4040_v14 = vpop.f32.mrb[234].mxu1 }
 0x4db   :  { %4452 = vst [vmem:[#allocation10 + $0xb80] sm:$0xff] %v3737_v34  ;;  %4454 = vst [vmem:[#allocation10 + $0xb90] sm:$0xff] %v4038_v1  ;;  %v3741_v23 = vadd.f32 %v3740_v48, %v7103_v46  ;;  %v4041_v20 = vadd.f32 %v4040_v14, %v7107_v8  ;;  %v3742_v15 = vpop.f32.mrb[235].mxu0  ;;  %v4042_v17 = vpop.f32.mrb[235].mxu1 }
 0x4dc   :  { %4453 = vst [vmem:[#allocation10 + $0xb88] sm:$0xff] %v3739_v54  ;;  %v3743_v5 = vadd.f32 %v3742_v15, %v7113_v44 }
 0x4dd   :  { %4459 = vst [vmem:[#allocation10 + $0xbb8] sm:$0xff] %v3741_v23  ;;  %4461 = vst [vmem:[#allocation10 + $0xbc8] sm:$0xff] %v4041_v20 }
 0x4de   :  { %4460 = vst [vmem:[#allocation10 + $0xbc0] sm:$0xff] %v3743_v5 }
 0x4e0   :  { %v3746_v2 = vpop.f32.mrb[236].mxu0  ;;  %v4045_v37 = vpop.f32.mrb[236].mxu1 }
 0x4e1   :  { %v3747_v16 = vadd.f32 %v3746_v2, %v7103_v46  ;;  %v4046_v42 = vadd.f32 %v4045_v37, %v7107_v8  ;;  %v3748_v61 = vpop.f32.mrb[237].mxu0  ;;  %v4047_v19 = vpop.f32.mrb[237].mxu1 }
 0x4e2   :  { %v3749_v35 = vadd.f32 %v3748_v61, %v7113_v44  ;;  %v3750_v28 = vpop.f32.mrb[238].mxu0  ;;  %v4048_v29 = vpop.f32.mrb[238].mxu1 }
 0x4e3   :  { %4466 = vst [vmem:[#allocation10 + $0xbf0] sm:$0xff] %v3747_v16  ;;  %4468 = vst [vmem:[#allocation10 + $0xc00] sm:$0xff] %v4046_v42  ;;  %v3751_v12 = vadd.f32 %v3750_v28, %v7103_v46  ;;  %v4049_v21 = vadd.f32 %v4048_v29, %v7107_v8  ;;  %v3752_v36 = vpop.f32.mrb[239].mxu0  ;;  %v4050_v47 = vpop.f32.mrb[239].mxu1 }
 0x4e4   :  { %4467 = vst [vmem:[#allocation10 + $0xbf8] sm:$0xff] %v3749_v35  ;;  %v3753_v45 = vadd.f32 %v3752_v36, %v7113_v44 }
 0x4e5   :  { %4473 = vst [vmem:[#allocation10 + $0xc28] sm:$0xff] %v3751_v12  ;;  %4475 = vst [vmem:[#allocation10 + $0xc38] sm:$0xff] %v4049_v21 }
 0x4e6   :  { %4474 = vst [vmem:[#allocation10 + $0xc30] sm:$0xff] %v3753_v45 }
 0x4e8   :  { %v3756_v9 = vpop.f32.mrb[240].mxu0  ;;  %v4053_v58 = vpop.f32.mrb[240].mxu1 }
 0x4e9   :  { %v3757_v27 = vadd.f32 %v3756_v9, %v7103_v46  ;;  %v4054_v41 = vadd.f32 %v4053_v58, %v7107_v8  ;;  %v3758_v13 = vpop.f32.mrb[241].mxu0  ;;  %v4055_v4 = vpop.f32.mrb[241].mxu1 }
 0x4ea   :  { %v3759_v63 = vadd.f32 %v3758_v13, %v7113_v44  ;;  %v3760_v0 = vpop.f32.mrb[242].mxu0  ;;  %v4056_v57 = vpop.f32.mrb[242].mxu1 }
 0x4eb   :  { %4480 = vst [vmem:[#allocation10 + $0xc60] sm:$0xff] %v3757_v27  ;;  %4482 = vst [vmem:[#allocation10 + $0xc70] sm:$0xff] %v4054_v41  ;;  %v3761_v51 = vadd.f32 %v3760_v0, %v7103_v46  ;;  %v4057_v10 = vadd.f32 %v4056_v57, %v7107_v8  ;;  %v3762_v22 = vpop.f32.mrb[243].mxu0  ;;  %v4058_v40 = vpop.f32.mrb[243].mxu1 }
 0x4ec   :  { %4481 = vst [vmem:[#allocation10 + $0xc68] sm:$0xff] %v3759_v63  ;;  %v3763_v59 = vadd.f32 %v3762_v22, %v7113_v44 }
 0x4ed   :  { %4487 = vst [vmem:[#allocation10 + $0xc98] sm:$0xff] %v3761_v51  ;;  %4489 = vst [vmem:[#allocation10 + $0xca8] sm:$0xff] %v4057_v10 }
 0x4ee   :  { %4488 = vst [vmem:[#allocation10 + $0xca0] sm:$0xff] %v3763_v59 }
 0x4f0   :  { %v3766_v56 = vpop.f32.mrb[244].mxu0  ;;  %v4061_v53 = vpop.f32.mrb[244].mxu1 }
 0x4f1   :  { %v3767_v49 = vadd.f32 %v3766_v56, %v7103_v46  ;;  %v4062_v3 = vadd.f32 %v4061_v53, %v7107_v8  ;;  %v3768_v18 = vpop.f32.mrb[245].mxu0  ;;  %v4063_v24 = vpop.f32.mrb[245].mxu1 }
 0x4f2   :  { %v3769_v26 = vadd.f32 %v3768_v18, %v7113_v44  ;;  %v3770_v33 = vpop.f32.mrb[246].mxu0  ;;  %v4064_v52 = vpop.f32.mrb[246].mxu1 }
 0x4f3   :  { %4494 = vst [vmem:[#allocation10 + $0xcd0] sm:$0xff] %v3767_v49  ;;  %4496 = vst [vmem:[#allocation10 + $0xce0] sm:$0xff] %v4062_v3  ;;  %v3771_v50 = vadd.f32 %v3770_v33, %v7103_v46  ;;  %v4065_v6 = vadd.f32 %v4064_v52, %v7107_v8  ;;  %v3772_v32 = vpop.f32.mrb[247].mxu0  ;;  %v4066_v55 = vpop.f32.mrb[247].mxu1 }
 0x4f4   :  { %4495 = vst [vmem:[#allocation10 + $0xcd8] sm:$0xff] %v3769_v26  ;;  %v3773_v60 = vadd.f32 %v3772_v32, %v7113_v44 }
 0x4f5   :  { %4501 = vst [vmem:[#allocation10 + $0xd08] sm:$0xff] %v3771_v50  ;;  %4503 = vst [vmem:[#allocation10 + $0xd18] sm:$0xff] %v4065_v6 }
 0x4f6   :  { %4502 = vst [vmem:[#allocation10 + $0xd10] sm:$0xff] %v3773_v60 }
 0x4f8   :  { %v3776_v43 = vpop.f32.mrb[248].mxu0  ;;  %v4069_v38 = vpop.f32.mrb[248].mxu1 }
 0x4f9   :  { %v3777_v7 = vadd.f32 %v3776_v43, %v7103_v46  ;;  %v4070_v39 = vadd.f32 %v4069_v38, %v7107_v8  ;;  %v3778_v11 = vpop.f32.mrb[249].mxu0  ;;  %v4071_v25 = vpop.f32.mrb[249].mxu1 }
 0x4fa   :  { %v3779_v30 = vadd.f32 %v3778_v11, %v7113_v44  ;;  %v3780_v34 = vpop.f32.mrb[250].mxu0  ;;  %v4072_v1 = vpop.f32.mrb[250].mxu1 }
 0x4fb   :  { %4508 = vst [vmem:[#allocation10 + $0xd40] sm:$0xff] %v3777_v7  ;;  %4510 = vst [vmem:[#allocation10 + $0xd50] sm:$0xff] %v4070_v39  ;;  %v3781_v62 = vadd.f32 %v3780_v34, %v7103_v46  ;;  %v4073_v31 = vadd.f32 %v4072_v1, %v7107_v8  ;;  %v3782_v54 = vpop.f32.mrb[251].mxu0  ;;  %v4074_v48 = vpop.f32.mrb[251].mxu1 }
 0x4fc   :  { %4509 = vst [vmem:[#allocation10 + $0xd48] sm:$0xff] %v3779_v30  ;;  %v3783_v14 = vadd.f32 %v3782_v54, %v7113_v44 }
 0x4fd   :  { %4515 = vst [vmem:[#allocation10 + $0xd78] sm:$0xff] %v3781_v62  ;;  %4517 = vst [vmem:[#allocation10 + $0xd88] sm:$0xff] %v4073_v31 }
 0x4fe   :  { %4516 = vst [vmem:[#allocation10 + $0xd80] sm:$0xff] %v3783_v14 }
 0x500   :  { %v3786_v23 = vpop.f32.mrb[252].mxu0  ;;  %v4077_v20 = vpop.f32.mrb[252].mxu1 }
 0x501   :  { %v3787_v15 = vadd.f32 %v3786_v23, %v7103_v46  ;;  %v4078_v17 = vadd.f32 %v4077_v20, %v7107_v8  ;;  %v3788_v5 = vpop.f32.mrb[253].mxu0  ;;  %v4079_v2 = vpop.f32.mrb[253].mxu1 }
 0x502   :  { %v3789_v37 = vadd.f32 %v3788_v5, %v7113_v44  ;;  %v3790_v16 = vpop.f32.mrb[254].mxu0  ;;  %v4080_v42 = vpop.f32.mrb[254].mxu1 }
 0x503   :  { %4522 = vst [vmem:[#allocation10 + $0xdb0] sm:$0xff] %v3787_v15  ;;  %4524 = vst [vmem:[#allocation10 + $0xdc0] sm:$0xff] %v4078_v17  ;;  %v3791_v61 = vadd.f32 %v3790_v16, %v7103_v46  ;;  %v4081_v19 = vadd.f32 %v4080_v42, %v7107_v8  ;;  %v3792_v35 = vpop.f32.mrb[255].mxu0  ;;  %v4082_v28 = vpop.f32.mrb[255].mxu1 }
 0x504   :  { %4523 = vst [vmem:[#allocation10 + $0xdb8] sm:$0xff] %v3789_v37  ;;  %v3793_v29 = vadd.f32 %v3792_v35, %v7113_v44 }
 0x505   :  { %4529 = vst [vmem:[#allocation10 + $0xde8] sm:$0xff] %v3791_v61  ;;  %4531 = vst [vmem:[#allocation10 + $0xdf8] sm:$0xff] %v4081_v19 }
 0x506   :  { %4530 = vst [vmem:[#allocation10 + $0xdf0] sm:$0xff] %v3793_v29 }
 0x507   :  { %5061 = shalt.err (!%p5058_p8)
}
 0x508   :  { %s5062_s4 = scalar_lea.hbm %s7342_s5, 57344 }
 0x509   :  { %p5063_p9 = scmp.ne.s32.totalorder %s7342_s5, %s5062_s4  ;;  %p5066_p10 = scmp.lt.u32.totalorder %s5062_s4, %s7342_s5 }
 0x50b   :  { %p5068_p11 = pnand %p5066_p10, %p5063_p9 }
 0x50d   :  { %5071 = shalt.err (!%p5068_p11)
}
 0x50e   :  { %s5090_s22 = smov 896   ;;  %s5091_s23 = smov 56  }
 0x50f   :  { %4543 = dma.vmem_to_hbm [thread:$0]  %s4538_s14, 57344, %s7342_s5, [#allocation4], %s5090_s22, %s5090_s22, %s5091_s23  }
 0x510   :  { %5078 = dma.done.wait [#allocation4], 57344  }
 0x511   :  { %5079 = vsyncadd [#allocation4], 4294909952 }
 0x512   :  { %4547 = vsyncpa [#allocation3], 1 }
 0x513   :  { %4548 = vsyncpa [#allocation6], 1 }
 0x514   :  { %4549 = vsyncpa [#allocation9], 1 }
 0x515   :  { %4550 = vsyncpa [#allocation4], 1 }

</bundles_post_ra>
